<compile_context>
chip_gen: v5e
topology: v5e:2x2
jax: 0.10.0
libtpu: 0.0.40
codegen_flags: <defaults>
</compile_context>

<pallas_src>
import math

import jax
import jax.numpy as jnp
from jax.experimental import pallas as pl
from jax.experimental.pallas import tpu as pltpu

EPS = 1e-5    # nn.BatchNorm2d default eps
LANE = 128    # TPU lane width


def _round_up(x, m):
    return (x + m - 1) // m * m


def _pad_axis(a, axis, new_size):
    pad = [(0, 0)] * a.ndim
    pad[axis] = (0, new_size - a.shape[axis])
    return jnp.pad(a, pad)


def _fold_bn(w, gamma, beta, mean, var):
    """Fold inference-mode BatchNorm into a conv weight (out-channel last) + bias."""
    scale = (gamma * jax.lax.rsqrt(var + EPS)).reshape(-1)          # (Cout,)
    shift = beta.reshape(-1) - mean.reshape(-1) * scale             # (Cout,)
    return w * scale, shift.reshape(1, -1)


# ------------------------- fused bottleneck kernel -------------------------
def _make_kernel(H, W, halo):
    HW = H * W

    def kernel(x_ref, mask_ref, w1_ref, b1_ref, w2_ref, b2_ref, w3_ref, b3_ref,
               o_ref, h1_scr):
        x = x_ref[...]                                              # (HW, Cin_p) bf16

        # conv1 (1x1) + folded bn1 + relu
        h1 = jnp.dot(x, w1_ref[...], preferred_element_type=jnp.float32)
        h1 = jnp.maximum(h1 + b1_ref[...], 0.0)                     # (HW, Pp) f32

        # Stage h1 in a flat, zero-padded VMEM scratch: scr[halo + i] = h1[i].
        h1_scr[...] = jnp.zeros_like(h1_scr)
        h1_scr[halo:halo + HW, :] = h1

        # conv2 (3x3, stride 1, pad 1) as 9 accumulating matmuls over shifted,
        # boundary-masked reads of the scratch (no im2col materialization).
        acc = jnp.zeros((HW, h1.shape[1]), jnp.float32)
        for t in range(9):
            dy, dx = t // 3 - 1, t % 3 - 1
            s = dy * W + dx                                        # flat pixel shift
            tap = h1_scr[halo + s:halo + s + HW, :] * mask_ref[t]  # (HW, Pp) f32
            acc = acc + jnp.dot(tap.astype(jnp.bfloat16), w2_ref[t],
                                preferred_element_type=jnp.float32)
        h2 = jnp.maximum(acc + b2_ref[...], 0.0)                   # folded bn2 + relu

        # conv3 (1x1) + folded bn3 + residual add + relu (f32 epilogue)
        h3 = jnp.dot(h2.astype(jnp.bfloat16), w3_ref[...],
                     preferred_element_type=jnp.float32) + b3_ref[...]
        o_ref[...] = jnp.maximum(h3 + x.astype(jnp.float32), 0.0)

    return kernel


def bottleneck_pc3_forward(x_nchw, p):
    """Forward of BottleneckPC3 (stride=1, downsample=None). Input/Output are NCHW."""
    N, Cin, H, W = x_nchw.shape
    P = p["w1"].shape[1]                     # planes
    Cout = 4 * P
    assert Cin == Cout, "downsample=None requires inplanes == planes * expansion"

    HW = H * W
    Cin_p, Pp, Cout_p = (_round_up(c, LANE) for c in (Cin, P, Cout))
    halo = _round_up(W + 1, 8)               # zero band before/after the image
    scr_rows = HW + 2 * halo

    # ---- host side: fold BN, pad channels to lane multiples, cast to bf16 ----
    w1, b1 = _fold_bn(p["w1"], p["g1"], p["b1"], p["m1"], p["v1"])
    w2, b2 = _fold_bn(p["w2"], p["g2"], p["b2"], p["m2"], p["v2"])
    w3, b3 = _fold_bn(p["w3"], p["g3"], p["b3"], p["m3"], p["v3"])

    w1 = _pad_axis(_pad_axis(w1, 0, Cin_p), 1, Pp).astype(jnp.bfloat16)      # (Cin_p, Pp)
    w2 = w2.reshape(9, P, P)                                                 # (ky*3+kx, ci, co)
    w2 = _pad_axis(_pad_axis(w2, 1, Pp), 2, Pp).astype(jnp.bfloat16)         # (9, Pp, Pp)
    w3 = _pad_axis(_pad_axis(w3, 0, Pp), 1, Cout_p).astype(jnp.bfloat16)     # (Pp, Cout_p)
    b1 = _pad_axis(b1, 1, Pp).astype(jnp.float32)
    b2 = _pad_axis(b2, 1, Pp).astype(jnp.float32)
    b3 = _pad_axis(b3, 1, Cout_p).astype(jnp.float32)

    # Per-tap boundary masks for the 3x3/pad-1 conv, flattened over pixels.
    yy = jnp.arange(H).reshape(H, 1)
    xx = jnp.arange(W).reshape(1, W)
    masks = []
    for t in range(9):
        dy, dx = t // 3 - 1, t % 3 - 1
        ok = (yy + dy >= 0) & (yy + dy < H) & (xx + dx >= 0) & (xx + dx < W)
        masks.append(ok.reshape(HW, 1).astype(jnp.float32))
    masks = jnp.stack(masks, axis=0)                                         # (9, HW, 1)

    # ---- activations: NCHW -> (N*H*W, Cin_p) channels-last, bf16 ----
    x2d = jnp.transpose(x_nchw, (0, 2, 3, 1)).reshape(N * HW, Cin)
    x2d = _pad_axis(x2d, 1, Cin_p).astype(jnp.bfloat16)

    kernel = _make_kernel(H, W, halo)

    flops = 2 * N * HW * (Cin_p * Pp + 9 * Pp * Pp + Pp * Cout_p)
    bytes_accessed = (x2d.size * 2 + N * HW * Cout_p * 4
                      + (w1.size + w2.size + w3.size) * 2
                      + (b1.size + b2.size + b3.size + masks.size) * 4)

    out2d = pl.pallas_call(
        kernel,
        out_shape=jax.ShapeDtypeStruct((N * HW, Cout_p), jnp.float32),
        grid=(N,),
        in_specs=[
            pl.BlockSpec((HW, Cin_p), lambda n: (n, 0)),      # x tile (also residual)
            pl.BlockSpec((9, HW, 1), lambda n: (0, 0, 0)),    # tap masks (resident)
            pl.BlockSpec((Cin_p, Pp), lambda n: (0, 0)),      # w1 (bn1 folded)
            pl.BlockSpec((1, Pp), lambda n: (0, 0)),          # b1
            pl.BlockSpec((9, Pp, Pp), lambda n: (0, 0, 0)),   # w2 (bn2 folded)
            pl.BlockSpec((1, Pp), lambda n: (0, 0)),          # b2
            pl.BlockSpec((Pp, Cout_p), lambda n: (0, 0)),     # w3 (bn3 folded)
            pl.BlockSpec((1, Cout_p), lambda n: (0, 0)),      # b3
        ],
        out_specs=pl.BlockSpec((HW, Cout_p), lambda n: (n, 0)),
        scratch_shapes=[pltpu.VMEM((scr_rows, Pp), jnp.float32)],
        compiler_params=pltpu.CompilerParams(
            dimension_semantics=("parallel",),
            vmem_limit_bytes=64 * 1024 * 1024),
        cost_estimate=pl.CostEstimate(flops=flops, transcendentals=0,
                                      bytes_accessed=bytes_accessed),
    )(x2d, masks, w1, b1, w2, b2, w3, b3)

    out = out2d[:, :Cout].reshape(N, H, W, Cout)
    return jnp.transpose(out, (0, 3, 1, 2))                  # back to NCHW


# --------------------------- pure-JAX f32 reference ---------------------------
def reference_forward(x_nchw, p):
    x = jnp.transpose(x_nchw, (0, 2, 3, 1)).astype(jnp.float32)   # NHWC

    def bn(h, g, b, m, v):
        return (h - m) * (g / jnp.sqrt(v + EPS)) + b

    dn = ("NHWC", "HWIO", "NHWC")
    h = jax.lax.conv_general_dilated(x, p["w1"].reshape(1, 1, *p["w1"].shape),
                                     (1, 1), "VALID", dimension_numbers=dn)
    h = jax.nn.relu(bn(h, p["g1"], p["b1"], p["m1"], p["v1"]))
    h = jax.lax.conv_general_dilated(h, p["w2"], (1, 1), "SAME", dimension_numbers=dn)
    h = jax.nn.relu(bn(h, p["g2"], p["b2"], p["m2"], p["v2"]))
    h = jax.lax.conv_general_dilated(h, p["w3"].reshape(1, 1, *p["w3"].shape),
                                     (1, 1), "VALID", dimension_numbers=dn)
    h = bn(h, p["g3"], p["b3"], p["m3"], p["v3"])
    out = jax.nn.relu(h + x)
    return jnp.transpose(out, (0, 3, 1, 2))


def make_params(key, inplanes, planes):
    kw1, kw2, kw3, kb1, kb2, kb3 = jax.random.split(key, 6)

    w1 = jax.random.normal(kw1, (inplanes, planes), jnp.float32) / math.sqrt(inplanes)
    w2 = jax.random.normal(kw2, (3, 3, planes, planes), jnp.float32) / math.sqrt(9 * planes)
    w3 = jax.random.normal(kw3, (planes, planes * 4), jnp.float32) / math.sqrt(planes)

    def bn_init(k, c):
        k1, k2, k3, k4 = jax.random.split(k, 4)
        g = 1.0 + 0.1 * jax.random.normal(k1, (1, c), jnp.float32)
        b = 0.1 * jax.random.normal(k2, (1, c), jnp.float32)
        m = 0.1 * jax.random.normal(k3, (1, c), jnp.float32)
        v = 0.5 + jax.random.uniform(k4, (1, c), jnp.float32)
        return g, b, m, v

    g1, b1, m1, v1 = bn_init(kb1, planes)
    g2, b2, m2, v2 = bn_init(kb2, planes)
    g3, b3, m3, v3 = bn_init(kb3, planes * 4)

    return dict(
        w1=w1, g1=g1, b1=b1, m1=m1, v1=v1,
        w2=w2, g2=g2, b2=b2, m2=m2, v2=v2,
        w3=w3, g3=g3, b3=b3, m3=m3, v3=v3,
    )


if __name__ == "__main__":
    key = jax.random.PRNGKey(0)
    kx, kp = jax.random.split(key)

    N, H, W = 2, 16, 16
    planes = 4
    inplanes = planes * 4   # 16: required so the residual add is valid with downsample=None

    x = jax.random.normal(kx, (N, inplanes, H, W), jnp.float32)   # NCHW, like PyTorch
    params = make_params(kp, inplanes, planes)

    fwd = jax.jit(bottleneck_pc3_forward)
    out = jax.block_until_ready(fwd(x, params))

    ref = reference_forward(x, params)
    err_max = float(jnp.max(jnp.abs(out - ref)))
    err_mean = float(jnp.mean(jnp.abs(out - ref)))

    assert out.shape == (N, planes * 4, H, W)
    # bf16 matmul operands (per perf review) vs the pure-f32 reference => looser
    # tolerance than the original all-f32 kernel.
    assert err_max < 2e-1 and err_mean < 3e-2, (err_max, err_mean)

    print("KERNEL_OK")
</pallas_src>

<mosaic_0001>
module attributes {stable_mosaic.version = 11 : i64} {
  func.func @kernel(%arg0: i32, %arg1: memref<256x128xbf16, #tpu.memory_space<vmem>>, %arg2: memref<9x256x1xf32, #tpu.memory_space<vmem>>, %arg3: memref<128x128xbf16, #tpu.memory_space<vmem>>, %arg4: memref<1x128xf32, #tpu.memory_space<vmem>>, %arg5: memref<9x128x128xbf16, #tpu.memory_space<vmem>>, %arg6: memref<1x128xf32, #tpu.memory_space<vmem>>, %arg7: memref<128x128xbf16, #tpu.memory_space<vmem>>, %arg8: memref<1x128xf32, #tpu.memory_space<vmem>>, %arg9: memref<256x128xf32, #tpu.memory_space<vmem>>, %arg10: memref<304x128xf32, #tpu.memory_space<vmem>>) attributes {dimension_semantics = [#tpu.dimension_semantics<parallel>], iteration_bounds = array<i64: 2>, scalar_prefetch = 0 : i64, scratch_operands = 1 : i64, tpu.core_type = #tpu.core_type<tc>, window_params = [{transform_indices = @transform_0, window_bounds = array<i64: 256, 128>}, {pipeline_mode = #tpu.pipeline_mode<synchronous>, transform_indices = @transform_1, window_bounds = array<i64: 9, 256, 1>}, {pipeline_mode = #tpu.pipeline_mode<synchronous>, transform_indices = @transform_2, window_bounds = array<i64: 128, 128>}, {pipeline_mode = #tpu.pipeline_mode<synchronous>, transform_indices = @transform_3, window_bounds = array<i64: 1, 128>}, {pipeline_mode = #tpu.pipeline_mode<synchronous>, transform_indices = @transform_4, window_bounds = array<i64: 9, 128, 128>}, {pipeline_mode = #tpu.pipeline_mode<synchronous>, transform_indices = @transform_5, window_bounds = array<i64: 1, 128>}, {pipeline_mode = #tpu.pipeline_mode<synchronous>, transform_indices = @transform_6, window_bounds = array<i64: 128, 128>}, {pipeline_mode = #tpu.pipeline_mode<synchronous>, transform_indices = @transform_7, window_bounds = array<i64: 1, 128>}, {transform_indices = @transform_8, window_bounds = array<i64: 256, 128>}]} {
    %c0 = arith.constant 0 : index
    %c0_0 = arith.constant 0 : index
    %0 = vector.load %arg1[%c0, %c0_0] : memref<256x128xbf16, #tpu.memory_space<vmem>>, vector<256x128xbf16>
    %c0_1 = arith.constant 0 : index
    %c0_2 = arith.constant 0 : index
    %1 = vector.load %arg3[%c0_1, %c0_2] : memref<128x128xbf16, #tpu.memory_space<vmem>>, vector<128x128xbf16>
    %cst = arith.constant dense<0.000000e+00> : vector<256x128xf32>
    %2 = tpu.matmul %0, %1, %cst {dimension_numbers = #tpu.dot_dimension_numbers<[1], [0], [0], [1], [0, 0, 1, 1], [], []>} : vector<256x128xbf16>, vector<128x128xbf16>, vector<256x128xf32> -> vector<256x128xf32>
    %c0_3 = arith.constant 0 : index
    %c0_4 = arith.constant 0 : index
    %3 = vector.load %arg4[%c0_3, %c0_4] : memref<1x128xf32, #tpu.memory_space<vmem>>, vector<1x128xf32>
    %4 = vector.broadcast %3 : vector<1x128xf32> to vector<256x128xf32>
    %5 = arith.addf %2, %4 : vector<256x128xf32>
    %cst_5 = arith.constant 0.000000e+00 : f32
    %6 = vector.broadcast %cst_5 : f32 to vector<256x128xf32>
    %7 = arith.maximumf %5, %6 : vector<256x128xf32>
    %cst_6 = arith.constant 0.000000e+00 : f32
    %8 = vector.broadcast %cst_6 : f32 to vector<304x128xf32>
    %c0_7 = arith.constant 0 : index
    %c0_8 = arith.constant 0 : index
    %9 = vector.load %arg10[%c0_7, %c0_8] : memref<304x128xf32, #tpu.memory_space<vmem>>, vector<304x128xf32>
    tpu.vector_store %arg10[%c0_7, %c0_8], %8 {strides = array<i32>} : memref<304x128xf32, #tpu.memory_space<vmem>>, vector<304x128xf32>,
    %c24 = arith.constant 24 : index
    %c0_9 = arith.constant 0 : index
    %10 = vector.load %arg10[%c24, %c0_9] : memref<304x128xf32, #tpu.memory_space<vmem>>, vector<256x128xf32>
    tpu.vector_store %arg10[%c24, %c0_9], %7 {strides = array<i32>} : memref<304x128xf32, #tpu.memory_space<vmem>>, vector<256x128xf32>,
    %cst_10 = arith.constant 0.000000e+00 : f32
    %11 = vector.broadcast %cst_10 : f32 to vector<256x128xf32>
    %c7 = arith.constant 7 : index
    %c0_11 = arith.constant 0 : index
    %12 = vector.load %arg10[%c7, %c0_11] : memref<304x128xf32, #tpu.memory_space<vmem>>, vector<256x128xf32>
    %c0_12 = arith.constant 0 : index
    %c0_13 = arith.constant 0 : index
    %c0_14 = arith.constant 0 : index
    %13 = vector.load %arg2[%c0_12, %c0_13, %c0_14] : memref<9x256x1xf32, #tpu.memory_space<vmem>>, vector<1x256x1xf32>
    %14 = vector.shape_cast %13 : vector<1x256x1xf32> to vector<256x1xf32>
    %15 = vector.broadcast %14 : vector<256x1xf32> to vector<256x128xf32>
    %16 = arith.mulf %12, %15 : vector<256x128xf32>
    %17 = arith.truncf %16 : vector<256x128xf32> to vector<256x128xbf16>
    %c0_15 = arith.constant 0 : index
    %c0_16 = arith.constant 0 : index
    %c0_17 = arith.constant 0 : index
    %18 = vector.load %arg5[%c0_15, %c0_16, %c0_17] : memref<9x128x128xbf16, #tpu.memory_space<vmem>>, vector<1x128x128xbf16>
    %19 = vector.shape_cast %18 : vector<1x128x128xbf16> to vector<128x128xbf16>
    %cst_18 = arith.constant dense<0.000000e+00> : vector<256x128xf32>
    %20 = tpu.matmul %17, %19, %cst_18 {dimension_numbers = #tpu.dot_dimension_numbers<[1], [0], [0], [1], [0, 0, 1, 1], [], []>} : vector<256x128xbf16>, vector<128x128xbf16>, vector<256x128xf32> -> vector<256x128xf32>
    %21 = arith.addf %11, %20 : vector<256x128xf32>
    %c8 = arith.constant 8 : index
    %c0_19 = arith.constant 0 : index
    %22 = vector.load %arg10[%c8, %c0_19] : memref<304x128xf32, #tpu.memory_space<vmem>>, vector<256x128xf32>
    %c1 = arith.constant 1 : index
    %c0_20 = arith.constant 0 : index
    %c0_21 = arith.constant 0 : index
    %23 = vector.load %arg2[%c1, %c0_20, %c0_21] : memref<9x256x1xf32, #tpu.memory_space<vmem>>, vector<1x256x1xf32>
    %24 = vector.shape_cast %23 : vector<1x256x1xf32> to vector<256x1xf32>
    %25 = vector.broadcast %24 : vector<256x1xf32> to vector<256x128xf32>
    %26 = arith.mulf %22, %25 : vector<256x128xf32>
    %27 = arith.truncf %26 : vector<256x128xf32> to vector<256x128xbf16>
    %c1_22 = arith.constant 1 : index
    %c0_23 = arith.constant 0 : index
    %c0_24 = arith.constant 0 : index
    %28 = vector.load %arg5[%c1_22, %c0_23, %c0_24] : memref<9x128x128xbf16, #tpu.memory_space<vmem>>, vector<1x128x128xbf16>
    %29 = vector.shape_cast %28 : vector<1x128x128xbf16> to vector<128x128xbf16>
    %cst_25 = arith.constant dense<0.000000e+00> : vector<256x128xf32>
    %30 = tpu.matmul %27, %29, %cst_25 {dimension_numbers = #tpu.dot_dimension_numbers<[1], [0], [0], [1], [0, 0, 1, 1], [], []>} : vector<256x128xbf16>, vector<128x128xbf16>, vector<256x128xf32> -> vector<256x128xf32>
    %31 = arith.addf %21, %30 : vector<256x128xf32>
    %c9 = arith.constant 9 : index
    %c0_26 = arith.constant 0 : index
    %32 = vector.load %arg10[%c9, %c0_26] : memref<304x128xf32, #tpu.memory_space<vmem>>, vector<256x128xf32>
    %c2 = arith.constant 2 : index
    %c0_27 = arith.constant 0 : index
    %c0_28 = arith.constant 0 : index
    %33 = vector.load %arg2[%c2, %c0_27, %c0_28] : memref<9x256x1xf32, #tpu.memory_space<vmem>>, vector<1x256x1xf32>
    %34 = vector.shape_cast %33 : vector<1x256x1xf32> to vector<256x1xf32>
    %35 = vector.broadcast %34 : vector<256x1xf32> to vector<256x128xf32>
    %36 = arith.mulf %32, %35 : vector<256x128xf32>
    %37 = arith.truncf %36 : vector<256x128xf32> to vector<256x128xbf16>
    %c2_29 = arith.constant 2 : index
    %c0_30 = arith.constant 0 : index
    %c0_31 = arith.constant 0 : index
    %38 = vector.load %arg5[%c2_29, %c0_30, %c0_31] : memref<9x128x128xbf16, #tpu.memory_space<vmem>>, vector<1x128x128xbf16>
    %39 = vector.shape_cast %38 : vector<1x128x128xbf16> to vector<128x128xbf16>
    %cst_32 = arith.constant dense<0.000000e+00> : vector<256x128xf32>
    %40 = tpu.matmul %37, %39, %cst_32 {dimension_numbers = #tpu.dot_dimension_numbers<[1], [0], [0], [1], [0, 0, 1, 1], [], []>} : vector<256x128xbf16>, vector<128x128xbf16>, vector<256x128xf32> -> vector<256x128xf32>
    %41 = arith.addf %31, %40 : vector<256x128xf32>
    %c23 = arith.constant 23 : index
    %c0_33 = arith.constant 0 : index
    %42 = vector.load %arg10[%c23, %c0_33] : memref<304x128xf32, #tpu.memory_space<vmem>>, vector<256x128xf32>
    %c3 = arith.constant 3 : index
    %c0_34 = arith.constant 0 : index
    %c0_35 = arith.constant 0 : index
    %43 = vector.load %arg2[%c3, %c0_34, %c0_35] : memref<9x256x1xf32, #tpu.memory_space<vmem>>, vector<1x256x1xf32>
    %44 = vector.shape_cast %43 : vector<1x256x1xf32> to vector<256x1xf32>
    %45 = vector.broadcast %44 : vector<256x1xf32> to vector<256x128xf32>
    %46 = arith.mulf %42, %45 : vector<256x128xf32>
    %47 = arith.truncf %46 : vector<256x128xf32> to vector<256x128xbf16>
    %c3_36 = arith.constant 3 : index
    %c0_37 = arith.constant 0 : index
    %c0_38 = arith.constant 0 : index
    %48 = vector.load %arg5[%c3_36, %c0_37, %c0_38] : memref<9x128x128xbf16, #tpu.memory_space<vmem>>, vector<1x128x128xbf16>
    %49 = vector.shape_cast %48 : vector<1x128x128xbf16> to vector<128x128xbf16>
    %cst_39 = arith.constant dense<0.000000e+00> : vector<256x128xf32>
    %50 = tpu.matmul %47, %49, %cst_39 {dimension_numbers = #tpu.dot_dimension_numbers<[1], [0], [0], [1], [0, 0, 1, 1], [], []>} : vector<256x128xbf16>, vector<128x128xbf16>, vector<256x128xf32> -> vector<256x128xf32>
    %51 = arith.addf %41, %50 : vector<256x128xf32>
    %c24_40 = arith.constant 24 : index
    %c0_41 = arith.constant 0 : index
    %52 = vector.load %arg10[%c24_40, %c0_41] : memref<304x128xf32, #tpu.memory_space<vmem>>, vector<256x128xf32>
    %c4 = arith.constant 4 : index
    %c0_42 = arith.constant 0 : index
    %c0_43 = arith.constant 0 : index
    %53 = vector.load %arg2[%c4, %c0_42, %c0_43] : memref<9x256x1xf32, #tpu.memory_space<vmem>>, vector<1x256x1xf32>
    %54 = vector.shape_cast %53 : vector<1x256x1xf32> to vector<256x1xf32>
    %55 = vector.broadcast %54 : vector<256x1xf32> to vector<256x128xf32>
    %56 = arith.mulf %52, %55 : vector<256x128xf32>
    %57 = arith.truncf %56 : vector<256x128xf32> to vector<256x128xbf16>
    %c4_44 = arith.constant 4 : index
    %c0_45 = arith.constant 0 : index
    %c0_46 = arith.constant 0 : index
    %58 = vector.load %arg5[%c4_44, %c0_45, %c0_46] : memref<9x128x128xbf16, #tpu.memory_space<vmem>>, vector<1x128x128xbf16>
    %59 = vector.shape_cast %58 : vector<1x128x128xbf16> to vector<128x128xbf16>
    %cst_47 = arith.constant dense<0.000000e+00> : vector<256x128xf32>
    %60 = tpu.matmul %57, %59, %cst_47 {dimension_numbers = #tpu.dot_dimension_numbers<[1], [0], [0], [1], [0, 0, 1, 1], [], []>} : vector<256x128xbf16>, vector<128x128xbf16>, vector<256x128xf32> -> vector<256x128xf32>
    %61 = arith.addf %51, %60 : vector<256x128xf32>
    %c25 = arith.constant 25 : index
    %c0_48 = arith.constant 0 : index
    %62 = vector.load %arg10[%c25, %c0_48] : memref<304x128xf32, #tpu.memory_space<vmem>>, vector<256x128xf32>
    %c5 = arith.constant 5 : index
    %c0_49 = arith.constant 0 : index
    %c0_50 = arith.constant 0 : index
    %63 = vector.load %arg2[%c5, %c0_49, %c0_50] : memref<9x256x1xf32, #tpu.memory_space<vmem>>, vector<1x256x1xf32>
    %64 = vector.shape_cast %63 : vector<1x256x1xf32> to vector<256x1xf32>
    %65 = vector.broadcast %64 : vector<256x1xf32> to vector<256x128xf32>
    %66 = arith.mulf %62, %65 : vector<256x128xf32>
    %67 = arith.truncf %66 : vector<256x128xf32> to vector<256x128xbf16>
    %c5_51 = arith.constant 5 : index
    %c0_52 = arith.constant 0 : index
    %c0_53 = arith.constant 0 : index
    %68 = vector.load %arg5[%c5_51, %c0_52, %c0_53] : memref<9x128x128xbf16, #tpu.memory_space<vmem>>, vector<1x128x128xbf16>
    %69 = vector.shape_cast %68 : vector<1x128x128xbf16> to vector<128x128xbf16>
    %cst_54 = arith.constant dense<0.000000e+00> : vector<256x128xf32>
    %70 = tpu.matmul %67, %69, %cst_54 {dimension_numbers = #tpu.dot_dimension_numbers<[1], [0], [0], [1], [0, 0, 1, 1], [], []>} : vector<256x128xbf16>, vector<128x128xbf16>, vector<256x128xf32> -> vector<256x128xf32>
    %71 = arith.addf %61, %70 : vector<256x128xf32>
    %c39 = arith.constant 39 : index
    %c0_55 = arith.constant 0 : index
    %72 = vector.load %arg10[%c39, %c0_55] : memref<304x128xf32, #tpu.memory_space<vmem>>, vector<256x128xf32>
    %c6 = arith.constant 6 : index
    %c0_56 = arith.constant 0 : index
    %c0_57 = arith.constant 0 : index
    %73 = vector.load %arg2[%c6, %c0_56, %c0_57] : memref<9x256x1xf32, #tpu.memory_space<vmem>>, vector<1x256x1xf32>
    %74 = vector.shape_cast %73 : vector<1x256x1xf32> to vector<256x1xf32>
    %75 = vector.broadcast %74 : vector<256x1xf32> to vector<256x128xf32>
    %76 = arith.mulf %72, %75 : vector<256x128xf32>
    %77 = arith.truncf %76 : vector<256x128xf32> to vector<256x128xbf16>
    %c6_58 = arith.constant 6 : index
    %c0_59 = arith.constant 0 : index
    %c0_60 = arith.constant 0 : index
    %78 = vector.load %arg5[%c6_58, %c0_59, %c0_60] : memref<9x128x128xbf16, #tpu.memory_space<vmem>>, vector<1x128x128xbf16>
    %79 = vector.shape_cast %78 : vector<1x128x128xbf16> to vector<128x128xbf16>
    %cst_61 = arith.constant dense<0.000000e+00> : vector<256x128xf32>
    %80 = tpu.matmul %77, %79, %cst_61 {dimension_numbers = #tpu.dot_dimension_numbers<[1], [0], [0], [1], [0, 0, 1, 1], [], []>} : vector<256x128xbf16>, vector<128x128xbf16>, vector<256x128xf32> -> vector<256x128xf32>
    %81 = arith.addf %71, %80 : vector<256x128xf32>
    %c40 = arith.constant 40 : index
    %c0_62 = arith.constant 0 : index
    %82 = vector.load %arg10[%c40, %c0_62] : memref<304x128xf32, #tpu.memory_space<vmem>>, vector<256x128xf32>
    %c7_63 = arith.constant 7 : index
    %c0_64 = arith.constant 0 : index
    %c0_65 = arith.constant 0 : index
    %83 = vector.load %arg2[%c7_63, %c0_64, %c0_65] : memref<9x256x1xf32, #tpu.memory_space<vmem>>, vector<1x256x1xf32>
    %84 = vector.shape_cast %83 : vector<1x256x1xf32> to vector<256x1xf32>
    %85 = vector.broadcast %84 : vector<256x1xf32> to vector<256x128xf32>
    %86 = arith.mulf %82, %85 : vector<256x128xf32>
    %87 = arith.truncf %86 : vector<256x128xf32> to vector<256x128xbf16>
    %c7_66 = arith.constant 7 : index
    %c0_67 = arith.constant 0 : index
    %c0_68 = arith.constant 0 : index
    %88 = vector.load %arg5[%c7_66, %c0_67, %c0_68] : memref<9x128x128xbf16, #tpu.memory_space<vmem>>, vector<1x128x128xbf16>
    %89 = vector.shape_cast %88 : vector<1x128x128xbf16> to vector<128x128xbf16>
    %cst_69 = arith.constant dense<0.000000e+00> : vector<256x128xf32>
    %90 = tpu.matmul %87, %89, %cst_69 {dimension_numbers = #tpu.dot_dimension_numbers<[1], [0], [0], [1], [0, 0, 1, 1], [], []>} : vector<256x128xbf16>, vector<128x128xbf16>, vector<256x128xf32> -> vector<256x128xf32>
    %91 = arith.addf %81, %90 : vector<256x128xf32>
    %c41 = arith.constant 41 : index
    %c0_70 = arith.constant 0 : index
    %92 = vector.load %arg10[%c41, %c0_70] : memref<304x128xf32, #tpu.memory_space<vmem>>, vector<256x128xf32>
    %c8_71 = arith.constant 8 : index
    %c0_72 = arith.constant 0 : index
    %c0_73 = arith.constant 0 : index
    %93 = vector.load %arg2[%c8_71, %c0_72, %c0_73] : memref<9x256x1xf32, #tpu.memory_space<vmem>>, vector<1x256x1xf32>
    %94 = vector.shape_cast %93 : vector<1x256x1xf32> to vector<256x1xf32>
    %95 = vector.broadcast %94 : vector<256x1xf32> to vector<256x128xf32>
    %96 = arith.mulf %92, %95 : vector<256x128xf32>
    %97 = arith.truncf %96 : vector<256x128xf32> to vector<256x128xbf16>
    %c8_74 = arith.constant 8 : index
    %c0_75 = arith.constant 0 : index
    %c0_76 = arith.constant 0 : index
    %98 = vector.load %arg5[%c8_74, %c0_75, %c0_76] : memref<9x128x128xbf16, #tpu.memory_space<vmem>>, vector<1x128x128xbf16>
    %99 = vector.shape_cast %98 : vector<1x128x128xbf16> to vector<128x128xbf16>
    %cst_77 = arith.constant dense<0.000000e+00> : vector<256x128xf32>
    %100 = tpu.matmul %97, %99, %cst_77 {dimension_numbers = #tpu.dot_dimension_numbers<[1], [0], [0], [1], [0, 0, 1, 1], [], []>} : vector<256x128xbf16>, vector<128x128xbf16>, vector<256x128xf32> -> vector<256x128xf32>
    %101 = arith.addf %91, %100 : vector<256x128xf32>
    %c0_78 = arith.constant 0 : index
    %c0_79 = arith.constant 0 : index
    %102 = vector.load %arg6[%c0_78, %c0_79] : memref<1x128xf32, #tpu.memory_space<vmem>>, vector<1x128xf32>
    %103 = vector.broadcast %102 : vector<1x128xf32> to vector<256x128xf32>
    %104 = arith.addf %101, %103 : vector<256x128xf32>
    %cst_80 = arith.constant 0.000000e+00 : f32
    %105 = vector.broadcast %cst_80 : f32 to vector<256x128xf32>
    %106 = arith.maximumf %104, %105 : vector<256x128xf32>
    %107 = arith.truncf %106 : vector<256x128xf32> to vector<256x128xbf16>
    %c0_81 = arith.constant 0 : index
    %c0_82 = arith.constant 0 : index
    %108 = vector.load %arg7[%c0_81, %c0_82] : memref<128x128xbf16, #tpu.memory_space<vmem>>, vector<128x128xbf16>
    %cst_83 = arith.constant dense<0.000000e+00> : vector<256x128xf32>
    %109 = tpu.matmul %107, %108, %cst_83 {dimension_numbers = #tpu.dot_dimension_numbers<[1], [0], [0], [1], [0, 0, 1, 1], [], []>} : vector<256x128xbf16>, vector<128x128xbf16>, vector<256x128xf32> -> vector<256x128xf32>
    %c0_84 = arith.constant 0 : index
    %c0_85 = arith.constant 0 : index
    %110 = vector.load %arg8[%c0_84, %c0_85] : memref<1x128xf32, #tpu.memory_space<vmem>>, vector<1x128xf32>
    %111 = vector.broadcast %110 : vector<1x128xf32> to vector<256x128xf32>
    %112 = arith.addf %109, %111 : vector<256x128xf32>
    %113 = arith.extf %0 : vector<256x128xbf16> to vector<256x128xf32>
    %114 = arith.addf %112, %113 : vector<256x128xf32>
    %cst_86 = arith.constant 0.000000e+00 : f32
    %115 = vector.broadcast %cst_86 : f32 to vector<256x128xf32>
    %116 = arith.maximumf %114, %115 : vector<256x128xf32>
    %c0_87 = arith.constant 0 : index
    %c0_88 = arith.constant 0 : index
    %117 = vector.load %arg9[%c0_87, %c0_88] : memref<256x128xf32, #tpu.memory_space<vmem>>, vector<256x128xf32>
    tpu.vector_store %arg9[%c0_87, %c0_88], %116 {strides = array<i32>} : memref<256x128xf32, #tpu.memory_space<vmem>>, vector<256x128xf32>,
    return
  }
  func.func @transform_0(%arg0: i32) -> (i32, i32) {
    %c0_i32 = arith.constant 0 : i32
    %c0_i32_0 = arith.constant 0 : i32
    return %arg0, %c0_i32 : i32, i32
  }
  func.func @transform_1(%arg0: i32) -> (i32, i32, i32) {
    %c0_i32 = arith.constant 0 : i32
    %c0_i32_0 = arith.constant 0 : i32
    %c0_i32_1 = arith.constant 0 : i32
    %c0_i32_2 = arith.constant 0 : i32
    return %c0_i32, %c0_i32_0, %c0_i32_1 : i32, i32, i32
  }
  func.func @transform_2(%arg0: i32) -> (i32, i32) {
    %c0_i32 = arith.constant 0 : i32
    %c0_i32_0 = arith.constant 0 : i32
    %c0_i32_1 = arith.constant 0 : i32
    return %c0_i32, %c0_i32_0 : i32, i32
  }
  func.func @transform_3(%arg0: i32) -> (i32, i32) {
    %c0_i32 = arith.constant 0 : i32
    %c0_i32_0 = arith.constant 0 : i32
    %c0_i32_1 = arith.constant 0 : i32
    return %c0_i32, %c0_i32_0 : i32, i32
  }
  func.func @transform_4(%arg0: i32) -> (i32, i32, i32) {
    %c0_i32 = arith.constant 0 : i32
    %c0_i32_0 = arith.constant 0 : i32
    %c0_i32_1 = arith.constant 0 : i32
    %c0_i32_2 = arith.constant 0 : i32
    return %c0_i32, %c0_i32_0, %c0_i32_1 : i32, i32, i32
  }
  func.func @transform_5(%arg0: i32) -> (i32, i32) {
    %c0_i32 = arith.constant 0 : i32
    %c0_i32_0 = arith.constant 0 : i32
    %c0_i32_1 = arith.constant 0 : i32
    return %c0_i32, %c0_i32_0 : i32, i32
  }
  func.func @transform_6(%arg0: i32) -> (i32, i32) {
    %c0_i32 = arith.constant 0 : i32
    %c0_i32_0 = arith.constant 0 : i32
    %c0_i32_1 = arith.constant 0 : i32
    return %c0_i32, %c0_i32_0 : i32, i32
  }
  func.func @transform_7(%arg0: i32) -> (i32, i32) {
    %c0_i32 = arith.constant 0 : i32
    %c0_i32_0 = arith.constant 0 : i32
    %c0_i32_1 = arith.constant 0 : i32
    return %c0_i32, %c0_i32_0 : i32, i32
  }
  func.func @transform_8(%arg0: i32) -> (i32, i32) {
    %c0_i32 = arith.constant 0 : i32
    %c0_i32_0 = arith.constant 0 : i32
    return %arg0, %c0_i32 : i32, i32
  }
}

</mosaic_0001>

<bundles_post_ra>
// kernel: bottleneck_pc3_forward.1
= control target key start
LH: loop header
LB: loop body
LE: loop exit
PB: predicated region body
PF: predicated region fallthrough
CT: control target
= control target key end

     0   :  { %s6213_s27 = smov 0   ;;  %s9286_s0 = inlined_call_operand.vmem [shape: bf16[512,128], index: 0, kind: input, shape index: {}]   ;;  %s9287_s1 = inlined_call_operand.vmem [shape: f32[9,256,1], index: 1, kind: input, shape index: {}]   ;;  %s9288_s2 = inlined_call_operand.vmem [shape: bf16[128,128], index: 2, kind: input, shape index: {}]   ;;  %s9289_s3 = inlined_call_operand.vmem [shape: f32[1,128], index: 3, kind: input, shape index: {}]   ;;  %s9290_s4 = inlined_call_operand.vmem [shape: bf16[9,128,128], index: 4, kind: input, shape index: {}]   ;;  %s9291_s5 = inlined_call_operand.vmem [shape: f32[1,128], index: 5, kind: input, shape index: {}]   ;;  %s9292_s6 = inlined_call_operand.vmem [shape: bf16[128,128], index: 6, kind: input, shape index: {}]   ;;  %s9293_s7 = inlined_call_operand.vmem [shape: f32[1,128], index: 7, kind: input, shape index: {}]   ;;  %s9294_s8 = inlined_call_operand.vmem [shape: f32[512,128], index: 8, kind: output, shape index: {}]  }
   0x1 LB: > { %s5186_s28 = sadd.s32 4294967295, %s6164_s27   ;;  %p5190_p0 = scmp.ge.s32.totalorder %s6164_s27, 1  ;;  %s6164_s27 = sphi %s6213_s27, %s18_s27  }
   0x2   : > { %p263_p1 = scmp.lt.s32.totalorder %s6164_s27, 3 }
   0x4   : > { %p264_p2 = pnand %p5190_p0, %p263_p1 }
   0x6   : > { %267 = sbr.rel (%p264_p2) target bundleno = 1291 (0x50b), region = 52 }
   0xb   : > { %v732_v0 = vld [vmem:[%s9287_s1 + $0x20] sm:$0xff]  ;;  %v730_v1 = vld [vmem:[%s9287_s1 + $0x10] sm:$0xff]  ;;  %v6166_v3 = vmov 0   ;;  %v6020_v4 = vld [vmem:[%s9288_s2 + $0x38] sm:$0xff]  ;;  %s5191_s9 = sshll.u32 %s5186_s28, 5  ;;  %v6167_v52 = vmov 0.0  }
   0xc   : > { %v728_v2 = vld [vmem:[%s9287_s1] sm:$0xff]  ;;  %6137 = vset.pattern.permute.xlu2 %v6166_v3  ;;  %6136 = vset.pattern.permute.xlu1 %v6166_v3  ;;  %v6019_v5 = vld [vmem:[%s9288_s2 + $0x30] sm:$0xff]  ;;  %v733_v6 = vld [vmem:[%s9287_s1 + $0x28] sm:$0xff]  ;;  %p298_p3 = scmp.lt.s32.totalorder %s5191_s9, 63  ;;  %626 = vst [vmem:[#allocation2] sm:$0xff] %v6167_v52 }
   0xd   : > { %6135 = vset.pattern.permute.xlu0 %v6166_v3  ;;  %782 = vperm.xlu2 %6137, %v732_v0   ;;  %v731_v7 = vld [vmem:[%s9287_s1 + $0x18] sm:$0xff]  ;;  %v729_v8 = vld [vmem:[%s9287_s1 + $0x8] sm:$0xff]  ;;  %v6017_v10 = vld [vmem:[%s9288_s2 + $0x20] sm:$0xff]  ;;  %627 = vst [vmem:[#allocation2 + $0x8] sm:$0xff] %v6167_v52 }
   0xe   : > { %772 = vperm.xlu1 %6136, %v730_v1   ;;  %762 = vperm.xlu0 %6135, %v728_v2   ;;  %v6018_v9 = vld [vmem:[%s9288_s2 + $0x28] sm:$0xff]  ;;  %v736_v11 = vld [vmem:[%s9287_s1 + $0x40] sm:$0xff]  ;;  %v735_v12 = vld [vmem:[%s9287_s1 + $0x38] sm:$0xff]  ;;  %s9633_s9 = smov (!%p298_p3, %s5191_s9), 63  ;;  %628 = vst [vmem:[#allocation2 + $0x10] sm:$0xff] %v6167_v52 }
   0xf   : > { %505 = vmatpush.bf16.msra.mxu0 %v6020_v4  ;;  %6101 = vmatpush.bf16.msra.mxu3 %v6020_v4  ;;  %v734_v13 = vld [vmem:[%s9287_s1 + $0x30] sm:$0xff]  ;;  %v6016_v14 = vld [vmem:[%s9288_s2 + $0x18] sm:$0xff]  ;;  %v737_v18 = vld [vmem:[%s9287_s1 + $0x48] sm:$0xff]  ;;  %s5192_s25 = sshll.u32 %s9633_s9, 2  ;;  %661 = vst [vmem:[#allocation2 + $0x118] sm:$0xff] %v6167_v52  ;;  %s5194_s30 = sshll.u32 %s9633_s9, 3 }
  0x10   : > { %v6015_v15 = vld [vmem:[%s9288_s2 + $0x10] sm:$0xff]  ;;  %v739_v16 = vld [vmem:[%s9287_s1 + $0x58] sm:$0xff]  ;;  %v6014_v19 = vld [vmem:[%s9288_s2 + $0x8] sm:$0xff]  ;;  %s6289_s11 = scalar_lea.vmem %s9286_s0, %s5192_s25  ;;  %662 = vst [vmem:[#allocation2 + $0x120] sm:$0xff] %v6167_v52  ;;  %s9171_s13 = scalar_lea.vmem %s9294_s8, %s5194_s30 }
  0x11   : > { %v738_v17 = vld [vmem:[%s9287_s1 + $0x50] sm:$0xff]  ;;  %v6013_v20 = vld [vmem:[%s9288_s2] sm:$0xff]  ;;  %v741_v22 = vld [vmem:[%s9287_s1 + $0x68] sm:$0xff]  ;;  %663 = vst [vmem:[#allocation2 + $0x128] sm:$0xff] %v6167_v52 }
  0x12   : > { %v742_v21 = vld [vmem:[%s9287_s1 + $0x70] sm:$0xff]  ;;  %v740_v23 = vld [vmem:[%s9287_s1 + $0x60] sm:$0xff]  ;;  %v745_v26 = vld [vmem:[%s9287_s1 + $0x88] sm:$0xff] }
  0x13   : > { %506 = vmatpush.bf16.msra.mxu0 %v6019_v5  ;;  %6102 = vmatpush.bf16.msra.mxu3 %v6019_v5  ;;  %v5997_v24 = vld [vmem:[%s6289_s11] sm:$0xff]  ;;  %v743_v28 = vld [vmem:[%s9287_s1 + $0x78] sm:$0xff]  ;;  %v746_v31 = vld [vmem:[%s9287_s1 + $0x90] sm:$0xff] }
  0x14   : > { %v6009_v25 = vld [vmem:[%s6289_s11 + $0x60] sm:$0xff]  ;;  %v747_v30 = vld [vmem:[%s9287_s1 + $0x98] sm:$0xff]  ;;  %v5998_v32 = vld [vmem:[%s6289_s11 + $0x8] sm:$0xff] }
  0x15   : > { %787 = vperm.xlu2 %6137, %v733_v6   ;;  %v744_v27 = vld [vmem:[%s9287_s1 + $0x80] sm:$0xff]  ;;  %v6010_v33 = vld [vmem:[%s6289_s11 + $0x68] sm:$0xff]  ;;  %v751_v34 = vld [vmem:[%s9287_s1 + $0xb8] sm:$0xff] }
  0x16   : > { %777 = vperm.xlu1 %6136, %v731_v7   ;;  %767 = vperm.xlu0 %6135, %v729_v8   ;;  %v748_v29 = vld [vmem:[%s9287_s1 + $0xa0] sm:$0xff]  ;;  %v750_v35 = vld [vmem:[%s9287_s1 + $0xb0] sm:$0xff]  ;;  %v749_v36 = vld [vmem:[%s9287_s1 + $0xa8] sm:$0xff] }
  0x17   : > { %507 = vmatpush.bf16.msra.mxu0 %v6018_v9  ;;  %6103 = vmatpush.bf16.msra.mxu3 %v6018_v9  ;;  %v754_v37 = vld [vmem:[%s9287_s1 + $0xd0] sm:$0xff]  ;;  %v753_v38 = vld [vmem:[%s9287_s1 + $0xc8] sm:$0xff]  ;;  %v752_v39 = vld [vmem:[%s9287_s1 + $0xc0] sm:$0xff] }
  0x18   : > { %v5999_v40 = vld [vmem:[%s6289_s11 + $0x10] sm:$0xff]  ;;  %v757_v42 = vld [vmem:[%s9287_s1 + $0xe8] sm:$0xff]  ;;  %v756_v43 = vld [vmem:[%s9287_s1 + $0xe0] sm:$0xff] }
  0x19   : > { %v6011_v41 = vld [vmem:[%s6289_s11 + $0x70] sm:$0xff]  ;;  %v755_v44 = vld [vmem:[%s9287_s1 + $0xd8] sm:$0xff]  ;;  %v5291_v46 = vld [vmem:[%s9287_s1 + $0x100] sm:$0xff] }
  0x1a   : > { %v6354_v45 = vld [vmem:[%s9290_s4 + $0x38] sm:$0xff]  ;;  %v6363_v47 = vld [vmem:[%s9290_s4 + $0x30] sm:$0xff]  ;;  %v6376_v51 = vld [vmem:[%s9290_s4 + $0x28] sm:$0xff] }
  0x1b   : > { %508 = vmatpush.bf16.msra.mxu0 %v6017_v10  ;;  %6104 = vmatpush.bf16.msra.mxu3 %v6017_v10  ;;  %v759_v48 = vld [vmem:[%s9287_s1 + $0xf8] sm:$0xff]  ;;  %v758_v49 = vld [vmem:[%s9287_s1 + $0xf0] sm:$0xff]  ;;  %v6385_v54 = vld [vmem:[%s9290_s4 + $0x20] sm:$0xff] }
  0x1c   : > { %1459 = vmatpush.bf16.msra.mxu2 %v6354_v45  ;;  %v6000_v50 = vld [vmem:[%s6289_s11 + $0x18] sm:$0xff]  ;;  %v5293_v55 = vld [vmem:[%s9287_s1 + $0x110] sm:$0xff]  ;;  %v5292_v56 = vld [vmem:[%s9287_s1 + $0x108] sm:$0xff] }
  0x1d   : > { %802 = vperm.xlu2 %6137, %v736_v11   ;;  %v5294_v53 = vld [vmem:[%s9287_s1 + $0x118] sm:$0xff]  ;;  %v5297_v59 = vld [vmem:[%s9287_s1 + $0x130] sm:$0xff]  ;;  %v5296_v61 = vld [vmem:[%s9287_s1 + $0x128] sm:$0xff] }
  0x1e   : > { %797 = vperm.xlu1 %6136, %v735_v12   ;;  %792 = vperm.xlu0 %6135, %v734_v13   ;;  %v6397_v57 = vld [vmem:[%s9290_s4 + $0x18] sm:$0xff]  ;;  %v6408_v60 = vld [vmem:[%s9290_s4 + $0x10] sm:$0xff]  ;;  %v5295_v62 = vld [vmem:[%s9287_s1 + $0x120] sm:$0xff] }
  0x1f   : > { %509 = vmatpush.bf16.msra.mxu0 %v6016_v14  ;;  %6105 = vmatpush.bf16.msra.mxu3 %v6016_v14  ;;  %v6001_v63 = vld [vmem:[%s6289_s11 + $0x20] sm:$0xff]  ;;  %v6421_v0 = vld [vmem:[%s9290_s4 + $0x8] sm:$0xff]  ;;  %v5298_v5 = vld [vmem:[%s9287_s1 + $0x138] sm:$0xff] }
  0x20   : > { %1460 = vmatpush.bf16.msra.mxu2 %v6363_v47  ;;  %v5300_v2 = vld [vmem:[%s9287_s1 + $0x148] sm:$0xff]  ;;  %v6432_v3 = vld [vmem:[%s9290_s4] sm:$0xff]  ;;  %v5302_v8 = vld [vmem:[%s9287_s1 + $0x158] sm:$0xff] }
  0x21   : > { %v5299_v4 = vld [vmem:[%s9287_s1 + $0x140] sm:$0xff]  ;;  %v5301_v9 = vld [vmem:[%s9287_s1 + $0x150] sm:$0xff]  ;;  %v6002_v10 = vld [vmem:[%s6289_s11 + $0x28] sm:$0xff] }
  0x22   : > { %v5303_v7 = vld [vmem:[%s9287_s1 + $0x160] sm:$0xff]  ;;  %v5306_v14 = vld [vmem:[%s9287_s1 + $0x178] sm:$0xff]  ;;  %v5316_v52 = vld [vmem:[%s9287_s1 + $0x1c8] sm:$0xff] }
  0x23   : > { %510 = vmatpush.bf16.msra.mxu0 %v6015_v15  ;;  %6106 = vmatpush.bf16.msra.mxu3 %v6015_v15  ;;  %v5305_v15 = vld [vmem:[%s9287_s1 + $0x170] sm:$0xff] }
  0x24   : > { %1461 = vmatpush.bf16.msra.mxu2 %v6376_v51 }
  0x25   : > { %817 = vperm.xlu2 %6137, %v739_v16   ;;  %v5304_v16 = vld [vmem:[%s9287_s1 + $0x168] sm:$0xff] }
  0x26   : > { %812 = vperm.xlu1 %6136, %v738_v17   ;;  %807 = vperm.xlu0 %6135, %v737_v18   ;;  %v696_v17 = vld [vmem:[#allocation2 + $0x7] sm:$0xff]  ;;  %v697_v18 = vld [vmem:[#allocation2 + $0xf] sm:$0xff] }
  0x27   : > { %511 = vmatpush.bf16.msra.mxu0 %v6014_v19  ;;  %6107 = vmatpush.bf16.msra.mxu3 %v6014_v19 }
  0x28   : > { %1462 = vmatpush.bf16.msra.mxu2 %v6385_v54 }
  0x2b   : > { %512 = vmatpush.bf16.msra.mxu0 %v6013_v20  ;;  %6108 = vmatpush.bf16.msra.mxu3 %v6013_v20 }
  0x2c   : > { %1463 = vmatpush.bf16.msra.mxu2 %v6397_v57 }
  0x2d   : > { %832 = vperm.xlu2 %6137, %v742_v21  }
  0x2e   : > { %827 = vperm.xlu1 %6136, %v741_v22   ;;  %822 = vperm.xlu0 %6135, %v740_v23  }
  0x2f   : > { %513 = vmatmul.bf16.vlgmr.msra.gmra.mxu0 %v5997_v24  ;;  %573 = vmatmul.bf16.vlgmr.msra.gmra.mxu3 %v6009_v25  ;;  %v5309_v24 = vld [vmem:[%s9287_s1 + $0x190] sm:$0xff]  ;;  %v5308_v25 = vld [vmem:[%s9287_s1 + $0x188] sm:$0xff] }
  0x30   : > { %1464 = vmatpush.bf16.msra.mxu2 %v6408_v60 }
  0x34   : > { %1465 = vmatpush.bf16.msra.mxu2 %v6421_v0 }
  0x35   : > { %847 = vperm.xlu2 %6137, %v745_v26   ;;  %v5307_v26 = vld [vmem:[%s9287_s1 + $0x180] sm:$0xff] }
  0x36   : > { %842 = vperm.xlu1 %6136, %v744_v27   ;;  %837 = vperm.xlu0 %6135, %v743_v28   ;;  %v6003_v27 = vld [vmem:[%s6289_s11 + $0x30] sm:$0xff] }
  0x38   : > { %1466 = vmatpush.bf16.msra.mxu2 %v6432_v3 }
  0x3d   : > { %862 = vperm.xlu2 %6137, %v748_v29  }
  0x3e   : > { %857 = vperm.xlu1 %6136, %v747_v30   ;;  %852 = vperm.xlu0 %6135, %v746_v31  }
  0x3f   : > { %518 = vmatmul.bf16.gmra.mxu0 %v5998_v32  ;;  %578 = vmatmul.bf16.gmra.mxu3 %v6010_v33  ;;  %v5312_v32 = vld [vmem:[%s9287_s1 + $0x1a8] sm:$0xff]  ;;  %v5311_v33 = vld [vmem:[%s9287_s1 + $0x1a0] sm:$0xff] }
  0x45   : > { %877 = vperm.xlu2 %6137, %v751_v34   ;;  %v5310_v34 = vld [vmem:[%s9287_s1 + $0x198] sm:$0xff] }
  0x46   : > { %872 = vperm.xlu1 %6136, %v750_v35   ;;  %867 = vperm.xlu0 %6135, %v749_v36  }
  0x4d   : > { %892 = vperm.xlu2 %6137, %v754_v37  }
  0x4e   : > { %887 = vperm.xlu1 %6136, %v753_v38   ;;  %882 = vperm.xlu0 %6135, %v752_v39   ;;  %v5315_v38 = vld [vmem:[%s9287_s1 + $0x1c0] sm:$0xff]  ;;  %v5314_v39 = vld [vmem:[%s9287_s1 + $0x1b8] sm:$0xff] }
  0x4f   : > { %523 = vmatmul.bf16.gmra.mxu0 %v5999_v40  ;;  %583 = vmatmul.bf16.gmra.mxu3 %v6011_v41  ;;  %v5313_v40 = vld [vmem:[%s9287_s1 + $0x1b0] sm:$0xff]  ;;  %v6004_v41 = vld [vmem:[%s6289_s11 + $0x38] sm:$0xff] }
  0x55   : > { %907 = vperm.xlu2 %6137, %v757_v42   ;;  %v6036_v42 = vld [vmem:[%s9290_s4 + $0x78] sm:$0xff] }
  0x56   : > { %902 = vperm.xlu1 %6136, %v756_v43   ;;  %897 = vperm.xlu0 %6135, %v755_v44  }
  0x57   : > { %1322 = vmatpush.bf16.msra.mxu1 %v6036_v42  ;;  %6109 = vmatpush.bf16.msrb.mxu3 %v6036_v42 }
  0x5d   : > { %1051 = vperm.xlu2 %6137, %v5291_v46  }
  0x5e   : > { %917 = vperm.xlu1 %6136, %v759_v48   ;;  %912 = vperm.xlu0 %6135, %v758_v49   ;;  %v5318_v48 = vld [vmem:[%s9287_s1 + $0x1d8] sm:$0xff]  ;;  %v6035_v49 = vld [vmem:[%s9290_s4 + $0x70] sm:$0xff] }
  0x5f   : > { %528 = vmatmul.bf16.gmra.mxu0 %v6000_v50  ;;  %v5317_v50 = vld [vmem:[%s9287_s1 + $0x1d0] sm:$0xff]  ;;  %1323 = vmatpush.bf16.msra.mxu1 %v6035_v49 }
  0x60   : > { %6110 = vmatpush.bf16.msrb.mxu3 %v6035_v49  ;;  %v5405_v49 = vld [vmem:[%s9287_s1 + $0x210] sm:$0xff] }
  0x65   : > { %1066 = vperm.xlu2 %6137, %v5294_v53   ;;  %v6034_v53 = vld [vmem:[%s9290_s4 + $0x68] sm:$0xff] }
  0x66   : > { %1061 = vperm.xlu1 %6136, %v5293_v55   ;;  %1056 = vperm.xlu0 %6135, %v5292_v56  }
  0x67   : > { %v6399_v58 = vpop.permute.xlu2 %782  ;;  %1324 = vmatpush.bf16.msra.mxu1 %v6034_v53  ;;  %6111 = vmatpush.bf16.msrb.mxu3 %v6034_v53 }
  0x6d   : > { %1081 = vperm.xlu2 %6137, %v5297_v59  }
  0x6e   : > { %1076 = vperm.xlu1 %6136, %v5296_v61   ;;  %1071 = vperm.xlu0 %6135, %v5295_v62   ;;  %v6544_v61 = vld [vmem:[%s9289_s3] ss:$0 sm:$0xff]  ;;  %v5321_v62 = vld [vmem:[%s9287_s1 + $0x1f0] sm:$0xff] }
  0x6f   : > { %533 = vmatmul.bf16.gmra.mxu0 %v6001_v63  ;;  %v6423_v1 = vpop.permute.xlu2 %787  ;;  %v6033_v63 = vld [vmem:[%s9290_s4 + $0x60] sm:$0xff] }
  0x70   : > { %1325 = vmatpush.bf16.msra.mxu1 %v6033_v63  ;;  %6112 = vmatpush.bf16.msrb.mxu3 %v6033_v63 }
  0x75   : > { %1096 = vperm.xlu2 %6137, %v5300_v2   ;;  %v5320_v2 = vld [vmem:[%s9287_s1 + $0x1e8] sm:$0xff] }
  0x76   : > { %1091 = vperm.xlu1 %6136, %v5299_v4   ;;  %1086 = vperm.xlu0 %6135, %v5298_v5   ;;  %v5319_v4 = vld [vmem:[%s9287_s1 + $0x1e0] sm:$0xff] }
  0x77   : > { %v6441_v6 = vpop.permute.xlu2 %802  ;;  %v6005_v5 = vld [vmem:[%s6289_s11 + $0x40] sm:$0xff] }
  0x7d   : > { %1111 = vperm.xlu2 %6137, %v5303_v7  }
  0x7e   : > { %1106 = vperm.xlu1 %6136, %v5302_v8   ;;  %1101 = vperm.xlu0 %6135, %v5301_v9   ;;  %v6032_v9 = vld [vmem:[%s9290_s4 + $0x58] sm:$0xff] }
  0x7f   : > { %538 = vmatmul.bf16.gmra.mxu0 %v6002_v10  ;;  %v6453_v11 = vpop.permute.xlu2 %817  ;;  %1326 = vmatpush.bf16.msra.mxu1 %v6032_v9 }
  0x80   : > { %v6455_v12 = vpop.permute.xlu1 %772  ;;  %v763_v13 = vpop.permute.xlu0 %762  ;;  %6113 = vmatpush.bf16.msrb.mxu3 %v6032_v9 }
  0x81   : > { %v920_v19 = vmul.f32 %v763_v13, %v696_v17 }
  0x85   : > { %1126 = vperm.xlu2 %6137, %v5306_v14  }
  0x86   : > { %1121 = vperm.xlu1 %6136, %v5305_v15   ;;  %1116 = vperm.xlu0 %6135, %v5304_v16   ;;  %v6012_v16 = vld [vmem:[%s6289_s11 + $0x78] sm:$0xff] }
  0x87   : > { %v6466_v20 = vpop.permute.xlu2 %832  ;;  %588 = vmatmul.bf16.gmra.mxu3 %v6012_v16 }
  0x88   : > { %v6468_v21 = vpop.permute.xlu1 %777  ;;  %v768_v22 = vpop.permute.xlu0 %767 }
  0x89   : > { %v921_v23 = vmul.f32 %v768_v22, %v697_v18  ;;  %v5404_v18 = vld [vmem:[%s9287_s1 + $0x208] sm:$0xff] }
  0x8b   : > { %v952_v28 = vpack.c.bf16 %v921_v23, %v920_v19  ;;  %v6031_v19 = vld [vmem:[%s9290_s4 + $0x50] sm:$0xff]  ;;  %v5403_v23 = vld [vmem:[%s9287_s1 + $0x200] sm:$0xff] }
  0x8c   : > { %1327 = vmatpush.bf16.msra.mxu1 %v6031_v19  ;;  %6114 = vmatpush.bf16.msrb.mxu3 %v6031_v19 }
  0x8d   : > { %1141 = vperm.xlu2 %6137, %v5309_v24   ;;  %1467 = vmatmul.bf16.vlgmr.msra.gmra.mxu2 %v952_v28  ;;  %v5322_v24 = vld [vmem:[%s9287_s1 + $0x1f8] sm:$0xff]  ;;  %v6030_v28 = vld [vmem:[%s9290_s4 + $0x48] sm:$0xff] }
  0x8e   : > { %1136 = vperm.xlu1 %6136, %v5308_v25   ;;  %1131 = vperm.xlu0 %6135, %v5307_v26  }
  0x8f   : > { %543 = vmatmul.bf16.gmra.mxu0 %v6003_v27  ;;  %v6480_v29 = vpop.permute.xlu2 %847 }
  0x90   : > { %v6482_v30 = vpop.permute.xlu1 %797  ;;  %v6484_v31 = vpop.permute.xlu0 %792  ;;  %1328 = vmatpush.bf16.msra.mxu1 %v6030_v28  ;;  %6115 = vmatpush.bf16.msrb.mxu3 %v6030_v28 }
  0x95   : > { %1156 = vperm.xlu2 %6137, %v5312_v32  }
  0x96   : > { %1151 = vperm.xlu1 %6136, %v5311_v33   ;;  %1146 = vperm.xlu0 %6135, %v5310_v34  }
  0x97   : > { %v6495_v35 = vpop.permute.xlu2 %862 }
  0x98   : > { %v6497_v36 = vpop.permute.xlu1 %812  ;;  %v6499_v37 = vpop.permute.xlu0 %807 }
  0x9d   : > { %1171 = vperm.xlu2 %6137, %v5315_v38  }
  0x9e   : > { %1166 = vperm.xlu1 %6136, %v5314_v39   ;;  %1161 = vperm.xlu0 %6135, %v5313_v40   ;;  %v5407_v40 = vld [vmem:[%s9287_s1 + $0x220] sm:$0xff] }
  0x9f   : > { %548 = vmatmul.bf16.gmra.mxu0 %v6004_v41  ;;  %v6514_v43 = vpop.permute.xlu2 %877  ;;  %v6029_v41 = vld [vmem:[%s9290_s4 + $0x40] sm:$0xff] }
  0xa0   : > { %v6516_v44 = vpop.permute.xlu1 %827  ;;  %v6518_v46 = vpop.permute.xlu0 %822  ;;  %1329 = vmatpush.bf16.msra.mxu1 %v6029_v41  ;;  %6116 = vmatpush.bf16.msrb.mxu3 %v6029_v41 }
  0xa4   : > { %6117 = vmatpush.bf16.msra.mxu3 %v6354_v45 }
  0xa5   : > { %1186 = vperm.xlu2 %6137, %v5318_v48   ;;  %v5406_v48 = vld [vmem:[%s9287_s1 + $0x218] sm:$0xff] }
  0xa6   : > { %1181 = vperm.xlu1 %6136, %v5317_v50   ;;  %1176 = vperm.xlu0 %6135, %v5316_v52   ;;  %v6006_v50 = vld [vmem:[%s6289_s11 + $0x48] sm:$0xff] }
  0xa7   : > { %v6535_v55 = vpop.permute.xlu2 %892 }
  0xa8   : > { %v6537_v56 = vpop.permute.xlu1 %842  ;;  %v6539_v59 = vpop.permute.xlu0 %837  ;;  %6118 = vmatpush.bf16.msra.mxu3 %v6363_v47 }
  0xac   : > { %v514_v7 = vpop.f32.mrf.mxu0  ;;  %6119 = vmatpush.bf16.msra.mxu3 %v6376_v51  ;;  %v5411_v51 = vld [vmem:[%s9287_s1 + $0x240] sm:$0xff] }
  0xad   : > { %v6560_v8 = vadd.f32 %v6544_v61, %v514_v7  ;;  %1201 = vperm.xlu2 %6137, %v5321_v62  }
  0xae   : > { %1196 = vperm.xlu1 %6136, %v5320_v2   ;;  %1191 = vperm.xlu0 %6135, %v5319_v4  }
  0xaf   : > { %v594_v10 = vmax.f32 %v6560_v8, 0.0  ;;  %553 = vmatmul.bf16.gmra.mxu0 %v6005_v5  ;;  %v6566_v13 = vpop.permute.xlu2 %907  ;;  %v5425_v8 = vld [vmem:[%s9287_s1 + $0x2b0] sm:$0xff] }
  0xb0   : > { %v6568_v14 = vpop.permute.xlu1 %857  ;;  %v6570_v15 = vpop.permute.xlu0 %852  ;;  %6120 = vmatpush.bf16.msra.mxu3 %v6385_v54 }
  0xb1   : > { %664 = vst [vmem:[#allocation2 + $0x18] sm:$0xff] %v594_v10 }
  0xb2   : > { %v574_v17 = vpop.f32.mrf.mxu3 }
  0xb3   : > { %v6582_v22 = vadd.f32 %v6544_v61, %v574_v17 }
  0xb4   : > { %v516_v25 = vpop.f32.mrf.mxu0  ;;  %6121 = vmatpush.bf16.msra.mxu3 %v6397_v57 }
  0xb5   : > { %v9299_v26 = vmax.f32 %v6582_v22, 0.0  ;;  %v6592_v27 = vadd.f32 %v6544_v61, %v516_v25  ;;  %1620 = vperm.xlu2 %6137, %v5404_v18   ;;  %v5410_v18 = vld [vmem:[%s9287_s1 + $0x238] sm:$0xff] }
  0xb6   : > { %1615 = vperm.xlu1 %6136, %v5403_v23   ;;  %1206 = vperm.xlu0 %6135, %v5322_v24   ;;  %v5409_v24 = vld [vmem:[%s9287_s1 + $0x230] sm:$0xff] }
  0xb7   : > { %688 = vst [vmem:[#allocation2 + $0xd8] sm:$0xff] %v9299_v26  ;;  %v595_v32 = vmax.f32 %v6592_v27, 0.0  ;;  %v6600_v33 = vpop.permute.xlu2 %1051 }
  0xb8   : > { %v6602_v34 = vpop.permute.xlu1 %872  ;;  %v6604_v38 = vpop.permute.xlu0 %867  ;;  %v698_v63 = vld [vmem:[#allocation2 + $0x17] sm:$0xff]  ;;  %6122 = vmatpush.bf16.msra.mxu3 %v6408_v60 }
  0xb9   : > { %665 = vst [vmem:[#allocation2 + $0x20] sm:$0xff] %v595_v32  ;;  %v922_v45 = vmul.f32 %v6455_v12, %v698_v63  ;;  %v5408_v12 = vld [vmem:[%s9287_s1 + $0x228] sm:$0xff]  ;;  %v6007_v63 = vld [vmem:[%s6289_s11 + $0x50] sm:$0xff] }
  0xba   : > { %v576_v39 = vpop.f32.mrf.mxu3 }
  0xbb   : > { %v6615_v42 = vadd.f32 %v6544_v61, %v576_v39 }
  0xbc   : > { %v519_v52 = vpop.f32.mrf.mxu0  ;;  %6123 = vmatpush.bf16.msra.mxu3 %v6421_v0  ;;  %v5418_v0 = vld [vmem:[%s9287_s1 + $0x278] sm:$0xff] }
  0xbd   : > { %v9298_v53 = vmax.f32 %v6615_v42, 0.0  ;;  %v6626_v62 = vadd.f32 %v6544_v61, %v519_v52  ;;  %1635 = vperm.xlu2 %6137, %v5407_v40   ;;  %v5412_v52 = vld [vmem:[%s9287_s1 + $0x248] sm:$0xff] }
  0xbe   : > { %1630 = vperm.xlu1 %6136, %v5406_v48   ;;  %1625 = vperm.xlu0 %6135, %v5405_v49   ;;  %v5413_v49 = vld [vmem:[%s9287_s1 + $0x250] sm:$0xff] }
  0xbf   : > { %689 = vst [vmem:[#allocation2 + $0xe0] sm:$0xff] %v9298_v53  ;;  %v596_v2 = vmax.f32 %v6626_v62, 0.0  ;;  %558 = vmatmul.bf16.gmra.mxu0 %v6006_v50  ;;  %v6632_v4 = vpop.permute.xlu2 %1066  ;;  %v5429_v62 = vld [vmem:[%s9287_s1 + $0x2d0] sm:$0xff] }
  0xc0   : > { %v6634_v5 = vpop.permute.xlu1 %887  ;;  %v6636_v7 = vpop.permute.xlu0 %882  ;;  %v699_v9 = vld [vmem:[#allocation2 + $0x1f] sm:$0xff]  ;;  %6124 = vmatpush.bf16.msra.mxu3 %v6432_v3 }
  0xc1   : > { %666 = vst [vmem:[#allocation2 + $0x28] sm:$0xff] %v596_v2  ;;  %v923_v16 = vmul.f32 %v6468_v21, %v699_v9 }
  0xc2   : > { %v579_v17 = vpop.f32.mrf.mxu3 }
  0xc3   : > { %v6647_v19 = vadd.f32 %v6544_v61, %v579_v17  ;;  %v953_v23 = vpack.c.bf16 %v923_v16, %v922_v45 }
  0xc4   : > { %v521_v21 = vpop.f32.mrf.mxu0 }
  0xc5   : > { %v9295_v47 = vmax.f32 %v6647_v19, 0.0  ;;  %v6657_v25 = vadd.f32 %v6544_v61, %v521_v21  ;;  %1472 = vmatmul.bf16.gmra.mxu2 %v953_v23  ;;  %1650 = vperm.xlu2 %6137, %v5410_v18  }
  0xc6   : > { %1645 = vperm.xlu1 %6136, %v5409_v24   ;;  %1640 = vperm.xlu0 %6135, %v5408_v12  }
  0xc7   : > { %690 = vst [vmem:[#allocation2 + $0xe8] sm:$0xff] %v9295_v47  ;;  %v597_v28 = vmax.f32 %v6657_v25, 0.0  ;;  %v6662_v39 = vpop.permute.xlu2 %1081  ;;  %v1209_v47 = vmul.f32 0.0, %v6600_v33  ;;  %v5417_v33 = vld [vmem:[%s9287_s1 + $0x270] sm:$0xff] }
  0xc8   : > { %v6665_v40 = vpop.permute.xlu1 %902  ;;  %v6667_v41 = vpop.permute.xlu0 %897  ;;  %v6689_v17 = vld [vmem:[#allocation2 + $0x27] sm:$0xff] }
  0xc9   : > { %9340 = vst [vmem:[#allocation3_spill] sm:$0xff] %v6665_v40  ;;  %v924_v21 = vmul.f32 %v6399_v58, %v6689_v17 }
  0xca   : > { %667 = vst [vmem:[#allocation2 + $0x30] sm:$0xff] %v597_v28  ;;  %v581_v48 = vpop.f32.mrf.mxu3 }
  0xcb   : > { %v6675_v50 = vadd.f32 %v6544_v61, %v581_v48 }
  0xcc   : > { %v524_v9 = vpop.f32.mrf.mxu0 }
  0xcd   : > { %v9297_v45 = vmax.f32 %v6675_v50, 0.0  ;;  %v6687_v16 = vadd.f32 %v6544_v61, %v524_v9  ;;  %1665 = vperm.xlu2 %6137, %v5413_v49   ;;  %v5414_v9 = vld [vmem:[%s9287_s1 + $0x258] sm:$0xff] }
  0xce   : > { %1660 = vperm.xlu1 %6136, %v5412_v52   ;;  %1655 = vperm.xlu0 %6135, %v5411_v51   ;;  %v5416_v52 = vld [vmem:[%s9287_s1 + $0x268] sm:$0xff] }
  0xcf   : > { %691 = vst [vmem:[#allocation2 + $0xf0] sm:$0xff] %v9297_v45  ;;  %v9300_v18 = vmax.f32 %v6687_v16, 0.0  ;;  %563 = vmatmul.bf16.gmra.mxu0 %v6007_v63  ;;  %v6694_v23 = vpop.permute.xlu2 %1096  ;;  %v5415_v63 = vld [vmem:[%s9287_s1 + $0x260] sm:$0xff] }
  0xd0   : > { %v6697_v54 = vpop.permute.xlu1 %917  ;;  %v6699_v24 = vpop.permute.xlu0 %912 }
  0xd1   : > { %9341 = vst [vmem:[#allocation4_spill] sm:$0xff] %v6697_v54  ;;  %v701_v12 = vld [vmem:[#allocation2 + $0x2f] sm:$0xff] }
  0xd2   : > { %9342 = vst [vmem:[#allocation5_spill] sm:$0xff] %v6699_v24  ;;  %v925_v48 = vmul.f32 %v6423_v1, %v701_v12  ;;  %v584_v49 = vpop.f32.mrf.mxu3 }
  0xd3   : > { %668 = vst [vmem:[#allocation2 + $0x38] sm:$0xff] %v9300_v18  ;;  %v6710_v57 = vadd.f32 %v6544_v61, %v584_v49 }
  0xd4   : > { %v954_v51 = vpack.c.bf16 %v925_v48, %v924_v21  ;;  %v526_v58 = vpop.f32.mrf.mxu0 }
  0xd5   : > { %v9296_v1 = vmax.f32 %v6710_v57, 0.0  ;;  %v6721_v12 = vadd.f32 %v6544_v61, %v526_v58  ;;  %1680 = vperm.xlu2 %6137, %v5416_v52  }
  0xd6   : > { %1477 = vmatmul.bf16.gmra.mxu2 %v954_v51  ;;  %1675 = vperm.xlu1 %6136, %v5415_v63   ;;  %v5419_v63 = vld [vmem:[%s9287_s1 + $0x280] sm:$0xff] }
  0xd7   : > { %1670 = vperm.xlu0 %6135, %v5414_v9   ;;  %692 = vst [vmem:[#allocation2 + $0xf8] sm:$0xff] %v9296_v1  ;;  %v9304_v21 = vmax.f32 %v6721_v12, 0.0  ;;  %v6726_v48 = vpop.permute.xlu2 %1111  ;;  %v6008_v1 = vld [vmem:[%s6289_s11 + $0x58] sm:$0xff] }
  0xd8   : > { %v1062_v60 = vpop.permute.xlu1 %1061  ;;  %v1057_v49 = vpop.permute.xlu0 %1056 }
  0xd9   : > { %669 = vst [vmem:[#allocation2 + $0x40] sm:$0xff] %v9304_v21  ;;  %v1210_v52 = vmul.f32 0.0, %v1057_v49 }
  0xda   : > { %v586_v51 = vpop.f32.mrf.mxu3 }
  0xdb   : > { %v6736_v9 = vadd.f32 %v6544_v61, %v586_v51  ;;  %v1241_v58 = vpack.c.bf16 %v1210_v52, %v1209_v47  ;;  %v702_v47 = vld [vmem:[#allocation2 + $0x37] sm:$0xff] }
  0xdc   : > { %v529_v49 = vpop.f32.mrf.mxu0 }
  0xdd   : > { %v9301_v45 = vmax.f32 %v6736_v9, 0.0  ;;  %v6748_v53 = vadd.f32 %v6544_v61, %v529_v49  ;;  %1330 = vmatmul.bf16.vlgmr.msra.gmra.mxu1 %v1241_v58  ;;  %1695 = vperm.xlu2 %6137, %v5419_v63   ;;  %v926_v63 = vmul.f32 %v6484_v31, %v702_v47  ;;  %v5420_v49 = vld [vmem:[%s9287_s1 + $0x288] sm:$0xff] }
  0xde   : > { %1690 = vperm.xlu1 %6136, %v5418_v0   ;;  %v5422_v0 = vld [vmem:[%s9287_s1 + $0x298] sm:$0xff] }
  0xdf   : > { %1685 = vperm.xlu0 %6135, %v5417_v33   ;;  %693 = vst [vmem:[#allocation2 + $0x100] sm:$0xff] %v9301_v45  ;;  %v9302_v52 = vmax.f32 %v6748_v53, 0.0  ;;  %568 = vmatmul.bf16.gmra.mxu0 %v6008_v1  ;;  %v6753_v51 = vpop.permute.xlu2 %1126  ;;  %v5421_v1 = vld [vmem:[%s9287_s1 + $0x290] sm:$0xff] }
  0xe0   : > { %v1077_v3 = vpop.permute.xlu1 %1076  ;;  %v1072_v26 = vpop.permute.xlu0 %1071  ;;  %v6755_v18 = vld [vmem:[#allocation2 + $0x3f] sm:$0xff] }
  0xe1   : > { %670 = vst [vmem:[#allocation2 + $0x48] sm:$0xff] %v9302_v52  ;;  %v927_v58 = vmul.f32 %v6482_v30, %v6755_v18  ;;  %v1211_v30 = vmul.f32 %v1062_v60, %v594_v10  ;;  %v5424_v60 = vld [vmem:[%s9287_s1 + $0x2a8] sm:$0xff] }
  0xe3   : > { %v955_v33 = vpack.c.bf16 %v927_v58, %v926_v63 }
  0xe4   : > { %v531_v45 = vpop.f32.mrf.mxu0 }
  0xe5   : > { %v6772_v52 = vadd.f32 %v6544_v61, %v531_v45  ;;  %1710 = vperm.xlu2 %6137, %v5422_v0   ;;  %v1212_v45 = vmul.f32 %v6632_v4, %v595_v32  ;;  %v5423_v0 = vld [vmem:[%s9287_s1 + $0x2a0] sm:$0xff] }
  0xe6   : > { %1482 = vmatmul.bf16.gmra.mxu2 %v955_v33  ;;  %1705 = vperm.xlu1 %6136, %v5421_v1  }
  0xe7   : > { %1700 = vperm.xlu0 %6135, %v5420_v49   ;;  %v9303_v31 = vmax.f32 %v6772_v52, 0.0  ;;  %v6777_v47 = vpop.permute.xlu2 %1141  ;;  %v1242_v10 = vpack.c.bf16 %v1212_v45, %v1211_v30 }
  0xe8   : > { %v6779_v63 = vpop.permute.xlu1 %1091  ;;  %v6781_v58 = vpop.permute.xlu0 %1086  ;;  %v704_v32 = vld [vmem:[#allocation2 + $0x47] sm:$0xff] }
  0xe9   : > { %671 = vst [vmem:[#allocation2 + $0x50] sm:$0xff] %v9303_v31  ;;  %v5426_v31 = vld [vmem:[%s9287_s1 + $0x2b8] sm:$0xff] }
  0xec   : > { %v534_v33 = vpop.f32.mrf.mxu0 }
  0xed   : > { %v6798_v27 = vadd.f32 %v6544_v61, %v534_v33  ;;  %1335 = vmatmul.bf16.gmra.mxu1 %v1242_v10  ;;  %1725 = vperm.xlu2 %6137, %v5425_v8   ;;  %v928_v33 = vmul.f32 %v6441_v6, %v704_v32  ;;  %v5428_v8 = vld [vmem:[%s9287_s1 + $0x2c8] sm:$0xff]  ;;  %v1214_v6 = vmul.f32 %v1077_v3, %v597_v28 }
  0xee   : > { %1720 = vperm.xlu1 %6136, %v5424_v60  }
  0xef   : > { %1715 = vperm.xlu0 %6135, %v5423_v0   ;;  %v9305_v4 = vmax.f32 %v6798_v27, 0.0  ;;  %v6801_v1 = vpop.permute.xlu2 %1156  ;;  %v5427_v0 = vld [vmem:[%s9287_s1 + $0x2c0] sm:$0xff] }
  0xf0   : > { %v6803_v49 = vpop.permute.xlu1 %1106  ;;  %v6805_v30 = vpop.permute.xlu0 %1101  ;;  %v705_v45 = vld [vmem:[#allocation2 + $0x4f] sm:$0xff] }
  0xf1   : > { %672 = vst [vmem:[#allocation2 + $0x58] sm:$0xff] %v9305_v4  ;;  %v929_v10 = vmul.f32 %v6499_v37, %v705_v45  ;;  %v1213_v37 = vmul.f32 %v1072_v26, %v596_v2  ;;  %v5430_v26 = vld [vmem:[%s9287_s1 + $0x2d8] sm:$0xff] }
  0xf3   : > { %v956_v60 = vpack.c.bf16 %v929_v10, %v928_v33  ;;  %v1243_v25 = vpack.c.bf16 %v1214_v6, %v1213_v37 }
  0xf4   : > { %v536_v21 = vpop.f32.mrf.mxu0 }
  0xf5   : > { %v6821_v4 = vadd.f32 %v6544_v61, %v536_v21  ;;  %1740 = vperm.xlu2 %6137, %v5428_v8   ;;  %v5431_v21 = vld [vmem:[%s9287_s1 + $0x2e0] sm:$0xff] }
  0xf6   : > { %1487 = vmatmul.bf16.gmra.mxu2 %v956_v60  ;;  %1735 = vperm.xlu1 %6136, %v5427_v0  }
  0xf7   : > { %1730 = vperm.xlu0 %6135, %v5426_v31   ;;  %v9306_v32 = vmax.f32 %v6821_v4, 0.0  ;;  %v6828_v45 = vpop.permute.xlu2 %1171 }
  0xf8   : > { %v6830_v33 = vpop.permute.xlu1 %1121  ;;  %v6832_v10 = vpop.permute.xlu0 %1116  ;;  %v6848_v3 = vld [vmem:[#allocation2 + $0x57] sm:$0xff] }
  0xf9   : > { %673 = vst [vmem:[#allocation2 + $0x60] sm:$0xff] %v9306_v32  ;;  %v930_v37 = vmul.f32 %v6497_v36, %v6848_v3 }
  0xfc   : > { %v539_v2 = vpop.f32.mrf.mxu0 }
  0xfd   : > { %v6846_v28 = vadd.f32 %v6544_v61, %v539_v2  ;;  %1340 = vmatmul.bf16.gmra.mxu1 %v1243_v25  ;;  %1755 = vperm.xlu2 %6137, %v5431_v21   ;;  %v5434_v25 = vld [vmem:[%s9287_s1 + $0x2f8] sm:$0xff]  ;;  %v5432_v2 = vld [vmem:[%s9287_s1 + $0x2e8] sm:$0xff] }
  0xfe   : > { %1750 = vperm.xlu1 %6136, %v5430_v26  }
  0xff   : > { %1745 = vperm.xlu0 %6135, %v5429_v62   ;;  %v9307_v31 = vmax.f32 %v6846_v28, 0.0  ;;  %v6851_v8 = vpop.permute.xlu2 %1186  ;;  %v5433_v62 = vld [vmem:[%s9287_s1 + $0x2f0] sm:$0xff] }
 0x100   : > { %v6853_v60 = vpop.permute.xlu1 %1136  ;;  %v6855_v0 = vpop.permute.xlu0 %1131  ;;  %v707_v6 = vld [vmem:[#allocation2 + $0x5f] sm:$0xff] }
 0x101   : > { %674 = vst [vmem:[#allocation2 + $0x68] sm:$0xff] %v9307_v31  ;;  %v931_v21 = vmul.f32 %v6453_v11, %v707_v6  ;;  %v9343_v11 = vmax.f32 %v6721_v12, 0.0  ;;  %v5485_v12 = vld [vmem:[%s9287_s1 + $0x310] sm:$0xff] }
 0x103   : > { %v957_v26 = vpack.c.bf16 %v931_v21, %v930_v37  ;;  %v1216_v36 = vmul.f32 %v6781_v58, %v9343_v11 }
 0x104   : > { %v541_v32 = vpop.f32.mrf.mxu0 }
 0x105   : > { %v6872_v31 = vadd.f32 %v6544_v61, %v541_v32  ;;  %1770 = vperm.xlu2 %6137, %v5434_v25   ;;  %v9344_v32 = vmax.f32 %v6687_v16, 0.0 }
 0x106   : > { %1492 = vmatmul.bf16.gmra.mxu2 %v957_v26  ;;  %1765 = vperm.xlu1 %6136, %v5433_v62   ;;  %v5484_v26 = vld [vmem:[%s9287_s1 + $0x308] sm:$0xff]  ;;  %v5483_v62 = vld [vmem:[%s9287_s1 + $0x300] sm:$0xff] }
 0x107   : > { %1760 = vperm.xlu0 %6135, %v5432_v2   ;;  %v9308_v6 = vmax.f32 %v6872_v31, 0.0  ;;  %v6878_v37 = vpop.permute.xlu2 %1201  ;;  %v1215_v25 = vmul.f32 %v6662_v39, %v9344_v32 }
 0x108   : > { %v6880_v21 = vpop.permute.xlu1 %1151  ;;  %v6882_v24 = vpop.permute.xlu0 %1146  ;;  %v6901_v39 = vld [vmem:[#allocation2 + $0x67] sm:$0xff] }
 0x109   : > { %675 = vst [vmem:[#allocation2 + $0x70] sm:$0xff] %v9308_v6  ;;  %v1244_v58 = vpack.c.bf16 %v1216_v36, %v1215_v25 }
 0x10a   : > { %9345 = vst [vmem:[#allocation6_spill] sm:$0xff] %v6901_v39 }
 0x10c   : > { %v544_v2 = vpop.f32.mrf.mxu0 }
 0x10d   : > { %v6899_v11 = vadd.f32 %v6544_v61, %v544_v2  ;;  %1345 = vmatmul.bf16.gmra.mxu1 %v1244_v58  ;;  %2084 = vperm.xlu2 %6137, %v5485_v12   ;;  %v932_v12 = vmul.f32 %v6518_v46, %v6901_v39  ;;  %v5487_v2 = vld [vmem:[%s9287_s1 + $0x320] sm:$0xff] }
 0x10e   : > { %2079 = vperm.xlu1 %6136, %v5484_v26   ;;  %v5488_v26 = vld [vmem:[%s9287_s1 + $0x328] sm:$0xff] }
 0x10f   : > { %2074 = vperm.xlu0 %6135, %v5483_v62   ;;  %v9309_v16 = vmax.f32 %v6899_v11, 0.0  ;;  %v6904_v36 = vpop.permute.xlu2 %1620 }
 0x110   : > { %9346 = vst [vmem:[#allocation7_spill] sm:$0xff] %v6904_v36  ;;  %v6906_v32 = vpop.permute.xlu1 %1166  ;;  %v6908_v25 = vpop.permute.xlu0 %1161  ;;  %v6910_v6 = vld [vmem:[#allocation2 + $0x6f] sm:$0xff]  ;;  %v5486_v36 = vld [vmem:[%s9287_s1 + $0x318] sm:$0xff] }
 0x111   : > { %9347 = vst [vmem:[#allocation8_spill] sm:$0xff] %v6910_v6  ;;  %v933_v58 = vmul.f32 %v6516_v44, %v6910_v6  ;;  %v9348_v44 = vmax.f32 %v6748_v53, 0.0  ;;  %v5491_v53 = vld [vmem:[%s9287_s1 + $0x340] sm:$0xff] }
 0x112   : > { %676 = vst [vmem:[#allocation2 + $0x78] sm:$0xff] %v9309_v16 }
 0x113   : > { %v958_v62 = vpack.c.bf16 %v933_v58, %v932_v12  ;;  %v1217_v46 = vmul.f32 %v6779_v63, %v9348_v44 }
 0x114   : > { %v546_v16 = vpop.f32.mrf.mxu0 }
 0x115   : > { %v6928_v54 = vadd.f32 %v6544_v61, %v546_v16  ;;  %2099 = vperm.xlu2 %6137, %v5488_v26   ;;  %v9350_v16 = vmax.f32 %v6772_v52, 0.0 }
 0x116   : > { %1497 = vmatmul.bf16.gmra.mxu2 %v958_v62  ;;  %2094 = vperm.xlu1 %6136, %v5487_v2   ;;  %v5489_v62 = vld [vmem:[%s9287_s1 + $0x330] sm:$0xff] }
 0x117   : > { %2089 = vperm.xlu0 %6135, %v5486_v36   ;;  %v9312_v12 = vmax.f32 %v6928_v54, 0.0  ;;  %v6934_v58 = vpop.permute.xlu2 %1635  ;;  %v1218_v26 = vmul.f32 %v6694_v23, %v9350_v16  ;;  %v5490_v36 = vld [vmem:[%s9287_s1 + $0x338] sm:$0xff] }
 0x118   : > { %9349 = vst [vmem:[#allocation9_spill] sm:$0xff] %v6934_v58  ;;  %v6936_v6 = vpop.permute.xlu1 %1181  ;;  %v6938_v39 = vpop.permute.xlu0 %1176 }
 0x119   : > { %677 = vst [vmem:[#allocation2 + $0x80] sm:$0xff] %v9312_v12  ;;  %v1245_v63 = vpack.c.bf16 %v1218_v26, %v1217_v46  ;;  %v6957_v23 = vld [vmem:[#allocation2 + $0x77] sm:$0xff] }
 0x11a   : > { %9351 = vst [vmem:[#allocation10_spill] sm:$0xff] %v6957_v23 }
 0x11c   : > { %v549_v2 = vpop.f32.mrf.mxu0 }
 0x11d   : > { %v6955_v44 = vadd.f32 %v6544_v61, %v549_v2  ;;  %1350 = vmatmul.bf16.gmra.mxu1 %v1245_v63  ;;  %2114 = vperm.xlu2 %6137, %v5491_v53   ;;  %v934_v53 = vmul.f32 %v6466_v20, %v6957_v23  ;;  %v5494_v2 = vld [vmem:[%s9287_s1 + $0x358] sm:$0xff]  ;;  %v5493_v20 = vld [vmem:[%s9287_s1 + $0x350] sm:$0xff]  ;;  %v9355_v23 = vmax.f32 %v6821_v4, 0.0  ;;  %v5496_v4 = vld [vmem:[%s9287_s1 + $0x368] sm:$0xff] }
 0x11e   : > { %2109 = vperm.xlu1 %6136, %v5490_v36   ;;  %v6052_v36 = vld [vmem:[%s9290_s4 + $0xf8] sm:$0xff] }
 0x11f   : > { %2104 = vperm.xlu0 %6135, %v5489_v62   ;;  %v9313_v52 = vmax.f32 %v6955_v44, 0.0  ;;  %v6960_v46 = vpop.permute.xlu2 %1650  ;;  %v6060_v62 = vld [vmem:[%s9290_s4 + $0x138] sm:$0xff]  ;;  %2345 = vmatpush.bf16.msrb.mxu0 %v6052_v36 }
 0x120   : > { %9352 = vst [vmem:[#allocation11_spill] sm:$0xff] %v6960_v46  ;;  %v6962_v16 = vpop.permute.xlu1 %1196  ;;  %v6964_v26 = vpop.permute.xlu0 %1191  ;;  %v6966_v12 = vld [vmem:[#allocation2 + $0x7f] sm:$0xff]  ;;  %2804 = vmatpush.bf16.msrb.mxu1 %v6060_v62  ;;  %v9356_v62 = vmax.f32 %v6798_v27, 0.0 }
 0x121   : > { %9353 = vst [vmem:[#allocation12_spill] sm:$0xff] %v6966_v12  ;;  %v935_v63 = vmul.f32 %v6539_v59, %v6966_v12  ;;  %v5492_v59 = vld [vmem:[%s9287_s1 + $0x348] sm:$0xff]  ;;  %v1220_v12 = vmul.f32 %v6803_v49, %v9355_v23  ;;  %v5495_v49 = vld [vmem:[%s9287_s1 + $0x360] sm:$0xff] }
 0x122   : > { %678 = vst [vmem:[#allocation2 + $0x88] sm:$0xff] %v9313_v52 }
 0x123   : > { %v959_v46 = vpack.c.bf16 %v935_v63, %v934_v53 }
 0x124   : > { %v551_v52 = vpop.f32.mrf.mxu0 }
 0x125   : > { %v6990_v58 = vadd.f32 %v6544_v61, %v551_v52  ;;  %2129 = vperm.xlu2 %6137, %v5494_v2   ;;  %v1219_v52 = vmul.f32 %v6805_v30, %v9356_v62 }
 0x126   : > { %1502 = vmatmul.bf16.gmra.mxu2 %v959_v46  ;;  %2124 = vperm.xlu1 %6136, %v5493_v20   ;;  %v5497_v46 = vld [vmem:[%s9287_s1 + $0x370] sm:$0xff] }
 0x127   : > { %2119 = vperm.xlu0 %6135, %v5492_v59   ;;  %v9316_v53 = vmax.f32 %v6990_v58, 0.0  ;;  %v6993_v63 = vpop.permute.xlu2 %1665  ;;  %v1246_v2 = vpack.c.bf16 %v1220_v12, %v1219_v52 }
 0x128   : > { %9354 = vst [vmem:[#allocation13_spill] sm:$0xff] %v6993_v63  ;;  %v6998_v40 = vpop.permute.xlu1 %1615  ;;  %v7000_v36 = vpop.permute.xlu0 %1206  ;;  %v9363_v63 = vmax.f32 %v6872_v31, 0.0  ;;  %v6051_v31 = vld [vmem:[%s9290_s4 + $0xf0] sm:$0xff] }
 0x129   : > { %679 = vst [vmem:[#allocation2 + $0x90] sm:$0xff] %v9316_v53  ;;  %v7019_v30 = vld [vmem:[#allocation2 + $0x87] sm:$0xff]  ;;  %v5498_v53 = vld [vmem:[%s9287_s1 + $0x378] sm:$0xff]  ;;  %2346 = vmatpush.bf16.msrb.mxu0 %v6051_v31 }
 0x12a   : > { %9357 = vst [vmem:[#allocation14_spill] sm:$0xff] %v7019_v30 }
 0x12c   : > { %v554_v23 = vpop.f32.mrf.mxu0 }
 0x12d   : > { %v7017_v27 = vadd.f32 %v6544_v61, %v554_v23  ;;  %1355 = vmatmul.bf16.gmra.mxu1 %v1246_v2  ;;  %2144 = vperm.xlu2 %6137, %v5497_v46   ;;  %v936_v46 = vmul.f32 %v6537_v56, %v7019_v30  ;;  %v5499_v23 = vld [vmem:[%s9287_s1 + $0x380] sm:$0xff] }
 0x12e   : > { %2139 = vperm.xlu1 %6136, %v5496_v4   ;;  %v5500_v4 = vld [vmem:[%s9287_s1 + $0x388] sm:$0xff] }
 0x12f   : > { %2134 = vperm.xlu0 %6135, %v5495_v49   ;;  %v9317_v12 = vmax.f32 %v7017_v27, 0.0  ;;  %v7022_v20 = vpop.permute.xlu2 %1680 }
 0x130   : > { %9358 = vst [vmem:[#allocation15_spill] sm:$0xff] %v7022_v20  ;;  %v7024_v59 = vpop.permute.xlu1 %1630  ;;  %v7026_v62 = vpop.permute.xlu0 %1625  ;;  %v7028_v52 = vld [vmem:[#allocation2 + $0x8f] sm:$0xff] }
 0x131   : > { %9359 = vst [vmem:[#allocation16_spill] sm:$0xff] %v7024_v59  ;;  %v937_v2 = vmul.f32 %v6480_v29, %v7028_v52  ;;  %v7045_v20 = vpop.f32.mrf.mxu2  ;;  %v589_v29 = vpop.f32.mrf.mxu3 }
 0x132   : > { %9360 = vst [vmem:[#allocation17_spill] sm:$0xff] %v7026_v62  ;;  %v1222_v62 = vmul.f32 %v6832_v10, %v9363_v63  ;;  %v590_v59 = vadd.f32 %v6544_v61, %v589_v29  ;;  %v6059_v10 = vld [vmem:[%s9290_s4 + $0x130] sm:$0xff]  ;;  %v5503_v63 = vld [vmem:[%s9287_s1 + $0x3a0] sm:$0xff] }
 0x133   : > { %680 = vst [vmem:[#allocation2 + $0x98] sm:$0xff] %v9317_v12  ;;  %v960_v49 = vpack.c.bf16 %v937_v2, %v936_v46  ;;  %2805 = vmatpush.bf16.msrb.mxu1 %v6059_v10 }
 0x134   : > { %v556_v12 = vpop.f32.mrf.mxu0  ;;  %9361 = vst [vmem:[#allocation18_spill] sm:$0xff] %v7045_v20 }
 0x135   : > { %v7048_v56 = vadd.f32 %v6544_v61, %v556_v12  ;;  %2159 = vperm.xlu2 %6137, %v5500_v4   ;;  %v624_v4 = vmax.f32 %v590_v59, 0.0 }
 0x136   : > { %1507 = vmatmul.bf16.gmra.mxu2 %v960_v49  ;;  %2154 = vperm.xlu1 %6136, %v5499_v23  }
 0x137   : > { %2149 = vperm.xlu0 %6135, %v5498_v53   ;;  %v9319_v46 = vmax.f32 %v7048_v56, 0.0  ;;  %v7051_v2 = vpop.permute.xlu2 %1695  ;;  %v9364_v53 = vmax.f32 %v6846_v28, 0.0  ;;  %v5502_v28 = vld [vmem:[%s9287_s1 + $0x398] sm:$0xff]  ;;  %694 = vst [vmem:[#allocation2 + $0x108] sm:$0xff] %v624_v4 }
 0x138   : > { %9362 = vst [vmem:[#allocation19_spill] sm:$0xff] %v7051_v2  ;;  %v7057_v30 = vpop.permute.xlu1 %1645  ;;  %v7059_v20 = vpop.permute.xlu0 %1640 }
 0x139   : > { %681 = vst [vmem:[#allocation2 + $0xa0] sm:$0xff] %v9319_v46  ;;  %v1221_v12 = vmul.f32 %v6726_v48, %v9364_v53  ;;  %v5501_v48 = vld [vmem:[%s9287_s1 + $0x390] sm:$0xff]  ;;  %v7086_v29 = vpop.f32.mrf.mxu2 }
 0x13a   : > { %9365 = vst [vmem:[#allocation20_spill] sm:$0xff] %v7086_v29 }
 0x13b   : > { %v1247_v49 = vpack.c.bf16 %v1222_v62, %v1221_v12  ;;  %v7084_v62 = vld [vmem:[#allocation2 + $0x97] sm:$0xff] }
 0x13c   : > { %v559_v59 = vpop.f32.mrf.mxu0  ;;  %v938_v10 = vmul.f32 %v6570_v15, %v7084_v62 }
 0x13d   : > { %v7082_v23 = vadd.f32 %v6544_v61, %v559_v59  ;;  %1360 = vmatmul.bf16.gmra.mxu1 %v1247_v49  ;;  %2174 = vperm.xlu2 %6137, %v5503_v63   ;;  %v5506_v49 = vld [vmem:[%s9287_s1 + $0x3b8] sm:$0xff]  ;;  %v5504_v59 = vld [vmem:[%s9287_s1 + $0x3a8] sm:$0xff] }
 0x13e   : > { %2169 = vperm.xlu1 %6136, %v5502_v28  }
 0x13f   : > { %2164 = vperm.xlu0 %6135, %v5501_v48   ;;  %v9320_v53 = vmax.f32 %v7082_v23, 0.0  ;;  %v7089_v12 = vpop.permute.xlu2 %1710  ;;  %v5505_v48 = vld [vmem:[%s9287_s1 + $0x3b0] sm:$0xff] }
 0x140   : > { %9366 = vst [vmem:[#allocation21_spill] sm:$0xff] %v7089_v12  ;;  %v7091_v46 = vpop.permute.xlu1 %1660  ;;  %v7093_v4 = vpop.permute.xlu0 %1655  ;;  %v7095_v31 = vld [vmem:[#allocation2 + $0x9f] sm:$0xff] }
 0x141   : > { %682 = vst [vmem:[#allocation2 + $0xa8] sm:$0xff] %v9320_v53  ;;  %v939_v63 = vmul.f32 %v6568_v14, %v7095_v31 }
 0x143   : > { %v961_v28 = vpack.c.bf16 %v939_v63, %v938_v10  ;;  %v9368_v10 = vmax.f32 %v6928_v54, 0.0 }
 0x144   : > { %v561_v53 = vpop.f32.mrf.mxu0 }
 0x145   : > { %v7113_v12 = vadd.f32 %v6544_v61, %v561_v53  ;;  %2189 = vperm.xlu2 %6137, %v5506_v49   ;;  %v1224_v63 = vmul.f32 %v6753_v51, %v9368_v10  ;;  %v9370_v49 = vmax.f32 %v6899_v11, 0.0  ;;  %v5508_v51 = vld [vmem:[%s9287_s1 + $0x3c8] sm:$0xff] }
 0x146   : > { %1512 = vmatmul.bf16.gmra.mxu2 %v961_v28  ;;  %2184 = vperm.xlu1 %6136, %v5505_v48   ;;  %v5509_v48 = vld [vmem:[%s9287_s1 + $0x3d0] sm:$0xff]  ;;  %v6050_v11 = vld [vmem:[%s9290_s4 + $0xe8] sm:$0xff] }
 0x147   : > { %2179 = vperm.xlu0 %6135, %v5504_v59   ;;  %v9321_v14 = vmax.f32 %v7113_v12, 0.0  ;;  %v7116_v15 = vpop.permute.xlu2 %1725  ;;  %v1223_v28 = vmul.f32 %v6830_v33, %v9370_v49  ;;  %v5507_v59 = vld [vmem:[%s9287_s1 + $0x3c0] sm:$0xff]  ;;  %2347 = vmatpush.bf16.msrb.mxu0 %v6050_v11  ;;  %v5510_v11 = vld [vmem:[%s9287_s1 + $0x3d8] sm:$0xff] }
 0x148   : > { %9367 = vst [vmem:[#allocation22_spill] sm:$0xff] %v7116_v15  ;;  %v7121_v29 = vpop.f32.mrf.mxu2  ;;  %v7123_v2 = vpop.permute.xlu1 %1675  ;;  %v716_v33 = vld [vmem:[#allocation2 + $0xa7] sm:$0xff] }
 0x149   : > { %9369 = vst [vmem:[#allocation23_spill] sm:$0xff] %v7123_v2  ;;  %v7127_v53 = vpop.permute.xlu0 %1670  ;;  %v1248_v54 = vpack.c.bf16 %v1224_v63, %v1223_v28 }
 0x14a   : > { %683 = vst [vmem:[#allocation2 + $0xb0] sm:$0xff] %v9321_v14 }
 0x14c   : > { %v564_v10 = vpop.f32.mrf.mxu0 }
 0x14d   : > { %v7142_v14 = vadd.f32 %v6544_v61, %v564_v10  ;;  %1365 = vmatmul.bf16.gmra.mxu1 %v1248_v54  ;;  %2204 = vperm.xlu2 %6137, %v5509_v48   ;;  %v940_v54 = vmul.f32 %v6495_v35, %v716_v33 }
 0x14e   : > { %2199 = vperm.xlu1 %6136, %v5508_v51  }
 0x14f   : > { %2194 = vperm.xlu0 %6135, %v5507_v59   ;;  %v9322_v63 = vmax.f32 %v7142_v14, 0.0  ;;  %v7148_v49 = vpop.permute.xlu2 %1740  ;;  %v5512_v59 = vld [vmem:[%s9287_s1 + $0x3e8] sm:$0xff] }
 0x150   : > { %9371 = vst [vmem:[#allocation24_spill] sm:$0xff] %v7148_v49  ;;  %v7150_v28 = vpop.f32.mrf.mxu2  ;;  %v7152_v15 = vpop.permute.xlu1 %1690  ;;  %v5511_v49 = vld [vmem:[%s9287_s1 + $0x3e0] sm:$0xff] }
 0x151   : > { %9372 = vst [vmem:[#allocation25_spill] sm:$0xff] %v7150_v28  ;;  %v717_v2 = vld [vmem:[#allocation2 + $0xaf] sm:$0xff]  ;;  %v7156_v48 = vpop.permute.xlu0 %1685 }
 0x152   : > { %684 = vst [vmem:[#allocation2 + $0xb8] sm:$0xff] %v9322_v63  ;;  %v941_v51 = vmul.f32 %v6604_v38, %v717_v2  ;;  %v6058_v63 = vld [vmem:[%s9290_s4 + $0x128] sm:$0xff]  ;;  %v6049_v38 = vld [vmem:[%s9290_s4 + $0xe0] sm:$0xff] }
 0x153   : > { %9373 = vst [vmem:[#allocation26_spill] sm:$0xff] %v7156_v48  ;;  %2806 = vmatpush.bf16.msrb.mxu1 %v6058_v63  ;;  %2348 = vmatpush.bf16.msrb.mxu0 %v6049_v38  ;;  %v6048_v48 = vld [vmem:[%s9290_s4 + $0xd8] sm:$0xff]  ;;  %v5563_v63 = vld [vmem:[%s9287_s1 + $0x400] sm:$0xff] }
 0x154   : > { %v962_v10 = vpack.c.bf16 %v941_v51, %v940_v54  ;;  %v566_v35 = vpop.f32.mrf.mxu0  ;;  %v9375_v51 = vmax.f32 %v6990_v58, 0.0  ;;  %v5514_v38 = vld [vmem:[%s9287_s1 + $0x3f8] sm:$0xff] }
 0x155   : > { %v7176_v2 = vadd.f32 %v6544_v61, %v566_v35  ;;  %2219 = vperm.xlu2 %6137, %v5512_v59   ;;  %v9377_v59 = vmax.f32 %v6955_v44, 0.0 }
 0x156   : > { %1517 = vmatmul.bf16.gmra.mxu2 %v962_v10  ;;  %2214 = vperm.xlu1 %6136, %v5511_v49   ;;  %v1226_v28 = vmul.f32 %v6853_v60, %v9375_v51  ;;  %v5513_v51 = vld [vmem:[%s9287_s1 + $0x3f0] sm:$0xff] }
 0x157   : > { %2209 = vperm.xlu0 %6135, %v5510_v11   ;;  %v9323_v33 = vmax.f32 %v7176_v2, 0.0  ;;  %v7179_v54 = vpop.permute.xlu2 %1755  ;;  %v1225_v58 = vmul.f32 %v6855_v0, %v9377_v59  ;;  %2349 = vmatpush.bf16.msrb.mxu0 %v6048_v48  ;;  %v6047_v0 = vld [vmem:[%s9290_s4 + $0xd0] sm:$0xff]  ;;  %v6046_v48 = vld [vmem:[%s9290_s4 + $0xc8] sm:$0xff] }
 0x158   : > { %9374 = vst [vmem:[#allocation27_spill] sm:$0xff] %v7179_v54  ;;  %v7189_v10 = vpop.permute.xlu1 %1705 }
 0x159   : > { %v7187_v35 = vpop.f32.mrf.mxu2  ;;  %9376 = vst [vmem:[#allocation28_spill] sm:$0xff] %v7189_v10  ;;  %v7193_v49 = vpop.permute.xlu0 %1700  ;;  %v1249_v11 = vpack.c.bf16 %v1226_v28, %v1225_v58  ;;  %v718_v28 = vld [vmem:[#allocation2 + $0xb7] sm:$0xff] }
 0x15a   : > { %685 = vst [vmem:[#allocation2 + $0xc0] sm:$0xff] %v9323_v33  ;;  %v7198_v60 = vpop.f32.mrf.mxu1 }
 0x15b   : > { %9378 = vst [vmem:[#allocation29_spill] sm:$0xff] %v7198_v60  ;;  %2350 = vmatpush.bf16.msrb.mxu0 %v6047_v0 }
 0x15c   : > { %v569_v33 = vpop.f32.mrf.mxu0 }
 0x15d   : > { %v570_v44 = vadd.f32 %v6544_v61, %v569_v33  ;;  %1370 = vmatmul.bf16.gmra.mxu1 %v1249_v11  ;;  %2533 = vperm.xlu2 %6137, %v5563_v63   ;;  %v942_v63 = vmul.f32 %v6602_v34, %v718_v28 }
 0x15e   : > { %2229 = vperm.xlu1 %6136, %v5514_v38  }
 0x15f   : > { %2224 = vperm.xlu0 %6135, %v5513_v51   ;;  %v616_v59 = vmax.f32 %v570_v44, 0.0  ;;  %v7213_v58 = vpop.permute.xlu2 %1770  ;;  %v5566_v51 = vld [vmem:[%s9287_s1 + $0x418] sm:$0xff]  ;;  %v5565_v44 = vld [vmem:[%s9287_s1 + $0x410] sm:$0xff]  ;;  %2351 = vmatpush.bf16.msrb.mxu0 %v6046_v48  ;;  %v9384_v48 = vmax.f32 %v7048_v56, 0.0 }
 0x160   : > { %9379 = vst [vmem:[#allocation30_spill] sm:$0xff] %v7213_v58  ;;  %v7220_v10 = vpop.permute.xlu1 %1720  ;;  %v5564_v58 = vld [vmem:[%s9287_s1 + $0x408] sm:$0xff] }
 0x161   : > { %v7218_v54 = vpop.f32.mrf.mxu2  ;;  %9381 = vst [vmem:[#allocation32_spill] sm:$0xff] %v7220_v10  ;;  %v719_v60 = vld [vmem:[#allocation2 + $0xbf] sm:$0xff]  ;;  %v7222_v33 = vpop.permute.xlu0 %1715 }
 0x162   : > { %9380 = vst [vmem:[#allocation31_spill] sm:$0xff] %v7218_v54  ;;  %v943_v11 = vmul.f32 %v6514_v43, %v719_v60  ;;  %v7226_v38 = vpop.f32.mrf.mxu1  ;;  %v6045_v43 = vld [vmem:[%s9290_s4 + $0xc0] sm:$0xff] }
 0x163   : > { %686 = vst [vmem:[#allocation2 + $0xc8] sm:$0xff] %v616_v59  ;;  %v6057_v60 = vld [vmem:[%s9290_s4 + $0x120] sm:$0xff]  ;;  %2352 = vmatpush.bf16.msrb.mxu0 %v6045_v43 }
 0x164   : > { %9382 = vst [vmem:[#allocation33_spill] sm:$0xff] %v7222_v33  ;;  %v963_v0 = vpack.c.bf16 %v943_v11, %v942_v63  ;;  %v571_v54 = vpop.f32.mrf.mxu0  ;;  %v1228_v11 = vmul.f32 %v6882_v24, %v9384_v48  ;;  %2807 = vmatpush.bf16.msrb.mxu1 %v6057_v60  ;;  %v5569_v24 = vld [vmem:[%s9287_s1 + $0x430] sm:$0xff]  ;;  %v5568_v60 = vld [vmem:[%s9287_s1 + $0x428] sm:$0xff] }
 0x165   : > { %9383 = vst [vmem:[#allocation34_spill] sm:$0xff] %v7226_v38  ;;  %v572_v34 = vadd.f32 %v6544_v61, %v571_v54  ;;  %2548 = vperm.xlu2 %6137, %v5566_v51  }
 0x166   : > { %1522 = vmatmul.bf16.gmra.mxu2 %v963_v0  ;;  %2543 = vperm.xlu1 %6136, %v5565_v44   ;;  %v1233_v0 = vmul.f32 %v6828_v45, %v616_v59 }
 0x167   : > { %2538 = vperm.xlu0 %6135, %v5564_v58   ;;  %v617_v28 = vmax.f32 %v572_v34, 0.0  ;;  %v7244_v63 = vpop.permute.xlu2 %2084  ;;  %v9387_v58 = vmax.f32 %v7017_v27, 0.0 }
 0x168   : > { %v7249_v33 = vpop.permute.xlu1 %1735 }
 0x169   : > { %9385 = vst [vmem:[#allocation35_spill] sm:$0xff] %v7249_v33  ;;  %v7251_v61 = vpop.f32.mrf.mxu2  ;;  %v7253_v54 = vpop.permute.xlu0 %1730  ;;  %v1227_v51 = vmul.f32 %v6777_v47, %v9387_v58  ;;  %v1234_v44 = vmul.f32 %v6938_v39, %v617_v28  ;;  %v5567_v47 = vld [vmem:[%s9287_s1 + $0x420] sm:$0xff]  ;;  %v5570_v58 = vld [vmem:[%s9287_s1 + $0x438] sm:$0xff] }
 0x16a   : > { %687 = vst [vmem:[#allocation2 + $0xd0] sm:$0xff] %v617_v28  ;;  %v1336_v56 = vpop.f32.mrf.mxu1  ;;  %v5572_v28 = vld [vmem:[%s9287_s1 + $0x448] sm:$0xff] }
 0x16b   : > { %9386 = vst [vmem:[#allocation36_spill] sm:$0xff] %v7253_v54  ;;  %v7264_v43 = vadd.f32 %v7121_v29, %v1336_v56  ;;  %v1250_v34 = vpack.c.bf16 %v1228_v11, %v1227_v51  ;;  %v1253_v45 = vpack.c.bf16 %v1234_v44, %v1233_v0  ;;  %v5571_v11 = vld [vmem:[%s9287_s1 + $0x440] sm:$0xff]  ;;  %v9393_v0 = vmax.f32 %v7113_v12, 0.0 }
 0x16c   : > { %v9398_v12 = vmax.f32 %v6615_v42, 0.0 }
 0x16d   : > { %9388 = vst [vmem:[#allocation37_spill] sm:$0xff] %v7264_v43  ;;  %1375 = vmatmul.bf16.gmra.mxu1 %v1250_v34  ;;  %2563 = vperm.xlu2 %6137, %v5569_v24   ;;  %v1230_v44 = vmul.f32 %v6801_v1, %v9393_v0  ;;  %v9395_v24 = vmax.f32 %v6582_v22, 0.0  ;;  %v9438_v43 = vld [vmem:[#allocation16_spill] sm:$0xff] }
 0x16e   : > { %2558 = vperm.xlu1 %6136, %v5568_v60   ;;  %1390 = vmatmul.bf16.vlgmr.msrb.gmra.mxu3 %v1253_v45  ;;  %v1236_v1 = vmul.f32 %v6851_v8, %v9398_v12 }
 0x16f   : > { %2553 = vperm.xlu0 %6135, %v5567_v47   ;;  %v7272_v39 = vpop.permute.xlu2 %2099  ;;  %v1235_v34 = vmul.f32 %v6936_v6, %v9395_v24  ;;  %v9397_v47 = vmax.f32 %v7082_v23, 0.0  ;;  %v5574_v6 = vld [vmem:[%s9287_s1 + $0x458] sm:$0xff] }
 0x170   : > { %v7274_v27 = vpop.permute.xlu1 %1750  ;;  %v6056_v23 = vld [vmem:[%s9290_s4 + $0x118] sm:$0xff] }
 0x171   : > { %9389 = vst [vmem:[#allocation38_spill] sm:$0xff] %v7274_v27  ;;  %v7276_v29 = vpop.permute.xlu0 %1745  ;;  %v7283_v48 = vpop.f32.mrf.mxu2  ;;  %v1229_v45 = vmul.f32 %v6880_v21, %v9397_v47  ;;  %v5573_v21 = vld [vmem:[%s9287_s1 + $0x450] sm:$0xff]  ;;  %v1254_v42 = vpack.c.bf16 %v1236_v1, %v1235_v34  ;;  %2808 = vmatpush.bf16.msrb.mxu1 %v6056_v23  ;;  %v5576_v1 = vld [vmem:[%s9287_s1 + $0x468] sm:$0xff]  ;;  %v9402_v23 = vmax.f32 %v7176_v2, 0.0 }
 0x172   : > { %9390 = vst [vmem:[#allocation39_spill] sm:$0xff] %v7276_v29  ;;  %v7278_v59 = vpop.f32.mrf.mxu1  ;;  %v5577_v34 = vld [vmem:[%s9287_s1 + $0x470] sm:$0xff] }
 0x173   : > { %9391 = vst [vmem:[#allocation40_spill] sm:$0xff] %v7278_v59  ;;  %v1251_v22 = vpack.c.bf16 %v1230_v44, %v1229_v45  ;;  %v2008_v44 = vld [vmem:[#allocation2 + $0x1f] sm:$0xff]  ;;  %v2007_v45 = vld [vmem:[#allocation2 + $0x17] sm:$0xff]  ;;  %v2480_v59 = vld [vmem:[#allocation2 + $0x88] sm:$0xff] }
 0x174   : > { %9392 = vst [vmem:[#allocation41_spill] sm:$0xff] %v7283_v48  ;;  %v5581_v2 = vld [vmem:[%s9287_s1 + $0x490] sm:$0xff] }
 0x175   : > { %2578 = vperm.xlu2 %6137, %v5572_v28  }
 0x176   : > { %2573 = vperm.xlu1 %6136, %v5571_v11   ;;  %v5575_v11 = vld [vmem:[%s9287_s1 + $0x460] sm:$0xff] }
 0x177   : > { %2568 = vperm.xlu0 %6135, %v5570_v58   ;;  %v7291_v51 = vpop.permute.xlu2 %2114 }
 0x178   : > { %v7296_v56 = vpop.permute.xlu1 %1765 }
 0x179   : > { %9394 = vst [vmem:[#allocation42_spill] sm:$0xff] %v7296_v56  ;;  %v7301_v60 = vpop.permute.xlu0 %1760  ;;  %v7324_v0 = vpop.f32.mrf.mxu2  ;;  %v2014_v56 = vld [vmem:[#allocation2 + $0x4f] sm:$0xff] }
 0x17a   : > { %9396 = vst [vmem:[#allocation43_spill] sm:$0xff] %v7301_v60  ;;  %v1341_v28 = vpop.f32.mrf.mxu1  ;;  %v2013_v60 = vld [vmem:[#allocation2 + $0x47] sm:$0xff] }
 0x17b   : > { %v7313_v58 = vadd.f32 %v7187_v35, %v1341_v28 }
 0x17d   : > { %9399 = vst [vmem:[#allocation44_spill] sm:$0xff] %v7313_v58  ;;  %1380 = vmatmul.bf16.gmra.mxu1 %v1251_v22  ;;  %2593 = vperm.xlu2 %6137, %v5575_v11   ;;  %v5578_v22 = vld [vmem:[%s9287_s1 + $0x478] sm:$0xff] }
 0x17e   : > { %2588 = vperm.xlu1 %6136, %v5574_v6   ;;  %1395 = vmatmul.bf16.gmra.mxu3 %v1254_v42  ;;  %v1232_v42 = vmul.f32 %v6906_v32, %v9402_v23 }
 0x17f   : > { %2583 = vperm.xlu0 %6135, %v5573_v21   ;;  %v7326_v8 = vpop.permute.xlu2 %2129 }
 0x180   : > { %v2080_v35 = vpop.permute.xlu1 %2079 }
 0x181   : > { %v2233_v24 = vmul.f32 %v2080_v35, %v2008_v44  ;;  %v2075_v47 = vpop.permute.xlu0 %2074  ;;  %v7339_v6 = vpop.f32.mrf.mxu2  ;;  %v9403_v44 = vmax.f32 %v6675_v50, 0.0 }
 0x182   : > { %v2232_v28 = vmul.f32 %v2075_v47, %v2007_v45  ;;  %v7328_v12 = vpop.f32.mrf.mxu1  ;;  %9401 = vst [vmem:[#allocation46_spill] sm:$0xff] %v7339_v6  ;;  %v9404_v47 = vmax.f32 %v6647_v19, 0.0  ;;  %v5580_v19 = vld [vmem:[%s9287_s1 + $0x488] sm:$0xff]  ;;  %v2240_v6 = vmul.f32 %v7291_v51, %v6848_v3  ;;  %v6067_v51 = vld [vmem:[%s9290_s4 + $0x170] sm:$0xff] }
 0x183   : > { %9400 = vst [vmem:[#allocation45_spill] sm:$0xff] %v7328_v12  ;;  %v6038_v3 = vld [vmem:[%s9290_s4 + $0x88] sm:$0xff] }
 0x184   : > { %v2264_v11 = vpack.c.bf16 %v2233_v24, %v2232_v28  ;;  %v1238_v24 = vmul.f32 %v6962_v16, %v9403_v44  ;;  %v1237_v45 = vmul.f32 %v6964_v26, %v9404_v47  ;;  %v5579_v16 = vld [vmem:[%s9287_s1 + $0x480] sm:$0xff]  ;;  %v2010_v26 = vld [vmem:[#allocation2 + $0x2f] sm:$0xff]  ;;  %v2234_v44 = vmul.f32 %v7244_v63, %v6689_v17 }
 0x185   : > { %2608 = vperm.xlu2 %6137, %v5578_v22   ;;  %v9405_v22 = vmax.f32 %v7142_v14, 0.0  ;;  %v6055_v17 = vld [vmem:[%s9290_s4 + $0x110] sm:$0xff] }
 0x186   : > { %2353 = vmatmul.bf16.vlgmr.msrb.gmra.mxu0 %v2264_v11  ;;  %2603 = vperm.xlu1 %6136, %v5577_v34  }
 0x187   : > { %2598 = vperm.xlu0 %6135, %v5576_v1   ;;  %v7341_v21 = vpop.permute.xlu2 %2144  ;;  %v1231_v34 = vmul.f32 %v6908_v25, %v9405_v22  ;;  %v1255_v25 = vpack.c.bf16 %v1238_v24, %v1237_v45  ;;  %v5584_v24 = vld [vmem:[%s9287_s1 + $0x4a8] sm:$0xff]  ;;  %v5583_v45 = vld [vmem:[%s9287_s1 + $0x4a0] sm:$0xff]  ;;  %v5582_v22 = vld [vmem:[%s9287_s1 + $0x498] sm:$0xff]  ;;  %2809 = vmatpush.bf16.msrb.mxu1 %v6055_v17  ;;  %v2237_v17 = vmul.f32 %v7272_v39, %v6755_v18 }
 0x188   : > { %v2095_v35 = vpop.permute.xlu1 %2094  ;;  %v6042_v18 = vld [vmem:[%s9290_s4 + $0xa8] sm:$0xff] }
 0x189   : > { %v2090_v28 = vpop.permute.xlu0 %2089  ;;  %v1252_v50 = vpack.c.bf16 %v1232_v42, %v1231_v34  ;;  %v7371_v23 = vpop.f32.mrf.mxu2  ;;  %v6044_v34 = vld [vmem:[%s9290_s4 + $0xb8] sm:$0xff] }
 0x18a   : > { %v1346_v11 = vpop.f32.mrf.mxu1  ;;  %1886 = vmatpush.bf16.msrb.mxu3 %v6044_v34 }
 0x18b   : > { %v7359_v32 = vadd.f32 %v7251_v61, %v1346_v11  ;;  %v2235_v61 = vmul.f32 %v2090_v28, %v2010_v26  ;;  %v9409_v26 = vmax.f32 %v6710_v57, 0.0 }
 0x18d   : > { %9406 = vst [vmem:[#allocation47_spill] sm:$0xff] %v7359_v32  ;;  %1385 = vmatmul.bf16.gmra.mxu1 %v1252_v50  ;;  %2623 = vperm.xlu2 %6137, %v5581_v2   ;;  %v2265_v28 = vpack.c.bf16 %v2235_v61, %v2234_v44  ;;  %v9408_v2 = vmax.f32 %v6736_v9, 0.0  ;;  %v1239_v61 = vmul.f32 %v6878_v37, %v9409_v26  ;;  %v5586_v9 = vld [vmem:[%s9287_s1 + $0x4b8] sm:$0xff]  ;;  %v591_v26 = vpop.f32.mrf.mxu3 }
 0x18e   : > { %2618 = vperm.xlu1 %6136, %v5580_v19   ;;  %1400 = vmatmul.bf16.gmra.mxu3 %v1255_v25  ;;  %v5587_v25 = vld [vmem:[%s9287_s1 + $0x4c0] sm:$0xff]  ;;  %v2011_v37 = vld [vmem:[#allocation2 + $0x37] sm:$0xff] }
 0x18f   : > { %2613 = vperm.xlu0 %6135, %v5579_v16   ;;  %v7367_v14 = vpop.permute.xlu2 %2159  ;;  %v1240_v50 = vmul.f32 %v7000_v36, %v9408_v2  ;;  %v5585_v36 = vld [vmem:[%s9287_s1 + $0x4b0] sm:$0xff] }
 0x190   : > { %v7369_v1 = vpop.permute.xlu1 %2109 }
 0x191   : > { %v7373_v42 = vpop.permute.xlu0 %2104  ;;  %v7409_v44 = vpop.f32.mrf.mxu2  ;;  %v1256_v57 = vpack.c.bf16 %v1240_v50, %v1239_v61  ;;  %v5590_v50 = vld [vmem:[%s9287_s1 + $0x4d8] sm:$0xff]  ;;  %v6141_v61 = vld [vmem:[%s9289_s3] ss:$0 sm:$0xff] }
 0x192   : > { %v7377_v47 = vpop.f32.mrf.mxu1  ;;  %9410 = vst [vmem:[#allocation49_spill] sm:$0xff] %v7409_v44  ;;  %v2238_v29 = vmul.f32 %v7373_v42, %v2013_v60  ;;  %v6040_v60 = vld [vmem:[%s9290_s4 + $0x98] sm:$0xff] }
 0x193   : > { %9407 = vst [vmem:[#allocation48_spill] sm:$0xff] %v7377_v47 }
 0x195   : > { %2638 = vperm.xlu2 %6137, %v5584_v24  }
 0x196   : > { %2358 = vmatmul.bf16.gmra.mxu0 %v2265_v28  ;;  %2633 = vperm.xlu1 %6136, %v5583_v45   ;;  %v6043_v45 = vld [vmem:[%s9290_s4 + $0xb0] sm:$0xff]  ;;  %v2236_v28 = vmul.f32 %v2095_v35, %v2011_v37  ;;  %v5588_v35 = vld [vmem:[%s9287_s1 + $0x4c8] sm:$0xff] }
 0x197   : > { %2628 = vperm.xlu0 %6135, %v5582_v22   ;;  %v7394_v63 = vpop.permute.xlu2 %2174  ;;  %1887 = vmatpush.bf16.msrb.mxu3 %v6043_v45 }
 0x198   : > { %v7396_v11 = vpop.permute.xlu1 %2124 }
 0x199   : > { %v7401_v19 = vpop.permute.xlu0 %2119  ;;  %v1498_v39 = vpop.f32.mrf.mxu2 }
 0x19a   : > { %v1351_v16 = vpop.f32.mrf.mxu1 }
 0x19b   : > { %v7412_v24 = vadd.f32 %v7324_v0, %v1351_v16  ;;  %v5589_v16 = vld [vmem:[%s9287_s1 + $0x4d0] sm:$0xff]  ;;  %1888 = vmatpush.bf16.msrb.mxu3 %v6042_v18  ;;  %v5591_v18 = vld [vmem:[%s9287_s1 + $0x4e0] sm:$0xff] }
 0x19d   : > { %9411 = vst [vmem:[#allocation50_spill] sm:$0xff] %v7412_v24  ;;  %2653 = vperm.xlu2 %6137, %v5587_v25   ;;  %v2266_v25 = vpack.c.bf16 %v2237_v17, %v2236_v28  ;;  %v7457_v28 = vld [vmem:[#allocation2 + $0xc7] sm:$0xff] }
 0x19e   : > { %2648 = vperm.xlu1 %6136, %v5586_v9   ;;  %1405 = vmatmul.bf16.gmra.mxu3 %v1256_v57  ;;  %v7448_v9 = vadd.f32 %v6141_v61, %v591_v26  ;;  %v5592_v26 = vld [vmem:[%s9287_s1 + $0x4e8] sm:$0xff]  ;;  %v6041_v61 = vld [vmem:[%s9290_s4 + $0xa0] sm:$0xff] }
 0x19f   : > { %2643 = vperm.xlu0 %6135, %v5585_v36   ;;  %v7423_v0 = vpop.permute.xlu2 %2189  ;;  %v7450_v36 = vld [vmem:[#allocation2 + $0xcf] sm:$0xff]  ;;  %1889 = vmatpush.bf16.msrb.mxu3 %v6041_v61 }
 0x1a0   : > { %v7425_v22 = vpop.permute.xlu1 %2139  ;;  %v9324_v57 = vmax.f32 %v7448_v9, 0.0 }
 0x1a1   : > { %v7427_v34 = vpop.permute.xlu0 %2134  ;;  %v7488_v44 = vpop.f32.mrf.mxu2 }
 0x1a2   : > { %v7431_v2 = vpop.f32.mrf.mxu1  ;;  %695 = vst [vmem:[#allocation2 + $0x110] sm:$0xff] %v9324_v57 }
 0x1a3   : > { %9412 = vst [vmem:[#allocation51_spill] sm:$0xff] %v7431_v2  ;;  %1890 = vmatpush.bf16.msrb.mxu3 %v6040_v60  ;;  %v5645_v60 = vld [vmem:[%s9287_s1 + $0x510] sm:$0xff] }
 0x1a4   : > { %9414 = vst [vmem:[#allocation53_spill] sm:$0xff] %v7488_v44  ;;  %v6039_v44 = vld [vmem:[%s9290_s4 + $0x90] sm:$0xff] }
 0x1a5   : > { %2668 = vperm.xlu2 %6137, %v5590_v50   ;;  %v945_v50 = vmul.f32 %v7450_v36, %v6634_v5  ;;  %v944_v5 = vmul.f32 %v6636_v7, %v7457_v28 }
 0x1a6   : > { %2363 = vmatmul.bf16.gmra.mxu0 %v2266_v25  ;;  %2663 = vperm.xlu1 %6136, %v5589_v16   ;;  %v5593_v16 = vld [vmem:[%s9287_s1 + $0x4f0] sm:$0xff] }
 0x1a7   : > { %2658 = vperm.xlu0 %6135, %v5588_v35   ;;  %v7452_v45 = vpop.permute.xlu2 %2204  ;;  %v964_v57 = vpack.c.bf16 %v945_v50, %v944_v5  ;;  %v723_v5 = vld [vmem:[#allocation2 + $0xdf] sm:$0xff]  ;;  %1891 = vmatpush.bf16.msrb.mxu3 %v6039_v44  ;;  %v5648_v44 = vld [vmem:[%s9287_s1 + $0x528] sm:$0xff] }
 0x1a8   : > { %v7455_v37 = vpop.permute.xlu1 %2154 }
 0x1a9   : > { %v7459_v17 = vpop.permute.xlu0 %2149 }
 0x1aa   : > { %v1356_v25 = vpop.f32.mrf.mxu1 }
 0x1ab   : > { %v7469_v35 = vadd.f32 %v7371_v23, %v1356_v25  ;;  %v6068_v23 = vld [vmem:[%s9290_s4 + $0x178] sm:$0xff]  ;;  %v6054_v25 = vld [vmem:[%s9290_s4 + $0x108] sm:$0xff]  ;;  %1892 = vmatpush.bf16.msrb.mxu3 %v6038_v3 }
 0x1ac   : > { %3263 = vmatpush.bf16.msrb.mxu2 %v6068_v23  ;;  %2810 = vmatpush.bf16.msrb.mxu1 %v6054_v25 }
 0x1ad   : > { %9413 = vst [vmem:[#allocation52_spill] sm:$0xff] %v7469_v35  ;;  %2683 = vperm.xlu2 %6137, %v5593_v16   ;;  %v2239_v35 = vmul.f32 %v7369_v1, %v2014_v56  ;;  %v5594_v56 = vld [vmem:[%s9287_s1 + $0x4f8] sm:$0xff] }
 0x1ae   : > { %2678 = vperm.xlu1 %6136, %v5592_v26   ;;  %1527 = vmatmul.bf16.vlgmr.msra.gmra.mxu3 %v964_v57  ;;  %v5644_v26 = vld [vmem:[%s9287_s1 + $0x508] sm:$0xff]  ;;  %v5643_v57 = vld [vmem:[%s9287_s1 + $0x500] sm:$0xff]  ;;  %v7512_v1 = vld [vmem:[#allocation2 + $0xd7] sm:$0xff] }
 0x1af   : > { %2673 = vperm.xlu0 %6135, %v5591_v18   ;;  %v7490_v7 = vpop.permute.xlu2 %2219  ;;  %v2267_v18 = vpack.c.bf16 %v2239_v35, %v2238_v29  ;;  %v1503_v29 = vpop.f32.mrf.mxu2  ;;  %v946_v23 = vmul.f32 %v7512_v1, %v6535_v55  ;;  %v6053_v55 = vld [vmem:[%s9290_s4 + $0x100] sm:$0xff] }
 0x1b0   : > { %v7494_v27 = vpop.permute.xlu1 %2169  ;;  %2811 = vmatpush.bf16.msrb.mxu1 %v6053_v55  ;;  %3264 = vmatpush.bf16.msrb.mxu2 %v6067_v51  ;;  %v5652_v51 = vld [vmem:[%s9287_s1 + $0x548] sm:$0xff] }
 0x1b1   : > { %v7496_v16 = vpop.permute.xlu0 %2164 }
 0x1b2   : > { %v7498_v50 = vpop.f32.mrf.mxu1 }
 0x1b3   : > { %9415 = vst [vmem:[#allocation54_spill] sm:$0xff] %v7498_v50 }
 0x1b5   : > { %2997 = vperm.xlu2 %6137, %v5644_v26   ;;  %v5647_v26 = vld [vmem:[%s9287_s1 + $0x520] sm:$0xff] }
 0x1b6   : > { %2368 = vmatmul.bf16.gmra.mxu0 %v2267_v18  ;;  %2992 = vperm.xlu1 %6136, %v5643_v57   ;;  %v947_v57 = vmul.f32 %v6667_v41, %v723_v5 }
 0x1b7   : > { %2688 = vperm.xlu0 %6135, %v5594_v56   ;;  %v7514_v42 = vpop.permute.xlu2 %2533  ;;  %v5646_v56 = vld [vmem:[%s9287_s1 + $0x518] sm:$0xff] }
 0x1b8   : > { %v7516_v61 = vpop.permute.xlu1 %2184  ;;  %v965_v41 = vpack.c.bf16 %v947_v57, %v946_v23  ;;  %v5650_v23 = vld [vmem:[%s9287_s1 + $0x538] sm:$0xff] }
 0x1b9   : > { %v7518_v35 = vpop.permute.xlu0 %2179 }
 0x1ba   : > { %v1361_v25 = vpop.f32.mrf.mxu1 }
 0x1bb   : > { %v7526_v18 = vadd.f32 %v1498_v39, %v1361_v25  ;;  %v2016_v39 = vld [vmem:[#allocation2 + $0x5f] sm:$0xff] }
 0x1bc   : > { %v2241_v25 = vmul.f32 %v7401_v19, %v2016_v39  ;;  %v5649_v19 = vld [vmem:[%s9287_s1 + $0x530] sm:$0xff] }
 0x1bd   : > { %9416 = vst [vmem:[#allocation55_spill] sm:$0xff] %v7526_v18  ;;  %3012 = vperm.xlu2 %6137, %v5647_v26   ;;  %v7554_v26 = vpop.f32.mrf.mxu2 }
 0x1be   : > { %3007 = vperm.xlu1 %6136, %v5646_v56   ;;  %1532 = vmatmul.bf16.gmra.mxu3 %v965_v41  ;;  %9418 = vst [vmem:[#allocation57_spill] sm:$0xff] %v7554_v26  ;;  %v2268_v57 = vpack.c.bf16 %v2241_v25, %v2240_v6  ;;  %v7568_v56 = vld [vmem:[#allocation2 + $0xef] sm:$0xff]  ;;  %v724_v6 = vld [vmem:[#allocation2 + $0xe7] sm:$0xff] }
 0x1bf   : > { %3002 = vperm.xlu0 %6135, %v5645_v60   ;;  %v7540_v5 = vpop.permute.xlu2 %2548  ;;  %v949_v39 = vmul.f32 %v7568_v56, %v6566_v13  ;;  %v5651_v13 = vld [vmem:[%s9287_s1 + $0x540] sm:$0xff] }
 0x1c0   : > { %v7543_v18 = vpop.permute.xlu1 %2199 }
 0x1c1   : > { %v7545_v50 = vpop.permute.xlu0 %2194 }
 0x1c2   : > { %v7549_v2 = vpop.f32.mrf.mxu1 }
 0x1c3   : > { %9417 = vst [vmem:[#allocation56_spill] sm:$0xff] %v7549_v2 }
 0x1c5   : > { %3027 = vperm.xlu2 %6137, %v5650_v23   ;;  %v5653_v23 = vld [vmem:[%s9287_s1 + $0x550] sm:$0xff]  ;;  %v1508_v26 = vpop.f32.mrf.mxu2 }
 0x1c6   : > { %2373 = vmatmul.bf16.gmra.mxu0 %v2268_v57  ;;  %3022 = vperm.xlu1 %6136, %v5649_v19   ;;  %v6037_v19 = vld [vmem:[%s9290_s4 + $0x80] sm:$0xff]  ;;  %v9419_v57 = vld [vmem:[#allocation3_spill] sm:$0xff] }
 0x1c7   : > { %3017 = vperm.xlu0 %6135, %v5648_v44   ;;  %v7570_v60 = vpop.permute.xlu2 %2563  ;;  %v948_v44 = vmul.f32 %v9419_v57, %v724_v6  ;;  %1893 = vmatpush.bf16.msrb.mxu3 %v6037_v19  ;;  %v9421_v6 = vld [vmem:[#allocation6_spill] sm:$0xff]  ;;  %v6076_v19 = vld [vmem:[%s9290_s4 + $0x1b8] sm:$0xff] }
 0x1c8   : > { %v7572_v55 = vpop.permute.xlu1 %2214 }
 0x1c9   : > { %v7574_v41 = vpop.permute.xlu0 %2209  ;;  %v966_v2 = vpack.c.bf16 %v949_v39, %v948_v44  ;;  %v5656_v39 = vld [vmem:[%s9287_s1 + $0x568] sm:$0xff] }
 0x1ca   : > { %v1366_v25 = vpop.f32.mrf.mxu1 }
 0x1cb   : > { %v7585_v3 = vadd.f32 %v1503_v29, %v1366_v25  ;;  %v2242_v29 = vmul.f32 %v7396_v11, %v9421_v6  ;;  %v5654_v11 = vld [vmem:[%s9287_s1 + $0x558] sm:$0xff]  ;;  %3722 = vmatpush.bf16.msra.mxu3 %v6076_v19 }
 0x1cc   : > { %v5658_v19 = vld [vmem:[%s9287_s1 + $0x578] sm:$0xff] }
 0x1cd   : > { %9420 = vst [vmem:[#allocation3_spill] sm:$0xff] %v7585_v3  ;;  %3042 = vperm.xlu2 %6137, %v5653_v23   ;;  %v9424_v3 = vld [vmem:[#allocation8_spill] sm:$0xff]  ;;  %v7619_v44 = vpop.f32.mrf.mxu2 }
 0x1ce   : > { %3037 = vperm.xlu1 %6136, %v5652_v51   ;;  %1537 = vmatmul.bf16.gmra.mxu3 %v966_v2  ;;  %v2243_v33 = vmul.f32 %v7326_v8, %v9424_v3  ;;  %v5655_v2 = vld [vmem:[%s9287_s1 + $0x560] sm:$0xff]  ;;  %9426 = vst [vmem:[#allocation59_spill] sm:$0xff] %v7619_v44 }
 0x1cf   : > { %3032 = vperm.xlu0 %6135, %v5651_v13   ;;  %v7593_v24 = vpop.permute.xlu2 %2578  ;;  %v7617_v8 = vld [vmem:[#allocation2 + $0xff] sm:$0xff] }
 0x1d0   : > { %v7597_v25 = vpop.permute.xlu1 %2229  ;;  %v2269_v23 = vpack.c.bf16 %v2243_v33, %v2242_v29  ;;  %v7623_v33 = vld [vmem:[#allocation2 + $0xf7] sm:$0xff]  ;;  %v2467_v29 = vld [vmem:[#allocation2 + $0x20] sm:$0xff] }
 0x1d1   : > { %9422 = vst [vmem:[#allocation6_spill] sm:$0xff] %v7597_v25  ;;  %v7599_v57 = vpop.permute.xlu0 %2224  ;;  %v2466_v13 = vld [vmem:[#allocation2 + $0x18] sm:$0xff]  ;;  %v9429_v44 = vld [vmem:[#allocation5_spill] sm:$0xff] }
 0x1d2   : > { %9423 = vst [vmem:[#allocation58_spill] sm:$0xff] %v7599_v57  ;;  %v7603_v48 = vpop.f32.mrf.mxu1  ;;  %v950_v54 = vmul.f32 %v7623_v33, %v9429_v44  ;;  %v9430_v44 = vld [vmem:[#allocation12_spill] sm:$0xff] }
 0x1d3   : > { %9425 = vst [vmem:[#allocation8_spill] sm:$0xff] %v7603_v48  ;;  %v9427_v48 = vld [vmem:[#allocation4_spill] sm:$0xff] }
 0x1d4   : > { %v951_v47 = vmul.f32 %v7617_v8, %v9427_v48  ;;  %v5657_v48 = vld [vmem:[%s9287_s1 + $0x570] sm:$0xff] }
 0x1d5   : > { %3057 = vperm.xlu2 %6137, %v5656_v39   ;;  %v2691_v39 = vmul.f32 %v7514_v42, %v2466_v13  ;;  %v6066_v42 = vld [vmem:[%s9290_s4 + $0x168] sm:$0xff] }
 0x1d6   : > { %2378 = vmatmul.bf16.gmra.mxu0 %v2269_v23  ;;  %3052 = vperm.xlu1 %6136, %v5655_v2   ;;  %v5659_v2 = vld [vmem:[%s9287_s1 + $0x580] sm:$0xff]  ;;  %v967_v13 = vpack.c.bf16 %v951_v47, %v950_v54  ;;  %v1513_v54 = vpop.f32.mrf.mxu2 }
 0x1d7   : > { %3047 = vperm.xlu0 %6135, %v5654_v11   ;;  %v7621_v3 = vpop.permute.xlu2 %2593  ;;  %3265 = vmatpush.bf16.msrb.mxu2 %v6066_v42  ;;  %v2468_v42 = vld [vmem:[#allocation2 + $0x28] sm:$0xff] }
 0x1d8   : > { %v2544_v51 = vpop.permute.xlu1 %2543 }
 0x1d9   : > { %v2539_v6 = vpop.permute.xlu0 %2538 }
 0x1da   : > { %v2692_v32 = vmul.f32 %v2539_v6, %v2467_v29  ;;  %v1371_v23 = vpop.f32.mrf.mxu1  ;;  %v2245_v29 = vmul.f32 %v7425_v22, %v9430_v44  ;;  %v5661_v22 = vld [vmem:[%s9287_s1 + $0x590] sm:$0xff] }
 0x1db   : > { %v7631_v11 = vadd.f32 %v1508_v26, %v1371_v23  ;;  %v6084_v26 = vld [vmem:[%s9290_s4 + $0x1f8] sm:$0xff] }
 0x1dc   : > { %v2723_v12 = vpack.c.bf16 %v2692_v32, %v2691_v39  ;;  %v6092_v32 = vld [vmem:[%s9290_s4 + $0x238] sm:$0xff]  ;;  %v9431_v39 = vld [vmem:[#allocation10_spill] sm:$0xff]  ;;  %4181 = vmatpush.bf16.msra.mxu0 %v6084_v26 }
 0x1dd   : > { %9428 = vst [vmem:[#allocation4_spill] sm:$0xff] %v7631_v11  ;;  %3072 = vperm.xlu2 %6137, %v5659_v2   ;;  %v2244_v23 = vmul.f32 %v7427_v34, %v9431_v39  ;;  %4640 = vmatpush.bf16.msra.mxu1 %v6092_v32  ;;  %v5662_v2 = vld [vmem:[%s9287_s1 + $0x598] sm:$0xff]  ;;  %v5660_v34 = vld [vmem:[%s9287_s1 + $0x588] sm:$0xff]  ;;  %v2469_v39 = vld [vmem:[#allocation2 + $0x30] sm:$0xff] }
 0x1de   : > { %2812 = vmatmul.bf16.vlgmr.msrb.gmra.mxu1 %v2723_v12  ;;  %3067 = vperm.xlu1 %6136, %v5658_v19  }
 0x1df   : > { %3062 = vperm.xlu0 %6135, %v5657_v48   ;;  %v7647_v6 = vpop.permute.xlu2 %2608  ;;  %1542 = vmatmul.bf16.gmra.mxu3 %v967_v13  ;;  %v2270_v19 = vpack.c.bf16 %v2245_v29, %v2244_v23  ;;  %v1548_v48 = vld [vmem:[#allocation2 + $0x9] sm:$0xff]  ;;  %v2693_v13 = vmul.f32 %v2544_v51, %v2468_v42  ;;  %v1549_v29 = vld [vmem:[#allocation2 + $0x11] sm:$0xff]  ;;  %v2694_v23 = vmul.f32 %v7540_v5, %v2469_v39  ;;  %v5663_v5 = vld [vmem:[%s9287_s1 + $0x5a0] sm:$0xff] }
 0x1e0   : > { %v7656_v11 = vpop.permute.xlu1 %2558  ;;  %v1773_v44 = vmul.f32 %v6998_v40, %v1548_v48  ;;  %v5664_v40 = vld [vmem:[%s9287_s1 + $0x5a8] sm:$0xff] }
 0x1e1   : > { %v2554_v12 = vpop.permute.xlu0 %2553  ;;  %v2724_v48 = vpack.c.bf16 %v2694_v23, %v2693_v13  ;;  %v9436_v13 = vld [vmem:[#allocation14_spill] sm:$0xff] }
 0x1e2   : > { %v7658_v47 = vpop.f32.mrf.mxu1  ;;  %v2246_v23 = vmul.f32 %v7341_v21, %v9436_v13  ;;  %v6065_v21 = vld [vmem:[%s9290_s4 + $0x160] sm:$0xff]  ;;  %v2470_v13 = vld [vmem:[#allocation2 + $0x38] sm:$0xff] }
 0x1e3   : > { %9432 = vst [vmem:[#allocation5_spill] sm:$0xff] %v7658_v47  ;;  %3266 = vmatpush.bf16.msrb.mxu2 %v6065_v21 }
 0x1e5   : > { %3087 = vperm.xlu2 %6137, %v5662_v2   ;;  %v5665_v2 = vld [vmem:[%s9287_s1 + $0x5b0] sm:$0xff] }
 0x1e6   : > { %2383 = vmatmul.bf16.gmra.mxu0 %v2270_v19  ;;  %3082 = vperm.xlu1 %6136, %v5661_v22   ;;  %v9433_v22 = vld [vmem:[#allocation7_spill] sm:$0xff] }
 0x1e7   : > { %3077 = vperm.xlu0 %6135, %v5660_v34   ;;  %v7669_v26 = vpop.permute.xlu2 %2623  ;;  %v1774_v19 = vmul.f32 %v9433_v22, %v1549_v29  ;;  %v7681_v34 = vpop.f32.mrf.mxu2 }
 0x1e8   : > { %v7671_v32 = vpop.permute.xlu1 %2573  ;;  %9434 = vst [vmem:[#allocation12_spill] sm:$0xff] %v7681_v34  ;;  %v2481_v34 = vld [vmem:[#allocation2 + $0x90] sm:$0xff] }
 0x1e9   : > { %v7674_v47 = vpop.permute.xlu0 %2568  ;;  %v1805_v42 = vpack.c.bf16 %v1774_v19, %v1773_v44  ;;  %v5668_v44 = vld [vmem:[%s9287_s1 + $0x5c8] sm:$0xff]  ;;  %v5667_v19 = vld [vmem:[%s9287_s1 + $0x5c0] sm:$0xff] }
 0x1ea   : > { %v1376_v58 = vpop.f32.mrf.mxu1 }
 0x1eb   : > { %v7683_v51 = vadd.f32 %v1513_v54, %v1376_v58  ;;  %v2247_v58 = vmul.f32 %v7459_v17, %v7028_v52  ;;  %v5666_v17 = vld [vmem:[%s9287_s1 + $0x5b8] sm:$0xff] }
 0x1ed   : > { %9435 = vst [vmem:[#allocation10_spill] sm:$0xff] %v7683_v51  ;;  %3102 = vperm.xlu2 %6137, %v5665_v2   ;;  %v2271_v52 = vpack.c.bf16 %v2247_v58, %v2246_v23  ;;  %v1551_v23 = vld [vmem:[#allocation2 + $0x21] sm:$0xff]  ;;  %v2695_v51 = vmul.f32 %v2554_v12, %v2470_v13 }
 0x1ee   : > { %2817 = vmatmul.bf16.gmra.mxu1 %v2724_v48  ;;  %3097 = vperm.xlu1 %6136, %v5664_v40   ;;  %v6075_v40 = vld [vmem:[%s9290_s4 + $0x1b0] sm:$0xff]  ;;  %v1776_v38 = vmul.f32 %v9438_v43, %v1551_v23  ;;  %v2483_v23 = vld [vmem:[#allocation2 + $0xa0] sm:$0xff] }
 0x1ef   : > { %3092 = vperm.xlu0 %6135, %v5663_v5   ;;  %v7691_v39 = vpop.permute.xlu2 %2638  ;;  %1894 = vmatmul.bf16.vlgmr.msrb.gmra.mxu3 %v1805_v42  ;;  %v1518_v48 = vpop.f32.mrf.mxu2  ;;  %v1550_v5 = vld [vmem:[#allocation2 + $0x19] sm:$0xff] }
 0x1f0   : > { %v7695_v54 = vpop.permute.xlu1 %2588  ;;  %v2471_v42 = vld [vmem:[#allocation2 + $0x40] sm:$0xff]  ;;  %3723 = vmatpush.bf16.msra.mxu3 %v6075_v40 }
 0x1f1   : > { %v7697_v29 = vpop.permute.xlu0 %2583  ;;  %v7706_v2 = vpop.f32.mrf.mxu3 }
 0x1f2   : > { %v7701_v22 = vpop.f32.mrf.mxu1 }
 0x1f3   : > { %9437 = vst [vmem:[#allocation7_spill] sm:$0xff] %v7701_v22  ;;  %v2696_v22 = vmul.f32 %v7656_v11, %v2471_v42  ;;  %v5671_v11 = vld [vmem:[%s9287_s1 + $0x5e0] sm:$0xff] }
 0x1f5   : > { %3117 = vperm.xlu2 %6137, %v5668_v44   ;;  %v9439_v44 = vld [vmem:[#allocation17_spill] sm:$0xff] }
 0x1f6   : > { %2388 = vmatmul.bf16.gmra.mxu0 %v2271_v52  ;;  %3112 = vperm.xlu1 %6136, %v5667_v19   ;;  %v1775_v52 = vmul.f32 %v9439_v44, %v1550_v5  ;;  %v7726_v19 = vmul.f32 %v7647_v6, %v2481_v34  ;;  %v5670_v6 = vld [vmem:[%s9287_s1 + $0x5d8] sm:$0xff]  ;;  %v6083_v34 = vld [vmem:[%s9290_s4 + $0x1f0] sm:$0xff] }
 0x1f7   : > { %3107 = vperm.xlu0 %6135, %v5666_v17   ;;  %v7720_v58 = vpop.permute.xlu2 %2653  ;;  %v7753_v42 = vpop.f32.mrf.mxu2  ;;  %4182 = vmatpush.bf16.msra.mxu0 %v6083_v34  ;;  %v5673_v34 = vld [vmem:[%s9287_s1 + $0x5f0] sm:$0xff] }
 0x1f8   : > { %v2604_v10 = vpop.permute.xlu1 %2603  ;;  %v1806_v5 = vpack.c.bf16 %v1776_v38, %v1775_v52  ;;  %9441 = vst [vmem:[#allocation16_spill] sm:$0xff] %v7753_v42  ;;  %v2248_v38 = vmul.f32 %v7455_v37, %v7084_v62  ;;  %v5674_v62 = vld [vmem:[%s9287_s1 + $0x5f8] sm:$0xff] }
 0x1f9   : > { %v7728_v57 = vmul.f32 %v2604_v10, %v2480_v59  ;;  %v7730_v17 = vpop.permute.xlu0 %2598  ;;  %v7735_v12 = vpop.f32.mrf.mxu3  ;;  %v2725_v10 = vpack.c.bf16 %v2696_v22, %v2695_v51  ;;  %v5669_v59 = vld [vmem:[%s9287_s1 + $0x5d0] sm:$0xff] }
 0x1fa   : > { %v1381_v21 = vpop.f32.mrf.mxu1  ;;  %v6091_v22 = vld [vmem:[%s9290_s4 + $0x230] sm:$0xff] }
 0x1fb   : > { %v7739_v43 = vadd.f32 %v1518_v48, %v1381_v21  ;;  %v6064_v48 = vld [vmem:[%s9290_s4 + $0x158] sm:$0xff]  ;;  %4641 = vmatpush.bf16.msra.mxu1 %v6091_v22  ;;  %v2473_v22 = vld [vmem:[#allocation2 + $0x50] sm:$0xff] }
 0x1fc   : > { %3267 = vmatpush.bf16.msrb.mxu2 %v6064_v48  ;;  %v2482_v21 = vld [vmem:[#allocation2 + $0x98] sm:$0xff]  ;;  %v6063_v48 = vld [vmem:[%s9290_s4 + $0x150] sm:$0xff] }
 0x1fd   : > { %9440 = vst [vmem:[#allocation14_spill] sm:$0xff] %v7739_v43  ;;  %3132 = vperm.xlu2 %6137, %v5671_v11   ;;  %v2249_v11 = vmul.f32 %v7367_v14, %v7095_v31  ;;  %v5672_v14 = vld [vmem:[%s9287_s1 + $0x5e8] sm:$0xff]  ;;  %v2486_v31 = vld [vmem:[#allocation2 + $0xb8] sm:$0xff] }
 0x1fe   : > { %2822 = vmatmul.bf16.gmra.mxu1 %v2725_v10  ;;  %3127 = vperm.xlu1 %6136, %v5670_v6   ;;  %v1552_v43 = vld [vmem:[#allocation2 + $0x29] sm:$0xff] }
 0x1ff   : > { %3122 = vperm.xlu0 %6135, %v5669_v59   ;;  %v7755_v51 = vpop.permute.xlu2 %2668  ;;  %1899 = vmatmul.bf16.gmra.mxu3 %v1806_v5  ;;  %v2272_v5 = vpack.c.bf16 %v2249_v11, %v2248_v38  ;;  %v6062_v38 = vld [vmem:[%s9290_s4 + $0x148] sm:$0xff] }
 0x200   : > { %v2619_v13 = vpop.permute.xlu1 %2618  ;;  %3268 = vmatpush.bf16.msrb.mxu2 %v6063_v48 }
 0x201   : > { %v7762_v44 = vmul.f32 %v2619_v13, %v2483_v23  ;;  %v2614_v52 = vpop.permute.xlu0 %2613  ;;  %v7773_v37 = vpop.f32.mrf.mxu3  ;;  %v1553_v23 = vld [vmem:[#allocation2 + $0x31] sm:$0xff] }
 0x202   : > { %v7766_v6 = vmul.f32 %v2614_v52, %v2482_v21  ;;  %v7768_v10 = vpop.f32.mrf.mxu1  ;;  %v2698_v52 = vmul.f32 %v7674_v47, %v2473_v22  ;;  %v2487_v21 = vld [vmem:[#allocation2 + $0xc0] sm:$0xff]  ;;  %v1778_v40 = vmul.f32 %v7059_v20, %v1553_v23 }
 0x203   : > { %9442 = vst [vmem:[#allocation17_spill] sm:$0xff] %v7768_v10  ;;  %v7775_v59 = vpop.f32.mrf.mxu0  ;;  %v2485_v10 = vld [vmem:[#allocation2 + $0xb0] sm:$0xff]  ;;  %v5803_v20 = vld [vmem:[%s9287_s1 + $0x700] sm:$0xff] }
 0x204   : > { %9443 = vst [vmem:[#allocation60_spill] sm:$0xff] %v7775_v59  ;;  %3269 = vmatpush.bf16.msrb.mxu2 %v6062_v38 }
 0x205   : > { %3147 = vperm.xlu2 %6137, %v5674_v62   ;;  %v2472_v62 = vld [vmem:[#allocation2 + $0x48] sm:$0xff] }
 0x206   : > { %2393 = vmatmul.bf16.gmra.mxu0 %v2272_v5  ;;  %3142 = vperm.xlu1 %6136, %v5673_v34   ;;  %v1523_v5 = vpop.f32.mrf.mxu2  ;;  %v2484_v34 = vld [vmem:[#allocation2 + $0xa8] sm:$0xff]  ;;  %v2697_v59 = vmul.f32 %v7570_v60, %v2472_v62 }
 0x207   : > { %3137 = vperm.xlu0 %6135, %v5672_v14   ;;  %v7788_v13 = vpop.permute.xlu2 %2683  ;;  %v7796_v14 = vmul.f32 %v7691_v39, %v2487_v21  ;;  %v7802_v47 = vmul.f32 %v7669_v26, %v2484_v34  ;;  %v9444_v39 = vld [vmem:[#allocation9_spill] sm:$0xff]  ;;  %v5724_v26 = vld [vmem:[%s9287_s1 + $0x608] sm:$0xff]  ;;  %v2489_v21 = vld [vmem:[#allocation2 + $0xd0] sm:$0xff] }
 0x208   : > { %v2634_v11 = vpop.permute.xlu1 %2633 }
 0x209   : > { %v7798_v42 = vmul.f32 %v2634_v11, %v2486_v31  ;;  %v2629_v48 = vpop.permute.xlu0 %2628  ;;  %v7809_v23 = vpop.f32.mrf.mxu3  ;;  %v1777_v31 = vmul.f32 %v9444_v39, %v1552_v43  ;;  %v5723_v43 = vld [vmem:[%s9287_s1 + $0x600] sm:$0xff] }
 0x20a   : > { %v7804_v22 = vmul.f32 %v2629_v48, %v2485_v10  ;;  %v1386_v25 = vpop.f32.mrf.mxu1  ;;  %v2726_v10 = vpack.c.bf16 %v2698_v52, %v2697_v59  ;;  %v6142_v59 = vld [vmem:[#allocation2 + $0xaf] sm:$0xff]  ;;  %v6143_v52 = vld [vmem:[#allocation2 + $0xa7] sm:$0xff] }
 0x20b   : > { %v7814_v11 = vadd.f32 %v1523_v5, %v1386_v25  ;;  %v7816_v60 = vpop.f32.mrf.mxu0  ;;  %v6061_v25 = vld [vmem:[%s9290_s4 + $0x140] sm:$0xff]  ;;  %v1807_v5 = vpack.c.bf16 %v1778_v40, %v1777_v31  ;;  %v2251_v38 = vmul.f32 %v6142_v59, %v7494_v27  ;;  %v2250_v48 = vmul.f32 %v6143_v52, %v7496_v16  ;;  %v2488_v40 = vld [vmem:[#allocation2 + $0xc8] sm:$0xff]  ;;  %v2493_v52 = vld [vmem:[#allocation2 + $0xf0] sm:$0xff] }
 0x20c   : > { %3270 = vmatpush.bf16.msrb.mxu2 %v6061_v25  ;;  %v5884_v31 = vld [vmem:[%s9287_s1 + $0x808] sm:$0xff]  ;;  %v5883_v27 = vld [vmem:[%s9287_s1 + $0x800] sm:$0xff]  ;;  %v2474_v25 = vld [vmem:[#allocation2 + $0x58] sm:$0xff] }
 0x20d   : > { %9445 = vst [vmem:[#allocation9_spill] sm:$0xff] %v7814_v11  ;;  %3910 = vperm.xlu2 %6137, %v5803_v20   ;;  %v2273_v16 = vpack.c.bf16 %v2251_v38, %v2250_v48  ;;  %v1554_v59 = vld [vmem:[#allocation2 + $0x39] sm:$0xff]  ;;  %v2699_v38 = vmul.f32 %v7671_v32, %v2474_v25 }
 0x20e   : > { %2827 = vmatmul.bf16.gmra.mxu1 %v2726_v10  ;;  %3456 = vperm.xlu1 %6136, %v5724_v26  }
 0x20f   : > { %3451 = vperm.xlu0 %6135, %v5723_v43   ;;  %v7829_v34 = vpop.permute.xlu2 %2997  ;;  %1904 = vmatmul.bf16.gmra.mxu3 %v1807_v5  ;;  %v6074_v43 = vld [vmem:[%s9290_s4 + $0x1a8] sm:$0xff] }
 0x210   : > { %v2649_v39 = vpop.permute.xlu1 %2648  ;;  %3724 = vmatpush.bf16.msra.mxu3 %v6074_v43 }
 0x211   : > { %v7833_v62 = vmul.f32 %v2649_v39, %v2489_v21  ;;  %v2644_v11 = vpop.permute.xlu0 %2643  ;;  %v7840_v26 = vpop.f32.mrf.mxu3  ;;  %v2492_v39 = vld [vmem:[#allocation2 + $0xe8] sm:$0xff]  ;;  %v2475_v21 = vld [vmem:[#allocation2 + $0x60] sm:$0xff] }
 0x212   : > { %v7835_v20 = vmul.f32 %v2644_v11, %v2488_v40  ;;  %v5804_v11 = vld [vmem:[%s9287_s1 + $0x708] sm:$0xff]  ;;  %v1779_v40 = vmul.f32 %v7057_v30, %v1554_v59  ;;  %v2700_v43 = vmul.f32 %v7593_v24, %v2475_v21  ;;  %v5805_v30 = vld [vmem:[%s9287_s1 + $0x710] sm:$0xff]  ;;  %v5726_v24 = vld [vmem:[%s9287_s1 + $0x618] sm:$0xff] }
 0x213   : > { %9446 = vst [vmem:[#allocation61_spill] sm:$0xff] %v7833_v62  ;;  %v7842_v10 = vpop.f32.mrf.mxu0  ;;  %v7860_v62 = vmul.f32 %v7755_v51, %v2493_v52  ;;  %v9453_v51 = vld [vmem:[#allocation11_spill] sm:$0xff]  ;;  %v2495_v52 = vld [vmem:[#allocation2 + $0x100] sm:$0xff] }
 0x214   : > { %9447 = vst [vmem:[#allocation62_spill] sm:$0xff] %v7835_v20  ;;  %v2490_v20 = vld [vmem:[#allocation2 + $0xd8] sm:$0xff]  ;;  %v5725_v21 = vld [vmem:[%s9287_s1 + $0x610] sm:$0xff] }
 0x215   : > { %9448 = vst [vmem:[#allocation63_spill] sm:$0xff] %v7842_v10  ;;  %4374 = vperm.xlu2 %6137, %v5884_v31   ;;  %v7866_v10 = vmul.f32 %v7720_v58, %v2490_v20  ;;  %v2727_v58 = vpack.c.bf16 %v2700_v43, %v2699_v38  ;;  %v6090_v38 = vld [vmem:[%s9290_s4 + $0x228] sm:$0xff] }
 0x216   : > { %2398 = vmatmul.bf16.gmra.mxu0 %v2273_v16  ;;  %4369 = vperm.xlu1 %6136, %v5883_v27   ;;  %9449 = vst [vmem:[#allocation64_spill] sm:$0xff] %v7860_v62  ;;  %v2491_v16 = vld [vmem:[#allocation2 + $0xe0] sm:$0xff] }
 0x217   : > { %3915 = vperm.xlu0 %6135, %v5804_v11   ;;  %v7855_v5 = vpop.permute.xlu2 %3012  ;;  %v1555_v11 = vld [vmem:[#allocation2 + $0x41] sm:$0xff]  ;;  %9451 = vst [vmem:[#allocation66_spill] sm:$0xff] %v7866_v10  ;;  %4642 = vmatpush.bf16.msra.mxu1 %v6090_v38 }
 0x218   : > { %v2664_v48 = vpop.permute.xlu1 %2663  ;;  %v1780_v59 = vmul.f32 %v9453_v51, %v1555_v11  ;;  %v6144_v11 = vld [vmem:[#allocation2 + $0xbf] sm:$0xff] }
 0x219   : > { %v7862_v31 = vmul.f32 %v2664_v48, %v2492_v39  ;;  %v2659_v27 = vpop.permute.xlu0 %2658  ;;  %v7873_v25 = vpop.f32.mrf.mxu3  ;;  %v6082_v39 = vld [vmem:[%s9290_s4 + $0x1e8] sm:$0xff]  ;;  %v2253_v43 = vmul.f32 %v6144_v11, %v7518_v35  ;;  %v2477_v11 = vld [vmem:[#allocation2 + $0x70] sm:$0xff] }
 0x21a   : > { %v7868_v32 = vmul.f32 %v2659_v27, %v2491_v16  ;;  %v1808_v27 = vpack.c.bf16 %v1780_v59, %v1779_v40  ;;  %4183 = vmatpush.bf16.msra.mxu0 %v6082_v39  ;;  %v6145_v59 = vld [vmem:[#allocation2 + $0xb7] sm:$0xff]  ;;  %v2926_v38 = vld [vmem:[#allocation2 + $0x21] sm:$0xff] }
 0x21b   : > { %9450 = vst [vmem:[#allocation65_spill] sm:$0xff] %v7862_v31  ;;  %v7878_v48 = vpop.f32.mrf.mxu0  ;;  %v1556_v31 = vld [vmem:[#allocation2 + $0x49] sm:$0xff] }
 0x21c   : > { %9452 = vst [vmem:[#allocation67_spill] sm:$0xff] %v7868_v32  ;;  %v9457_v32 = vmax.f32 %v7448_v9, 0.0  ;;  %v5727_v9 = vld [vmem:[%s9287_s1 + $0x620] sm:$0xff] }
 0x21d   : > { %3920 = vperm.xlu2 %6137, %v5805_v30   ;;  %v2494_v30 = vld [vmem:[#allocation2 + $0xf8] sm:$0xff] }
 0x21e   : > { %2832 = vmatmul.bf16.gmra.mxu1 %v2727_v58  ;;  %3466 = vperm.xlu1 %6136, %v5726_v24   ;;  %v2252_v24 = vmul.f32 %v6145_v59, %v7394_v63  ;;  %v5806_v63 = vld [vmem:[%s9287_s1 + $0x718] sm:$0xff] }
 0x21f   : > { %3461 = vperm.xlu0 %6135, %v5725_v21   ;;  %v7891_v16 = vpop.permute.xlu2 %3027  ;;  %1909 = vmatmul.bf16.gmra.mxu3 %v1808_v27  ;;  %v5886_v21 = vld [vmem:[%s9287_s1 + $0x818] sm:$0xff] }
 0x220   : > { %v2679_v51 = vpop.permute.xlu1 %2678  ;;  %v2274_v39 = vpack.c.bf16 %v2253_v43, %v2252_v24  ;;  %v1557_v59 = vld [vmem:[#allocation2 + $0x51] sm:$0xff]  ;;  %v2702_v43 = vmul.f32 %v7695_v54, %v2477_v11  ;;  %v5807_v54 = vld [vmem:[%s9287_s1 + $0x720] sm:$0xff] }
 0x221   : > { %v7897_v20 = vmul.f32 %v2679_v51, %v2495_v52  ;;  %v2674_v40 = vpop.permute.xlu0 %2673  ;;  %v7905_v27 = vpop.f32.mrf.mxu3  ;;  %v5885_v52 = vld [vmem:[%s9287_s1 + $0x810] sm:$0xff]  ;;  %v2476_v51 = vld [vmem:[#allocation2 + $0x68] sm:$0xff] }
 0x222   : > { %v7900_v58 = vmul.f32 %v2674_v40, %v2494_v30  ;;  %v2925_v30 = vld [vmem:[#allocation2 + $0x19] sm:$0xff]  ;;  %v2701_v24 = vmul.f32 %v7697_v29, %v2476_v51  ;;  %v2255_v51 = vmul.f32 %v7423_v0, %v7450_v36  ;;  %v7969_v36 = vld [vmem:[#allocation2 + $0x31] sm:$0xff] }
 0x223   : > { %9454 = vst [vmem:[#allocation11_spill] sm:$0xff] %v7897_v20  ;;  %v7907_v35 = vpop.f32.mrf.mxu0  ;;  %v1782_v20 = vmul.f32 %v7091_v46, %v1557_v59  ;;  %v5887_v59 = vld [vmem:[%s9287_s1 + $0x820] sm:$0xff] }
 0x224   : > { %9455 = vst [vmem:[#allocation68_spill] sm:$0xff] %v7900_v58  ;;  %v6073_v0 = vld [vmem:[%s9290_s4 + $0x1a0] sm:$0xff] }
 0x225   : > { %9456 = vst [vmem:[#allocation69_spill] sm:$0xff] %v7907_v35  ;;  %4384 = vperm.xlu2 %6137, %v5886_v21   ;;  %v1781_v21 = vmul.f32 %v7093_v4, %v1556_v31  ;;  %v2728_v31 = vpack.c.bf16 %v2702_v43, %v2701_v24  ;;  %3725 = vmatpush.bf16.msra.mxu3 %v6073_v0 }
 0x226   : > { %2403 = vmatmul.bf16.gmra.mxu0 %v2274_v39  ;;  %4379 = vperm.xlu1 %6136, %v5885_v52   ;;  %v2496_v39 = vld [vmem:[#allocation2 + $0x108] sm:$0xff]  ;;  %v3151_v52 = vmul.f32 %v7829_v34, %v2926_v38 }
 0x227   : > { %3925 = vperm.xlu0 %6135, %v5806_v63   ;;  %v7917_v40 = vpop.permute.xlu2 %3042  ;;  %v7925_v10 = vmul.f32 %v7788_v13, %v2496_v39  ;;  %v5728_v34 = vld [vmem:[%s9287_s1 + $0x628] sm:$0xff]  ;;  %v2479_v39 = vld [vmem:[#allocation2 + $0x80] sm:$0xff] }
 0x228   : > { %v2993_v58 = vpop.permute.xlu1 %2992 }
 0x229   : > { %v3150_v62 = vmul.f32 %v2993_v58, %v2925_v30  ;;  %v2689_v63 = vpop.permute.xlu0 %2688  ;;  %v7934_v29 = vpop.f32.mrf.mxu3  ;;  %v2254_v58 = vmul.f32 %v7516_v61, %v7457_v28  ;;  %v5808_v28 = vld [vmem:[%s9287_s1 + $0x728] sm:$0xff] }
 0x22a   : > { %v7929_v35 = vmul.f32 %v2689_v63, %v9457_v32  ;;  %v1809_v32 = vpack.c.bf16 %v1782_v20, %v1781_v21  ;;  %v5888_v20 = vld [vmem:[%s9287_s1 + $0x828] sm:$0xff] }
 0x22b   : > { %v3182_v46 = vpack.c.bf16 %v3151_v52, %v3150_v62  ;;  %v7936_v4 = vpop.f32.mrf.mxu0  ;;  %v2275_v24 = vpack.c.bf16 %v2255_v51, %v2254_v58  ;;  %v2927_v61 = vld [vmem:[#allocation2 + $0x29] sm:$0xff]  ;;  %v1558_v58 = vld [vmem:[#allocation2 + $0x59] sm:$0xff] }
 0x22d   : > { %3271 = vmatmul.bf16.vlgmr.msrb.gmra.mxu2 %v3182_v46  ;;  %3930 = vperm.xlu2 %6137, %v5807_v54   ;;  %v1559_v54 = vld [vmem:[#allocation2 + $0x61] sm:$0xff]  ;;  %v2704_v46 = vmul.f32 %v7730_v17, %v2479_v39  ;;  %v5730_v17 = vld [vmem:[%s9287_s1 + $0x638] sm:$0xff] }
 0x22e   : > { %2837 = vmatmul.bf16.gmra.mxu1 %v2728_v31  ;;  %3476 = vperm.xlu1 %6136, %v5728_v34   ;;  %v1784_v31 = vmul.f32 %v7127_v53, %v1559_v54  ;;  %v2032_v39 = vld [vmem:[#allocation2 + $0xdf] sm:$0xff]  ;;  %v2256_v54 = vmul.f32 %v7545_v50, %v7512_v1 }
 0x22f   : > { %3471 = vperm.xlu0 %6135, %v5727_v9   ;;  %v7946_v62 = vpop.permute.xlu2 %3057  ;;  %1914 = vmatmul.bf16.gmra.mxu3 %v1809_v32  ;;  %v2478_v9 = vld [vmem:[#allocation2 + $0x78] sm:$0xff]  ;;  %v2930_v1 = vld [vmem:[#allocation2 + $0x41] sm:$0xff] }
 0x230   : > { %v3008_v38 = vpop.permute.xlu1 %3007  ;;  %v2703_v51 = vmul.f32 %v7621_v3, %v2478_v9  ;;  %v5729_v3 = vld [vmem:[%s9287_s1 + $0x630] sm:$0xff]  ;;  %v5890_v9 = vld [vmem:[%s9287_s1 + $0x838] sm:$0xff] }
 0x231   : > { %v3003_v11 = vpop.permute.xlu0 %3002  ;;  %v1528_v30 = vpop.f32.mrf.mxu3  ;;  %v5810_v50 = vld [vmem:[%s9287_s1 + $0x738] sm:$0xff] }
 0x232   : > { %v7959_v43 = vadd.f32 %v1528_v30, %v7706_v2  ;;  %v3153_v2 = vmul.f32 %v3008_v38, %v7969_v36  ;;  %v3152_v52 = vmul.f32 %v3003_v11, %v2927_v61  ;;  %v5809_v38 = vld [vmem:[%s9287_s1 + $0x730] sm:$0xff]  ;;  %v2729_v53 = vpack.c.bf16 %v2704_v46, %v2703_v51 }
 0x233   : > { %v7961_v21 = vpop.f32.mrf.mxu0  ;;  %v5889_v51 = vld [vmem:[%s9287_s1 + $0x830] sm:$0xff] }
 0x234   : > { %9458 = vst [vmem:[#allocation70_spill] sm:$0xff] %v7959_v43  ;;  %v5819_v43 = vld [vmem:[%s9287_s1 + $0x780] sm:$0xff] }
 0x235   : > { %4394 = vperm.xlu2 %6137, %v5888_v20   ;;  %v9459_v20 = vld [vmem:[#allocation13_spill] sm:$0xff] }
 0x236   : > { %2408 = vmatmul.bf16.gmra.mxu0 %v2275_v24  ;;  %4389 = vperm.xlu1 %6136, %v5887_v59   ;;  %v1783_v30 = vmul.f32 %v9459_v20, %v1558_v58  ;;  %v3183_v59 = vpack.c.bf16 %v3153_v2, %v3152_v52  ;;  %v6089_v2 = vld [vmem:[%s9290_s4 + $0x220] sm:$0xff]  ;;  %v2257_v52 = vmul.f32 %v7543_v18, %v2032_v39  ;;  %v1561_v39 = vld [vmem:[#allocation2 + $0x71] sm:$0xff] }
 0x237   : > { %3935 = vperm.xlu0 %6135, %v5808_v28   ;;  %v7972_v63 = vpop.permute.xlu2 %3072  ;;  %v6081_v28 = vld [vmem:[%s9290_s4 + $0x1e0] sm:$0xff]  ;;  %4643 = vmatpush.bf16.msra.mxu1 %v6089_v2 }
 0x238   : > { %v7975_v34 = vpop.permute.xlu1 %3022  ;;  %v1810_v0 = vpack.c.bf16 %v1784_v31, %v1783_v30  ;;  %4184 = vmatpush.bf16.msra.mxu0 %v6081_v28  ;;  %v1560_v30 = vld [vmem:[#allocation2 + $0x69] sm:$0xff] }
 0x239   : > { %v3018_v32 = vpop.permute.xlu0 %3017  ;;  %v1530_v11 = vpop.f32.mrf.mxu3 }
 0x23a   : > { %v7987_v24 = vadd.f32 %v1530_v11, %v7735_v12  ;;  %v3155_v11 = vmul.f32 %v3018_v32, %v2930_v1  ;;  %v5811_v32 = vld [vmem:[%s9287_s1 + $0x740] sm:$0xff] }
 0x23b   : > { %v7995_v61 = vpop.f32.mrf.mxu0 }
 0x23c   : > { %9460 = vst [vmem:[#allocation13_spill] sm:$0xff] %v7987_v24  ;;  %v6146_v24 = vld [vmem:[#allocation2 + $0x28] sm:$0xff] }
 0x23d   : > { %3276 = vmatmul.bf16.gmra.mxu2 %v3183_v59  ;;  %3940 = vperm.xlu2 %6137, %v5809_v38   ;;  %v2276_v38 = vpack.c.bf16 %v2257_v52, %v2256_v54  ;;  %v2929_v59 = vld [vmem:[#allocation2 + $0x39] sm:$0xff]  ;;  %v9463_v52 = vld [vmem:[#allocation15_spill] sm:$0xff] }
 0x23e   : > { %2842 = vmatmul.bf16.gmra.mxu1 %v2729_v53  ;;  %3486 = vperm.xlu1 %6136, %v5730_v17   ;;  %v3154_v28 = vmul.f32 %v7855_v5, %v2929_v59  ;;  %v1786_v54 = vmul.f32 %v9463_v52, %v1561_v39  ;;  %v5731_v5 = vld [vmem:[%s9287_s1 + $0x640] sm:$0xff] }
 0x23f   : > { %3481 = vperm.xlu0 %6135, %v5729_v3   ;;  %v7997_v12 = vpop.permute.xlu2 %3087  ;;  %1919 = vmatmul.bf16.gmra.mxu3 %v1810_v0 }
 0x240   : > { %v8005_v46 = vpop.permute.xlu1 %3037 }
 0x241   : > { %v8007_v31 = vpop.permute.xlu0 %3032  ;;  %v1533_v58 = vpop.f32.mrf.mxu3 }
 0x242   : > { %v8016_v18 = vadd.f32 %v1533_v58, %v7773_v37  ;;  %v9462_v37 = vld [vmem:[#allocation23_spill] sm:$0xff]  ;;  %v5732_v58 = vld [vmem:[%s9287_s1 + $0x648] sm:$0xff] }
 0x243   : > { %v8023_v17 = vpop.f32.mrf.mxu0  ;;  %v1785_v3 = vmul.f32 %v9462_v37, %v1560_v30  ;;  %v2033_v30 = vld [vmem:[#allocation2 + $0xe7] sm:$0xff] }
 0x244   : > { %9461 = vst [vmem:[#allocation71_spill] sm:$0xff] %v8016_v18  ;;  %v2258_v37 = vmul.f32 %v7452_v45, %v2033_v30  ;;  %v5812_v45 = vld [vmem:[%s9287_s1 + $0x748] sm:$0xff] }
 0x245   : > { %4404 = vperm.xlu2 %6137, %v5890_v9   ;;  %v3184_v9 = vpack.c.bf16 %v3155_v11, %v3154_v28  ;;  %v8061_v28 = vpop.f32.mrf.mxu1 }
 0x246   : > { %2413 = vmatmul.bf16.gmra.mxu0 %v2276_v38  ;;  %4399 = vperm.xlu1 %6136, %v5889_v51   ;;  %v1811_v38 = vpack.c.bf16 %v1786_v54, %v1785_v3  ;;  %9466 = vst [vmem:[#allocation15_spill] sm:$0xff] %v8061_v28 }
 0x247   : > { %3945 = vperm.xlu0 %6135, %v5810_v50   ;;  %v8021_v20 = vpop.permute.xlu2 %3102  ;;  %v9465_v50 = vpack.c.bf16 %v7726_v19, %v7728_v57  ;;  %v5892_v57 = vld [vmem:[%s9287_s1 + $0x848] sm:$0xff] }
 0x248   : > { %v8025_v53 = vpop.permute.xlu1 %3052 }
 0x249   : > { %v8029_v0 = vpop.permute.xlu0 %3047  ;;  %v1535_v2 = vpop.f32.mrf.mxu3 }
 0x24a   : > { %v8039_v51 = vadd.f32 %v1535_v2, %v7809_v23  ;;  %v2259_v23 = vmul.f32 %v7574_v41, %v7568_v56  ;;  %v5891_v56 = vld [vmem:[%s9287_s1 + $0x840] sm:$0xff]  ;;  %v2931_v2 = vld [vmem:[#allocation2 + $0x49] sm:$0xff] }
 0x24b   : > { %v8056_v3 = vpop.f32.mrf.mxu0  ;;  %v3156_v52 = vmul.f32 %v7975_v34, %v2931_v2 }
 0x24c   : > { %9464 = vst [vmem:[#allocation23_spill] sm:$0xff] %v8039_v51  ;;  %v2277_v39 = vpack.c.bf16 %v2259_v23, %v2258_v37  ;;  %v2941_v37 = vld [vmem:[#allocation2 + $0x99] sm:$0xff] }
 0x24d   : > { %3281 = vmatmul.bf16.gmra.mxu2 %v3184_v9  ;;  %3950 = vperm.xlu2 %6137, %v5811_v32   ;;  %v6072_v32 = vld [vmem:[%s9290_s4 + $0x198] sm:$0xff]  ;;  %v8084_v34 = vmul.f32 %v7972_v63, %v2941_v37  ;;  %v2260_v37 = vmul.f32 %v7572_v55, %v7623_v33  ;;  %v5893_v55 = vld [vmem:[%s9287_s1 + $0x850] sm:$0xff] }
 0x24e   : > { %2847 = vmatmul.bf16.gmra.mxu1 %v9465_v50  ;;  %3496 = vperm.xlu1 %6136, %v5732_v58   ;;  %v1562_v9 = vld [vmem:[#allocation2 + $0x79] sm:$0xff]  ;;  %v2932_v58 = vld [vmem:[#allocation2 + $0x51] sm:$0xff]  ;;  %v9468_v50 = vld [vmem:[#allocation26_spill] sm:$0xff] }
 0x24f   : > { %3491 = vperm.xlu0 %6135, %v5731_v5   ;;  %v8047_v1 = vpop.permute.xlu2 %3117  ;;  %1924 = vmatmul.bf16.gmra.mxu3 %v1811_v38  ;;  %v1787_v23 = vmul.f32 %v9468_v50, %v1562_v9  ;;  %v3157_v30 = vmul.f32 %v7891_v16, %v2932_v58  ;;  %v5733_v9 = vld [vmem:[%s9287_s1 + $0x650] sm:$0xff]  ;;  %v2953_v51 = vld [vmem:[#allocation2 + $0xf9] sm:$0xff] }
 0x250   : > { %v8051_v11 = vpop.permute.xlu1 %3067  ;;  %3726 = vmatpush.bf16.msra.mxu3 %v6072_v32 }
 0x251   : > { %v8053_v59 = vpop.permute.xlu0 %3062  ;;  %v1538_v19 = vpop.f32.mrf.mxu3  ;;  %v3185_v32 = vpack.c.bf16 %v3157_v30, %v3156_v52  ;;  %v6080_v52 = vld [vmem:[%s9290_s4 + $0x1d8] sm:$0xff] }
 0x252   : > { %v8067_v41 = vadd.f32 %v1538_v19, %v7840_v26  ;;  %v1563_v26 = vld [vmem:[#allocation2 + $0x81] sm:$0xff]  ;;  %v6088_v30 = vld [vmem:[%s9290_s4 + $0x218] sm:$0xff]  ;;  %4185 = vmatpush.bf16.msra.mxu0 %v6080_v52 }
 0x253   : > { %v1788_v38 = vmul.f32 %v7152_v15, %v1563_v26  ;;  %v2942_v19 = vld [vmem:[#allocation2 + $0xa1] sm:$0xff]  ;;  %v5734_v15 = vld [vmem:[%s9287_s1 + $0x658] sm:$0xff]  ;;  %v8099_v26 = vpop.f32.mrf.mxu0  ;;  %4644 = vmatpush.bf16.msra.mxu1 %v6088_v30 }
 0x254   : > { %9467 = vst [vmem:[#allocation72_spill] sm:$0xff] %v8067_v41 }
 0x255   : > { %4414 = vperm.xlu2 %6137, %v5892_v57   ;;  %v1812_v58 = vpack.c.bf16 %v1788_v38, %v1787_v23 }
 0x256   : > { %2418 = vmatmul.bf16.gmra.mxu0 %v2277_v39  ;;  %4409 = vperm.xlu1 %6136, %v5891_v56   ;;  %v5813_v39 = vld [vmem:[%s9287_s1 + $0x750] sm:$0xff] }
 0x257   : > { %3955 = vperm.xlu0 %6135, %v5812_v45   ;;  %v8076_v54 = vpop.permute.xlu2 %3132 }
 0x258   : > { %v8078_v5 = vpop.permute.xlu1 %3082 }
 0x259   : > { %v3078_v57 = vpop.permute.xlu0 %3077  ;;  %v1540_v45 = vpop.f32.mrf.mxu3 }
 0x25a   : > { %v8086_v56 = vmul.f32 %v3078_v57, %v2942_v19  ;;  %v8097_v16 = vadd.f32 %v1540_v45, %v7873_v25  ;;  %v9470_v25 = vpack.c.bf16 %v7762_v44, %v7766_v6  ;;  %v2261_v44 = vmul.f32 %v7490_v7, %v7617_v8  ;;  %v5894_v6 = vld [vmem:[%s9287_s1 + $0x858] sm:$0xff]  ;;  %v6079_v7 = vld [vmem:[%s9290_s4 + $0x1d0] sm:$0xff]  ;;  %v2934_v8 = vld [vmem:[#allocation2 + $0x61] sm:$0xff] }
 0x25b   : > { %v8091_v2 = vpop.f32.mrf.mxu1  ;;  %v5814_v45 = vld [vmem:[%s9287_s1 + $0x758] sm:$0xff]  ;;  %4186 = vmatpush.bf16.msra.mxu0 %v6079_v7  ;;  %v9472_v7 = vld [vmem:[#allocation19_spill] sm:$0xff] }
 0x25c   : > { %9469 = vst [vmem:[#allocation26_spill] sm:$0xff] %v8097_v16 }
 0x25d   : > { %3286 = vmatmul.bf16.gmra.mxu2 %v3185_v32  ;;  %3960 = vperm.xlu2 %6137, %v5813_v39   ;;  %v2278_v39 = vpack.c.bf16 %v2261_v44, %v2260_v37  ;;  %v2933_v32 = vld [vmem:[#allocation2 + $0x59] sm:$0xff]  ;;  %v2947_v44 = vld [vmem:[#allocation2 + $0xc9] sm:$0xff] }
 0x25e   : > { %2852 = vmatmul.bf16.gmra.mxu1 %v9470_v25  ;;  %3506 = vperm.xlu1 %6136, %v5734_v15   ;;  %v8142_v15 = vpop.f32.mrf.mxu0  ;;  %v1565_v25 = vld [vmem:[#allocation2 + $0x91] sm:$0xff] }
 0x25f   : > { %3501 = vperm.xlu0 %6135, %v5733_v9   ;;  %v8112_v50 = vpop.permute.xlu2 %3147  ;;  %1929 = vmatmul.bf16.gmra.mxu3 %v1812_v58  ;;  %v3159_v9 = vmul.f32 %v8005_v46, %v2934_v8  ;;  %v6078_v58 = vld [vmem:[%s9290_s4 + $0x1c8] sm:$0xff]  ;;  %v1790_v37 = vmul.f32 %v7193_v49, %v1565_v25  ;;  %v8155_v46 = vmul.f32 %v8021_v20, %v2947_v44  ;;  %v5735_v44 = vld [vmem:[%s9287_s1 + $0x660] sm:$0xff] }
 0x260   : > { %v8119_v57 = vpop.permute.xlu1 %3097  ;;  %v5736_v49 = vld [vmem:[%s9287_s1 + $0x668] sm:$0xff]  ;;  %4187 = vmatpush.bf16.msra.mxu0 %v6078_v58 }
 0x261   : > { %v8121_v38 = vpop.permute.xlu0 %3092  ;;  %v2037_v58 = vld [vmem:[#allocation2 + $0x107] sm:$0xff] }
 0x262   : > { %v1543_v23 = vpop.f32.mrf.mxu3  ;;  %v9476_v20 = vld [vmem:[#allocation58_spill] sm:$0xff] }
 0x263   : > { %v8128_v19 = vpop.f32.mrf.mxu1  ;;  %v8134_v33 = vadd.f32 %v1543_v23, %v7905_v27  ;;  %v3158_v27 = vmul.f32 %v8007_v31, %v2933_v32  ;;  %v2948_v23 = vld [vmem:[#allocation2 + $0xd1] sm:$0xff]  ;;  %v2262_v63 = vmul.f32 %v9476_v20, %v2037_v58 }
 0x265   : > { %9471 = vst [vmem:[#allocation73_spill] sm:$0xff] %v8134_v33  ;;  %4424 = vperm.xlu2 %6137, %v5894_v6   ;;  %v3186_v32 = vpack.c.bf16 %v3159_v9, %v3158_v27  ;;  %v6077_v9 = vld [vmem:[%s9290_s4 + $0x1c0] sm:$0xff]  ;;  %v6100_v27 = vld [vmem:[%s9292_s6 + $0x38] sm:$0xff] }
 0x266   : > { %2423 = vmatmul.bf16.gmra.mxu0 %v2278_v39  ;;  %4419 = vperm.xlu1 %6136, %v5893_v55   ;;  %v1564_v55 = vld [vmem:[#allocation2 + $0x89] sm:$0xff]  ;;  %v5815_v39 = vld [vmem:[%s9287_s1 + $0x760] sm:$0xff] }
 0x267   : > { %3965 = vperm.xlu0 %6135, %v5814_v45   ;;  %v8146_v52 = vpop.permute.xlu2 %3910  ;;  %v1789_v8 = vmul.f32 %v9472_v7, %v1564_v55  ;;  %4188 = vmatpush.bf16.msra.mxu0 %v6077_v9  ;;  %v5816_v9 = vld [vmem:[%s9287_s1 + $0x768] sm:$0xff] }
 0x268   : > { %v8151_v30 = vpop.permute.xlu1 %3112  ;;  %4913 = vmatpush.bf16.msra.mxu2 %v6100_v27  ;;  %v6071_v27 = vld [vmem:[%s9290_s4 + $0x190] sm:$0xff] }
 0x269   : > { %v3108_v6 = vpop.permute.xlu0 %3107  ;;  %3727 = vmatpush.bf16.msra.mxu3 %v6071_v27 }
 0x26a   : > { %v8157_v31 = vmul.f32 %v3108_v6, %v2948_v23  ;;  %v1545_v45 = vpop.f32.mrf.mxu3  ;;  %v1813_v6 = vpack.c.bf16 %v1790_v37, %v1789_v8  ;;  %v2038_v23 = vld [vmem:[#allocation2 + $0x10f] sm:$0xff] }
 0x26b   : > { %v8163_v13 = vpop.f32.mrf.mxu1  ;;  %v8169_v25 = vadd.f32 %v1545_v45, %v7934_v29  ;;  %v9474_v29 = vpack.c.bf16 %v7804_v22, %v7802_v47  ;;  %v9475_v45 = vld [vmem:[#allocation6_spill] sm:$0xff]  ;;  %v9477_v47 = vld [vmem:[#allocation29_spill] sm:$0xff] }
 0x26c   : > { %v2263_v7 = vmul.f32 %v9475_v45, %v2038_v23  ;;  %v9478_v22 = vld [vmem:[#allocation18_spill] sm:$0xff]  ;;  %v1566_v45 = vld [vmem:[#allocation2 + $0x99] sm:$0xff] }
 0x26d   : > { %9473 = vst [vmem:[#allocation19_spill] sm:$0xff] %v8169_v25  ;;  %3291 = vmatmul.bf16.gmra.mxu2 %v3186_v32  ;;  %3970 = vperm.xlu2 %6137, %v5815_v39   ;;  %v8187_v25 = vpop.f32.mrf.mxu0  ;;  %v1469_v39 = vadd.f32 %v9478_v22, %v9477_v47  ;;  %v2935_v47 = vld [vmem:[#allocation2 + $0x69] sm:$0xff] }
 0x26e   : > { %2857 = vmatmul.bf16.gmra.mxu1 %v9474_v29  ;;  %3516 = vperm.xlu1 %6136, %v5736_v49   ;;  %v5896_v49 = vld [vmem:[%s9287_s1 + $0x868] sm:$0xff]  ;;  %v2279_v23 = vpack.c.bf16 %v2263_v7, %v2262_v63  ;;  %v9479_v29 = vld [vmem:[#allocation60_spill] sm:$0xff]  ;;  %v3160_v41 = vmul.f32 %v7917_v40, %v2935_v47  ;;  %v9487_v47 = vld [vmem:[#allocation21_spill] sm:$0xff] }
 0x26f   : > { %3511 = vperm.xlu0 %6135, %v5735_v44   ;;  %v4375_v55 = vpop.permute.xlu2 %4374  ;;  %1934 = vmatmul.bf16.gmra.mxu3 %v1813_v6 }
 0x270   : > { %v8190_v37 = vmul.f32 %v4375_v55, %v7969_v36  ;;  %v8192_v8 = vpop.permute.xlu1 %3127  ;;  %v5895_v36 = vld [vmem:[%s9287_s1 + $0x860] sm:$0xff]  ;;  %v2936_v55 = vld [vmem:[#allocation2 + $0x71] sm:$0xff] }
 0x271   : > { %v8196_v32 = vpop.permute.xlu0 %3122  ;;  %v3161_v22 = vmul.f32 %v8029_v0, %v2936_v55 }
 0x272   : > { %v1895_v44 = vpop.f32.mrf.mxu3 }
 0x273   : > { %v8201_v20 = vpop.f32.mrf.mxu1  ;;  %v1975_v6 = vadd.f32 %v1895_v44, %v1469_v39  ;;  %v1567_v39 = vld [vmem:[#allocation2 + $0xa1] sm:$0xff]  ;;  %v9480_v44 = vld [vmem:[#allocation28_spill] sm:$0xff] }
 0x274   : > { %v1791_v33 = vmul.f32 %v9480_v44, %v1566_v45  ;;  %v5817_v44 = vld [vmem:[%s9287_s1 + $0x770] sm:$0xff] }
 0x275   : > { %4434 = vperm.xlu2 %6137, %v5896_v49   ;;  %v2434_v58 = vadd.f32 %v9479_v29, %v1975_v6  ;;  %v2956_v49 = vld [vmem:[#allocation2 + $0x111] sm:$0xff]  ;;  %v2955_v6 = vld [vmem:[#allocation2 + $0x109] sm:$0xff]  ;;  %v8231_v55 = vpop.f32.mrf.mxu0 }
 0x276   : > { %2428 = vmatmul.bf16.gmra.mxu0 %v2279_v23  ;;  %4429 = vperm.xlu1 %6136, %v5895_v36   ;;  %v9481_v29 = vld [vmem:[#allocation34_spill] sm:$0xff]  ;;  %v9482_v23 = vld [vmem:[#allocation20_spill] sm:$0xff]  ;;  %v8224_v0 = vmul.f32 %v8112_v50, %v2956_v49  ;;  %v3187_v50 = vpack.c.bf16 %v3161_v22, %v3160_v41  ;;  %v9488_v22 = vpack.c.bf16 %v7796_v14, %v7798_v42 }
 0x277   : > { %3975 = vperm.xlu0 %6135, %v5816_v9   ;;  %v8214_v63 = vpop.permute.xlu2 %3920  ;;  %v8217_v7 = vadd.f32 %v8091_v2, %v2434_v58  ;;  %v1471_v36 = vadd.f32 %v9482_v23, %v9481_v29  ;;  %v2954_v2 = vld [vmem:[#allocation2 + $0x101] sm:$0xff]  ;;  %v8229_v58 = vmul.f32 %v8076_v54, %v2953_v51  ;;  %v1792_v29 = vmul.f32 %v9487_v47, %v1567_v39  ;;  %v5738_v51 = vld [vmem:[%s9287_s1 + $0x678] sm:$0xff]  ;;  %v5737_v23 = vld [vmem:[%s9287_s1 + $0x670] sm:$0xff] }
 0x278   : > { %v3143_v16 = vpop.permute.xlu1 %3142  ;;  %9483 = vst [vmem:[#allocation6_spill] sm:$0xff] %v8224_v0  ;;  %v5898_v42 = vld [vmem:[%s9287_s1 + $0x878] sm:$0xff] }
 0x279   : > { %v8226_v9 = vmul.f32 %v3143_v16, %v2955_v6  ;;  %v3138_v27 = vpop.permute.xlu0 %3137  ;;  %9485 = vst [vmem:[#allocation29_spill] sm:$0xff] %v8229_v58  ;;  %v9495_v6 = vld [vmem:[#allocation32_spill] sm:$0xff] }
 0x27a   : > { %v8233_v45 = vmul.f32 %v3138_v27, %v2954_v2  ;;  %v1897_v40 = vpop.f32.mrf.mxu3  ;;  %v1814_v27 = vpack.c.bf16 %v1792_v29, %v1791_v33 }
 0x27b   : > { %9484 = vst [vmem:[#allocation58_spill] sm:$0xff] %v8226_v9  ;;  %v8241_v49 = vpop.f32.mrf.mxu1  ;;  %v1976_v54 = vadd.f32 %v1897_v40, %v1471_v36  ;;  %v6087_v36 = vld [vmem:[%s9290_s4 + $0x210] sm:$0xff]  ;;  %v9489_v40 = vld [vmem:[#allocation37_spill] sm:$0xff] }
 0x27c   : > { %9486 = vst [vmem:[#allocation18_spill] sm:$0xff] %v8233_v45  ;;  %4645 = vmatpush.bf16.msra.mxu1 %v6087_v36  ;;  %v1569_v36 = vld [vmem:[#allocation2 + $0xb1] sm:$0xff] }
 0x27d   : > { %3296 = vmatmul.bf16.gmra.mxu2 %v3187_v50  ;;  %3980 = vperm.xlu2 %6137, %v5817_v44   ;;  %v2435_v41 = vadd.f32 %v7816_v60, %v1976_v54  ;;  %v5897_v44 = vld [vmem:[%s9287_s1 + $0x870] sm:$0xff]  ;;  %v8274_v29 = vpop.f32.mrf.mxu0  ;;  %v8280_v54 = vld [vmem:[#allocation2 + $0x79] sm:$0xff] }
 0x27e   : > { %2862 = vmatmul.bf16.gmra.mxu1 %v9488_v22  ;;  %3526 = vperm.xlu1 %6136, %v5738_v51   ;;  %v9490_v50 = vld [vmem:[#allocation63_spill] sm:$0xff]  ;;  %9491 = vst [vmem:[#allocation60_spill] sm:$0xff] %v8280_v54  ;;  %v8289_v22 = vld [vmem:[#allocation2 + $0x81] sm:$0xff] }
 0x27f   : > { %3521 = vperm.xlu0 %6135, %v5737_v23   ;;  %v8255_v39 = vpop.permute.xlu2 %4384  ;;  %1939 = vmatmul.bf16.gmra.mxu3 %v1814_v27  ;;  %v8261_v2 = vadd.f32 %v8128_v19, %v2435_v41  ;;  %v5818_v19 = vld [vmem:[%s9287_s1 + $0x778] sm:$0xff]  ;;  %v3162_v23 = vmul.f32 %v8025_v53, %v8280_v54  ;;  %9492 = vst [vmem:[#allocation28_spill] sm:$0xff] %v8289_v22 }
 0x280   : > { %v1794_v53 = vmul.f32 %v9495_v6, %v1569_v36  ;;  %v5740_v6 = vld [vmem:[%s9287_s1 + $0x688] sm:$0xff]  ;;  %v5739_v36 = vld [vmem:[%s9287_s1 + $0x680] sm:$0xff] }
 0x281   : > { %v8263_v33 = vpop.permute.xlu0 %3451 }
 0x282   : > { %v1900_v14 = vpop.f32.mrf.mxu3 }
 0x283   : > { %v8268_v60 = vpop.f32.mrf.mxu1  ;;  %v1977_v47 = vadd.f32 %v1900_v14, %v9489_v40  ;;  %v1568_v14 = vld [vmem:[#allocation2 + $0xa9] sm:$0xff]  ;;  %v9493_v40 = vld [vmem:[#allocation40_spill] sm:$0xff] }
 0x285   : > { %4444 = vperm.xlu2 %6137, %v5898_v42   ;;  %v2436_v51 = vadd.f32 %v9490_v50, %v1977_v47  ;;  %v9494_v42 = vld [vmem:[#allocation25_spill] sm:$0xff]  ;;  %v3163_v47 = vmul.f32 %v7946_v62, %v8289_v22  ;;  %v3844_v50 = vld [vmem:[#allocation2 + $0x30] sm:$0xff] }
 0x286   : > { %4439 = vperm.xlu1 %6136, %v5897_v44   ;;  %v1476_v16 = vadd.f32 %v9494_v42, %v9493_v40 }
 0x287   : > { %3985 = vperm.xlu0 %6135, %v5818_v19   ;;  %v8284_v27 = vpop.permute.xlu2 %3930  ;;  %v8287_v41 = vadd.f32 %v8163_v13, %v2436_v51  ;;  %v9496_v19 = vld [vmem:[#allocation33_spill] sm:$0xff]  ;;  %v4068_v13 = vmul.f32 %v6146_v24, %v8146_v52  ;;  %v3188_v54 = vpack.c.bf16 %v3163_v47, %v3162_v23  ;;  %v6099_v24 = vld [vmem:[%s9292_s6 + $0x30] sm:$0xff] }
 0x288   : > { %v1793_v18 = vmul.f32 %v9496_v19, %v1568_v14  ;;  %v8313_v14 = vpop.f32.mrf.mxu0  ;;  %4914 = vmatpush.bf16.msra.mxu2 %v6099_v24  ;;  %v2939_v24 = vld [vmem:[#allocation2 + $0x89] sm:$0xff] }
 0x289   : > { %v3916_v44 = vpop.permute.xlu0 %3915 }
 0x28a   : > { %v4069_v51 = vmul.f32 %v3916_v44, %v3844_v50  ;;  %v1902_v28 = vpop.f32.mrf.mxu3  ;;  %v1815_v23 = vpack.c.bf16 %v1794_v53, %v1793_v18  ;;  %v8318_v44 = vpop.permute.xlu1 %3456  ;;  %v9500_v53 = vld [vmem:[#allocation44_spill] sm:$0xff] }
 0x28b   : > { %v8301_v40 = vpop.f32.mrf.mxu1  ;;  %v1978_v42 = vadd.f32 %v1902_v28, %v1476_v16  ;;  %v9497_v28 = vld [vmem:[#allocation61_spill] sm:$0xff]  ;;  %v9498_v16 = vld [vmem:[#allocation62_spill] sm:$0xff] }
 0x28c   : > { %v4100_v62 = vpack.c.bf16 %v4069_v51, %v4068_v13  ;;  %v9499_v47 = vpack.c.bf16 %v9497_v28, %v9498_v16  ;;  %v5899_v51 = vld [vmem:[%s9287_s1 + $0x880] sm:$0xff] }
 0x28d   : > { %3301 = vmatmul.bf16.gmra.mxu2 %v3188_v54  ;;  %3990 = vperm.xlu2 %6137, %v5819_v43   ;;  %v2437_v52 = vadd.f32 %v7878_v48, %v1978_v42  ;;  %v5900_v43 = vld [vmem:[%s9287_s1 + $0x888] sm:$0xff] }
 0x28e   : > { %2867 = vmatmul.bf16.gmra.mxu1 %v9499_v47  ;;  %4189 = vmatmul.bf16.vlgmr.msra.gmra.mxu0 %v4100_v62  ;;  %v6070_v42 = vld [vmem:[%s9290_s4 + $0x188] sm:$0xff]  ;;  %v9501_v62 = vld [vmem:[#allocation69_spill] sm:$0xff] }
 0x28f   : > { %3536 = vperm.xlu1 %6136, %v5740_v6   ;;  %3531 = vperm.xlu0 %6135, %v5739_v36   ;;  %v8320_v50 = vpop.permute.xlu2 %4394  ;;  %v8323_v19 = vadd.f32 %v8201_v20, %v2437_v52  ;;  %v5820_v20 = vld [vmem:[%s9287_s1 + $0x788] sm:$0xff]  ;;  %v8343_v36 = vld [vmem:[#allocation2 + $0x91] sm:$0xff] }
 0x290   : > { %1944 = vmatmul.bf16.gmra.mxu3 %v1815_v23  ;;  %9502 = vst [vmem:[#allocation34_spill] sm:$0xff] %v8343_v36  ;;  %v3165_v52 = vmul.f32 %v8051_v11, %v8343_v36  ;;  %v3164_v23 = vmul.f32 %v8053_v59, %v2939_v24  ;;  %v8353_v47 = vpop.f32.mrf.mxu0  ;;  %v3846_v11 = vld [vmem:[#allocation2 + $0x40] sm:$0xff]  ;;  %v9505_v36 = vld [vmem:[#allocation36_spill] sm:$0xff] }
 0x291   : > { %v8325_v48 = vpop.permute.xlu0 %3461  ;;  %3728 = vmatpush.bf16.msra.mxu3 %v6070_v42 }
 0x292   : > { %v1905_v18 = vpop.f32.mrf.mxu3  ;;  %v8357_v42 = vpop.permute.xlu1 %4369  ;;  %v3189_v9 = vpack.c.bf16 %v3165_v52, %v3164_v23  ;;  %v9507_v52 = vld [vmem:[#allocation67_spill] sm:$0xff]  ;;  %v9508_v23 = vld [vmem:[#allocation66_spill] sm:$0xff] }
 0x293   : > { %v8330_v54 = vpop.f32.mrf.mxu1  ;;  %v1979_v13 = vadd.f32 %v1905_v18, %v9500_v53  ;;  %v1571_v18 = vld [vmem:[#allocation2 + $0xc1] sm:$0xff] }
 0x294   : > { %v9503_v53 = vld [vmem:[#allocation45_spill] sm:$0xff]  ;;  %v1796_v59 = vmul.f32 %v9505_v36, %v1571_v18  ;;  %v5742_v36 = vld [vmem:[%s9287_s1 + $0x698] sm:$0xff] }
 0x295   : > { %4454 = vperm.xlu2 %6137, %v5900_v43   ;;  %v2438_v6 = vadd.f32 %v9501_v62, %v1979_v13  ;;  %v1570_v43 = vld [vmem:[#allocation2 + $0xb9] sm:$0xff]  ;;  %v9504_v13 = vld [vmem:[#allocation31_spill] sm:$0xff] }
 0x296   : > { %v1481_v62 = vadd.f32 %v9504_v13, %v9503_v53  ;;  %v9506_v53 = vld [vmem:[#allocation22_spill] sm:$0xff] }
 0x297   : > { %4449 = vperm.xlu1 %6136, %v5899_v51   ;;  %3995 = vperm.xlu0 %6135, %v5820_v20   ;;  %v8348_v28 = vpop.permute.xlu2 %3940  ;;  %v8351_v16 = vadd.f32 %v8241_v49, %v2438_v6  ;;  %v6147_v51 = vld [vmem:[#allocation2 + $0x38] sm:$0xff]  ;;  %v5821_v49 = vld [vmem:[%s9287_s1 + $0x790] sm:$0xff]  ;;  %v1795_v13 = vmul.f32 %v9506_v53, %v1570_v43 }
 0x298   : > { %v4070_v20 = vmul.f32 %v6147_v51, %v8214_v63  ;;  %v5741_v63 = vld [vmem:[%s9287_s1 + $0x690] sm:$0xff] }
 0x299   : > { %v3926_v22 = vpop.permute.xlu0 %3925  ;;  %v1816_v18 = vpack.c.bf16 %v1796_v59, %v1795_v13  ;;  %v1572_v13 = vld [vmem:[#allocation2 + $0xc9] sm:$0xff] }
 0x29a   : > { %v4071_v24 = vmul.f32 %v3926_v22, %v3846_v11  ;;  %v1907_v6 = vpop.f32.mrf.mxu3  ;;  %v9509_v11 = vpack.c.bf16 %v9507_v52, %v9508_v23  ;;  %v8392_v59 = vpop.permute.xlu1 %3466  ;;  %v9515_v52 = vld [vmem:[#allocation48_spill] sm:$0xff]  ;;  %v9516_v23 = vld [vmem:[#allocation41_spill] sm:$0xff] }
 0x29b   : > { %v8364_v0 = vpop.f32.mrf.mxu1  ;;  %v1980_v58 = vadd.f32 %v1907_v6, %v1481_v62  ;;  %v6086_v62 = vld [vmem:[%s9290_s4 + $0x208] sm:$0xff]  ;;  %v5822_v6 = vld [vmem:[%s9287_s1 + $0x798] sm:$0xff] }
 0x29c   : > { %v4101_v45 = vpack.c.bf16 %v4071_v24, %v4070_v20  ;;  %4646 = vmatpush.bf16.msra.mxu1 %v6086_v62  ;;  %v9513_v24 = vld [vmem:[#allocation47_spill] sm:$0xff]  ;;  %v3847_v62 = vld [vmem:[#allocation2 + $0x48] sm:$0xff] }
 0x29d   : > { %3306 = vmatmul.bf16.gmra.mxu2 %v3189_v9  ;;  %4000 = vperm.xlu2 %6137, %v5821_v49   ;;  %v2439_v22 = vadd.f32 %v7936_v4, %v1980_v58  ;;  %v8387_v4 = vpop.f32.mrf.mxu0  ;;  %v5902_v58 = vld [vmem:[%s9287_s1 + $0x898] sm:$0xff] }
 0x29e   : > { %2872 = vmatmul.bf16.gmra.mxu1 %v9509_v11  ;;  %4194 = vmatmul.bf16.gmra.mxu0 %v4101_v45  ;;  %9512 = vst [vmem:[#allocation37_spill] sm:$0xff] %v8387_v4  ;;  %v1486_v11 = vadd.f32 %v9516_v23, %v9515_v52 }
 0x29f   : > { %3546 = vperm.xlu1 %6136, %v5742_v36   ;;  %3541 = vperm.xlu0 %6135, %v5741_v63   ;;  %v8377_v43 = vpop.permute.xlu2 %4404  ;;  %v8383_v51 = vadd.f32 %v8268_v60, %v2439_v22  ;;  %v5901_v60 = vld [vmem:[%s9287_s1 + $0x890] sm:$0xff] }
 0x2a0   : > { %9510 = vst [vmem:[#allocation20_spill] sm:$0xff] %v8377_v43  ;;  %1949 = vmatmul.bf16.gmra.mxu3 %v1816_v18  ;;  %v1573_v36 = vld [vmem:[#allocation2 + $0xd1] sm:$0xff]  ;;  %v8409_v18 = vpop.f32.mrf.mxu2 }
 0x2a1   : > { %v8385_v9 = vpop.permute.xlu0 %3471  ;;  %9514 = vst [vmem:[#allocation63_spill] sm:$0xff] %v8409_v18 }
 0x2a2   : > { %9511 = vst [vmem:[#allocation21_spill] sm:$0xff] %v8385_v9  ;;  %v1910_v45 = vpop.f32.mrf.mxu3  ;;  %v8432_v23 = vpop.permute.xlu1 %4379 }
 0x2a3   : > { %v8394_v20 = vpop.f32.mrf.mxu1  ;;  %v1981_v49 = vadd.f32 %v1910_v45, %v9513_v24  ;;  %v3848_v24 = vld [vmem:[#allocation2 + $0x50] sm:$0xff] }
 0x2a5   : > { %4464 = vperm.xlu2 %6137, %v5902_v58   ;;  %v2440_v53 = vadd.f32 %v7961_v21, %v1981_v49  ;;  %v9517_v58 = vld [vmem:[#allocation35_spill] sm:$0xff]  ;;  %v9518_v21 = vld [vmem:[#allocation24_spill] sm:$0xff]  ;;  %v8421_v4 = vpop.f32.mrf.mxu0 }
 0x2a6   : > { %v1797_v9 = vmul.f32 %v9517_v58, %v1572_v13  ;;  %v1798_v49 = vmul.f32 %v9518_v21, %v1573_v36  ;;  %v5744_v13 = vld [vmem:[%s9287_s1 + $0x6a8] sm:$0xff]  ;;  %v9521_v58 = vld [vmem:[#allocation65_spill] sm:$0xff] }
 0x2a7   : > { %4459 = vperm.xlu1 %6136, %v5901_v60   ;;  %4005 = vperm.xlu0 %6135, %v5822_v6   ;;  %v8404_v63 = vpop.permute.xlu2 %3950  ;;  %v8407_v22 = vadd.f32 %v8301_v40, %v2440_v53  ;;  %v4072_v60 = vmul.f32 %v8284_v27, %v3847_v62  ;;  %v5823_v40 = vld [vmem:[%s9287_s1 + $0x7a0] sm:$0xff]  ;;  %v6098_v36 = vld [vmem:[%s9292_s6 + $0x28] sm:$0xff] }
 0x2a8   : > { %v5743_v27 = vld [vmem:[%s9287_s1 + $0x6a0] sm:$0xff]  ;;  %4915 = vmatpush.bf16.msra.mxu2 %v6098_v36 }
 0x2a9   : > { %v3936_v45 = vpop.permute.xlu0 %3935 }
 0x2aa   : > { %v4073_v6 = vmul.f32 %v3936_v45, %v3848_v24  ;;  %v1912_v53 = vpop.f32.mrf.mxu3  ;;  %v1817_v45 = vpack.c.bf16 %v1798_v49, %v1797_v9  ;;  %v9520_v24 = vld [vmem:[#allocation64_spill] sm:$0xff]  ;;  %v9526_v49 = vld [vmem:[#allocation50_spill] sm:$0xff] }
 0x2ab   : > { %v8419_v43 = vpop.f32.mrf.mxu1  ;;  %v1982_v18 = vadd.f32 %v1912_v53, %v1486_v11  ;;  %v9519_v11 = vpack.c.bf16 %v8086_v56, %v8084_v34  ;;  %v9522_v21 = vpack.c.bf16 %v9520_v24, %v9521_v58  ;;  %v5904_v56 = vld [vmem:[%s9287_s1 + $0x8a8] sm:$0xff]  ;;  %v8470_v24 = vpop.permute.xlu1 %3476 }
 0x2ac   : > { %v4102_v52 = vpack.c.bf16 %v4073_v6, %v4072_v60  ;;  %9528 = vst [vmem:[#allocation61_spill] sm:$0xff] %v8470_v24 }
 0x2ad   : > { %3311 = vmatmul.bf16.gmra.mxu2 %v9519_v11  ;;  %4010 = vperm.xlu2 %6137, %v5823_v40   ;;  %v2441_v62 = vadd.f32 %v7995_v61, %v1982_v18  ;;  %v8467_v36 = vpop.f32.mrf.mxu0  ;;  %v1575_v11 = vld [vmem:[#allocation2 + $0xe1] sm:$0xff] }
 0x2ae   : > { %2877 = vmatmul.bf16.gmra.mxu1 %v9522_v21  ;;  %4199 = vmatmul.bf16.gmra.mxu0 %v4102_v52  ;;  %v5824_v52 = vld [vmem:[%s9287_s1 + $0x7a8] sm:$0xff]  ;;  %9527 = vst [vmem:[#allocation33_spill] sm:$0xff] %v8467_v36  ;;  %v5825_v36 = vld [vmem:[%s9287_s1 + $0x7b0] sm:$0xff] }
 0x2af   : > { %3556 = vperm.xlu1 %6136, %v5744_v13   ;;  %3551 = vperm.xlu0 %6135, %v5743_v27   ;;  %v8441_v60 = vpop.permute.xlu2 %4414  ;;  %v8444_v6 = vadd.f32 %v8330_v54, %v2441_v62  ;;  %v5903_v54 = vld [vmem:[%s9287_s1 + $0x8a0] sm:$0xff]  ;;  %v2943_v27 = vld [vmem:[#allocation2 + $0xa9] sm:$0xff] }
 0x2b0   : > { %9523 = vst [vmem:[#allocation40_spill] sm:$0xff] %v8441_v60  ;;  %v3272_v53 = vpop.f32.mrf.mxu2  ;;  %1954 = vmatmul.bf16.gmra.mxu3 %v1817_v45  ;;  %v1574_v62 = vld [vmem:[#allocation2 + $0xd9] sm:$0xff]  ;;  %v3168_v45 = vmul.f32 %v8078_v5, %v2943_v27  ;;  %v9532_v27 = vld [vmem:[#allocation39_spill] sm:$0xff] }
 0x2b1   : > { %v8446_v34 = vpop.permute.xlu0 %3481  ;;  %v8449_v61 = vadd.f32 %v3272_v53, %v8217_v7  ;;  %v6069_v7 = vld [vmem:[%s9290_s4 + $0x180] sm:$0xff]  ;;  %v2944_v53 = vld [vmem:[#allocation2 + $0xb1] sm:$0xff]  ;;  %v1799_v60 = vmul.f32 %v9532_v27, %v1574_v62 }
 0x2b2   : > { %9524 = vst [vmem:[#allocation25_spill] sm:$0xff] %v8446_v34  ;;  %v1915_v9 = vpop.f32.mrf.mxu3  ;;  %3729 = vmatpush.bf16.msra.mxu3 %v6069_v7  ;;  %v3849_v7 = vld [vmem:[#allocation2 + $0x58] sm:$0xff]  ;;  %v3850_v34 = vld [vmem:[#allocation2 + $0x60] sm:$0xff]  ;;  %v9533_v62 = vld [vmem:[#allocation11_spill] sm:$0xff] }
 0x2b3   : > { %9525 = vst [vmem:[#allocation32_spill] sm:$0xff] %v8449_v61  ;;  %v8454_v18 = vpop.f32.mrf.mxu1  ;;  %v1983_v40 = vadd.f32 %v1915_v9, %v9526_v49  ;;  %v9530_v9 = vld [vmem:[#allocation46_spill] sm:$0xff] }
 0x2b5   : > { %4474 = vperm.xlu2 %6137, %v5904_v56   ;;  %v2442_v13 = vadd.f32 %v8023_v17, %v1983_v40  ;;  %v9529_v17 = vld [vmem:[#allocation51_spill] sm:$0xff]  ;;  %v3169_v40 = vmul.f32 %v7997_v12, %v2944_v53 }
 0x2b6   : > { %v1491_v49 = vadd.f32 %v9530_v9, %v9529_v17 }
 0x2b7   : > { %4469 = vperm.xlu1 %6136, %v5903_v54   ;;  %4015 = vperm.xlu0 %6135, %v5824_v52   ;;  %v8472_v58 = vpop.permute.xlu2 %3960  ;;  %v8475_v21 = vadd.f32 %v8364_v0, %v2442_v13  ;;  %v9531_v54 = vld [vmem:[#allocation38_spill] sm:$0xff]  ;;  %v4074_v0 = vmul.f32 %v8348_v28, %v3849_v7  ;;  %v3191_v9 = vpack.c.bf16 %v3169_v40, %v3168_v45  ;;  %v6085_v28 = vld [vmem:[%s9290_s4 + $0x200] sm:$0xff]  ;;  %v9534_v45 = vld [vmem:[#allocation68_spill] sm:$0xff]  ;;  %v8509_v7 = vpop.f32.mrf.mxu0 }
 0x2b8   : > { %v3274_v56 = vpop.f32.mrf.mxu2  ;;  %v1800_v52 = vmul.f32 %v9531_v54, %v1575_v11  ;;  %v5745_v11 = vld [vmem:[%s9287_s1 + $0x6b0] sm:$0xff]  ;;  %4647 = vmatpush.bf16.msra.mxu1 %v6085_v28 }
 0x2b9   : > { %v3946_v61 = vpop.permute.xlu0 %3945  ;;  %v8481_v5 = vadd.f32 %v3274_v56, %v8261_v2  ;;  %v5746_v2 = vld [vmem:[%s9287_s1 + $0x6b8] sm:$0xff]  ;;  %v9535_v56 = vpack.c.bf16 %v9533_v62, %v9534_v45  ;;  %v1576_v45 = vld [vmem:[#allocation2 + $0xe9] sm:$0xff] }
 0x2ba   : > { %v4075_v13 = vmul.f32 %v3946_v61, %v3850_v34  ;;  %v1917_v17 = vpop.f32.mrf.mxu3  ;;  %v1818_v61 = vpack.c.bf16 %v1800_v52, %v1799_v60 }
 0x2bb   : > { %v8489_v12 = vpop.f32.mrf.mxu1  ;;  %v1984_v53 = vadd.f32 %v1917_v17, %v1491_v49  ;;  %v5826_v17 = vld [vmem:[%s9287_s1 + $0x7b8] sm:$0xff] }
 0x2bc   : > { %v4103_v24 = vpack.c.bf16 %v4075_v13, %v4074_v0  ;;  %v5905_v13 = vld [vmem:[%s9287_s1 + $0x8b0] sm:$0xff] }
 0x2bd   : > { %3316 = vmatmul.bf16.gmra.mxu2 %v3191_v9  ;;  %4020 = vperm.xlu2 %6137, %v5825_v36   ;;  %v2443_v34 = vadd.f32 %v8056_v3, %v1984_v53  ;;  %v8511_v36 = vpop.permute.xlu1 %4389  ;;  %v2946_v9 = vld [vmem:[#allocation2 + $0xc1] sm:$0xff]  ;;  %v2945_v53 = vld [vmem:[#allocation2 + $0xb9] sm:$0xff] }
 0x2be   : > { %2882 = vmatmul.bf16.gmra.mxu1 %v9535_v56  ;;  %4204 = vmatmul.bf16.gmra.mxu0 %v4103_v24  ;;  %v5906_v24 = vld [vmem:[%s9287_s1 + $0x8b8] sm:$0xff]  ;;  %v3170_v28 = vmul.f32 %v8121_v38, %v2945_v53  ;;  %v9538_v56 = vld [vmem:[#allocation54_spill] sm:$0xff] }
 0x2bf   : > { %3566 = vperm.xlu1 %6136, %v5746_v2   ;;  %3561 = vperm.xlu0 %6135, %v5745_v11   ;;  %v8504_v49 = vpop.permute.xlu2 %4424  ;;  %v8507_v40 = vadd.f32 %v8394_v20, %v2443_v34  ;;  %v9537_v20 = vld [vmem:[#allocation52_spill] sm:$0xff]  ;;  %v3171_v11 = vmul.f32 %v8119_v57, %v2946_v9  ;;  %v9541_v57 = vld [vmem:[#allocation43_spill] sm:$0xff] }
 0x2c0   : > { %v3277_v54 = vpop.f32.mrf.mxu2  ;;  %1959 = vmatmul.bf16.gmra.mxu3 %v1818_v61  ;;  %v1577_v2 = vld [vmem:[#allocation2 + $0xf1] sm:$0xff] }
 0x2c1   : > { %9536 = vst [vmem:[#allocation62_spill] sm:$0xff] %v8507_v40  ;;  %v8513_v3 = vpop.permute.xlu0 %3491  ;;  %v8516_v60 = vadd.f32 %v3277_v54, %v8287_v41  ;;  %v9539_v54 = vld [vmem:[#allocation49_spill] sm:$0xff]  ;;  %v1802_v38 = vmul.f32 %v9541_v57, %v1577_v2  ;;  %v3192_v53 = vpack.c.bf16 %v3171_v11, %v3170_v28 }
 0x2c2   : > { %v1920_v52 = vpop.f32.mrf.mxu3  ;;  %v5747_v2 = vld [vmem:[%s9287_s1 + $0x6c0] sm:$0xff] }
 0x2c3   : > { %v8521_v27 = vpop.f32.mrf.mxu1  ;;  %v1985_v0 = vadd.f32 %v1920_v52, %v9537_v20  ;;  %v3852_v20 = vld [vmem:[#allocation2 + $0x70] sm:$0xff]  ;;  %v6097_v11 = vld [vmem:[%s9292_s6 + $0x20] sm:$0xff] }
 0x2c4   : > { %4916 = vmatpush.bf16.msra.mxu2 %v6097_v11  ;;  %v1579_v11 = vld [vmem:[#allocation2 + $0x101] sm:$0xff] }
 0x2c5   : > { %4484 = vperm.xlu2 %6137, %v5906_v24   ;;  %v2444_v41 = vadd.f32 %v8099_v26, %v1985_v0  ;;  %v1496_v24 = vadd.f32 %v9539_v54, %v9538_v56  ;;  %v3851_v26 = vld [vmem:[#allocation2 + $0x68] sm:$0xff]  ;;  %v8550_v56 = vpop.permute.xlu1 %3486 }
 0x2c7   : > { %4479 = vperm.xlu1 %6136, %v5905_v13   ;;  %4025 = vperm.xlu0 %6135, %v5826_v17   ;;  %v8533_v34 = vpop.permute.xlu2 %3970  ;;  %v8536_v61 = vadd.f32 %v8419_v43, %v2444_v41  ;;  %v4076_v13 = vmul.f32 %v8404_v63, %v3851_v26  ;;  %v8545_v17 = vpop.f32.mrf.mxu0  ;;  %v5827_v43 = vld [vmem:[%s9287_s1 + $0x7c0] sm:$0xff]  ;;  %v5748_v63 = vld [vmem:[%s9287_s1 + $0x6c8] sm:$0xff] }
 0x2c8   : > { %v3279_v62 = vpop.f32.mrf.mxu2 }
 0x2c9   : > { %v3956_v52 = vpop.permute.xlu0 %3955  ;;  %v8541_v0 = vadd.f32 %v3279_v62, %v8323_v19  ;;  %v9542_v19 = vld [vmem:[#allocation27_spill] sm:$0xff] }
 0x2ca   : > { %v4077_v9 = vmul.f32 %v3956_v52, %v3852_v20  ;;  %v1922_v41 = vpop.f32.mrf.mxu3  ;;  %v1801_v62 = vmul.f32 %v9542_v19, %v1576_v45  ;;  %v9543_v45 = vpack.c.bf16 %v7929_v35, %v7925_v10  ;;  %v5908_v10 = vld [vmem:[%s9287_s1 + $0x8c8] sm:$0xff] }
 0x2cb   : > { %9540 = vst [vmem:[#allocation44_spill] sm:$0xff] %v8541_v0  ;;  %v8552_v54 = vpop.f32.mrf.mxu1  ;;  %v1986_v40 = vadd.f32 %v1922_v41, %v1496_v24  ;;  %v1578_v41 = vld [vmem:[#allocation2 + $0xf9] sm:$0xff] }
 0x2cc   : > { %v4104_v0 = vpack.c.bf16 %v4077_v9, %v4076_v13  ;;  %v1819_v24 = vpack.c.bf16 %v1802_v38, %v1801_v62  ;;  %v6148_v62 = vld [vmem:[#allocation2 + $0x29] sm:$0xff] }
 0x2cd   : > { %3321 = vmatmul.bf16.gmra.mxu2 %v3192_v53  ;;  %4030 = vperm.xlu2 %6137, %v5827_v43   ;;  %v2445_v28 = vadd.f32 %v8142_v15, %v1986_v40  ;;  %v8592_v9 = vpop.permute.xlu1 %4399 }
 0x2ce   : > { %2887 = vmatmul.bf16.gmra.mxu1 %v9543_v45  ;;  %4209 = vmatmul.bf16.gmra.mxu0 %v4104_v0  ;;  %v9546_v0 = vld [vmem:[#allocation55_spill] sm:$0xff] }
 0x2cf   : > { %3576 = vperm.xlu1 %6136, %v5748_v63   ;;  %3571 = vperm.xlu0 %6135, %v5747_v2   ;;  %v8568_v26 = vpop.permute.xlu2 %4434  ;;  %v8571_v52 = vadd.f32 %v8454_v18, %v2445_v28  ;;  %v8584_v13 = vpop.f32.mrf.mxu0  ;;  %v5907_v18 = vld [vmem:[%s9287_s1 + $0x8c0] sm:$0xff]  ;;  %v4527_v63 = vmul.f32 %v6148_v62, %v8357_v42  ;;  %v9547_v28 = vld [vmem:[#allocation56_spill] sm:$0xff]  ;;  %v5829_v42 = vld [vmem:[%s9287_s1 + $0x7d0] sm:$0xff] }
 0x2d0   : > { %v3282_v20 = vpop.f32.mrf.mxu2  ;;  %1964 = vmatmul.bf16.gmra.mxu3 %v1819_v24  ;;  %v9548_v24 = vld [vmem:[#allocation53_spill] sm:$0xff] }
 0x2d1   : > { %9544 = vst [vmem:[#allocation69_spill] sm:$0xff] %v8571_v52  ;;  %v8573_v57 = vpop.permute.xlu0 %3501  ;;  %v8576_v15 = vadd.f32 %v3282_v20, %v8351_v16  ;;  %v5828_v16 = vld [vmem:[%s9287_s1 + $0x7c8] sm:$0xff]  ;;  %v1501_v45 = vadd.f32 %v9548_v24, %v9547_v28  ;;  %v3853_v20 = vld [vmem:[#allocation2 + $0x78] sm:$0xff]  ;;  %v4559_v52 = vpack.c.bf16 %v8190_v37, %v4527_v63 }
 0x2d2   : > { %v1925_v35 = vpop.f32.mrf.mxu3  ;;  %v9550_v28 = vld [vmem:[#allocation30_spill] sm:$0xff] }
 0x2d3   : > { %9545 = vst [vmem:[#allocation45_spill] sm:$0xff] %v8576_v15  ;;  %v8581_v40 = vpop.f32.mrf.mxu1  ;;  %v1987_v38 = vadd.f32 %v1925_v35, %v9546_v0  ;;  %v3854_v35 = vld [vmem:[#allocation2 + $0x80] sm:$0xff]  ;;  %v9549_v0 = vld [vmem:[#allocation42_spill] sm:$0xff]  ;;  %v1804_v24 = vmul.f32 %v9550_v28, %v1579_v11 }
 0x2d4   : > { %v6149_v28 = vld [vmem:[#allocation2 + $0x39] sm:$0xff] }
 0x2d5   : > { %4494 = vperm.xlu2 %6137, %v5908_v10   ;;  %v2446_v43 = vadd.f32 %v8187_v25, %v1987_v38  ;;  %v1803_v38 = vmul.f32 %v9549_v0, %v1578_v41  ;;  %v9551_v41 = vpack.c.bf16 %v8157_v31, %v8155_v46  ;;  %v8627_v37 = vpop.permute.xlu1 %3496 }
 0x2d7   : > { %4489 = vperm.xlu1 %6136, %v5907_v18   ;;  %4035 = vperm.xlu0 %6135, %v5828_v16   ;;  %v8595_v53 = vpop.permute.xlu2 %3980  ;;  %v8598_v19 = vadd.f32 %v8489_v12, %v2446_v43  ;;  %v4078_v18 = vmul.f32 %v8472_v58, %v3853_v20  ;;  %v5749_v58 = vld [vmem:[%s9287_s1 + $0x6d0] sm:$0xff]  ;;  %v8625_v11 = vpop.f32.mrf.mxu0 }
 0x2d8   : > { %v3284_v2 = vpop.f32.mrf.mxu2 }
 0x2d9   : > { %v3966_v10 = vpop.permute.xlu0 %3965  ;;  %v8604_v25 = vadd.f32 %v3284_v2, %v8383_v51  ;;  %v5750_v51 = vld [vmem:[%s9287_s1 + $0x6d8] sm:$0xff] }
 0x2da   : > { %v4079_v12 = vmul.f32 %v3966_v10, %v3854_v35  ;;  %v1927_v16 = vpop.f32.mrf.mxu3  ;;  %v9553_v35 = vld [vmem:[#allocation3_spill] sm:$0xff] }
 0x2db   : > { %v8611_v43 = vpop.f32.mrf.mxu1  ;;  %v1988_v62 = vadd.f32 %v1927_v16, %v1501_v45  ;;  %v1820_v45 = vpack.c.bf16 %v1804_v24, %v1803_v38  ;;  %v5830_v38 = vld [vmem:[%s9287_s1 + $0x7d8] sm:$0xff]  ;;  %v2950_v16 = vld [vmem:[#allocation2 + $0xe1] sm:$0xff]  ;;  %v4529_v24 = vmul.f32 %v6149_v28, %v8432_v23 }
 0x2dc   : > { %v4105_v15 = vpack.c.bf16 %v4079_v12, %v4078_v18  ;;  %v2949_v18 = vld [vmem:[#allocation2 + $0xd9] sm:$0xff] }
 0x2dd   : > { %3326 = vmatmul.bf16.gmra.mxu2 %v9551_v41  ;;  %4040 = vperm.xlu2 %6137, %v5829_v42   ;;  %v2447_v2 = vadd.f32 %v8231_v55, %v1988_v62  ;;  %v5910_v55 = vld [vmem:[%s9287_s1 + $0x8d8] sm:$0xff]  ;;  %v3174_v12 = vmul.f32 %v8151_v30, %v2949_v18  ;;  %v3384_v62 = vld [vmem:[#allocation2 + $0x27] sm:$0xff] }
 0x2de   : > { %4214 = vmatmul.bf16.gmra.mxu0 %v4105_v15  ;;  %4648 = vmatmul.bf16.vlgmr.msra.gmra.mxu1 %v4559_v52  ;;  %v9554_v41 = vld [vmem:[#allocation8_spill] sm:$0xff] }
 0x2df   : > { %3586 = vperm.xlu1 %6136, %v5750_v51   ;;  %3581 = vperm.xlu0 %6135, %v5749_v58   ;;  %v8630_v63 = vadd.f32 %v8521_v27, %v2447_v2  ;;  %v8632_v10 = vpop.permute.xlu2 %4444  ;;  %v5909_v27 = vld [vmem:[%s9287_s1 + $0x8d0] sm:$0xff]  ;;  %v8657_v51 = vpop.f32.mrf.mxu0  ;;  %v9555_v2 = vld [vmem:[#allocation57_spill] sm:$0xff] }
 0x2e0   : > { %v3287_v20 = vpop.f32.mrf.mxu2  ;;  %1969 = vmatmul.bf16.gmra.mxu3 %v1820_v45  ;;  %v1506_v45 = vadd.f32 %v9555_v2, %v9554_v41 }
 0x2e1   : > { %9552 = vst [vmem:[#allocation31_spill] sm:$0xff] %v8630_v63  ;;  %v8634_v46 = vpop.permute.xlu0 %3511  ;;  %v8637_v31 = vadd.f32 %v3287_v20, %v8407_v22  ;;  %v6150_v20 = vld [vmem:[#allocation2 + $0x41] sm:$0xff] }
 0x2e2   : > { %v1930_v52 = vpop.f32.mrf.mxu3  ;;  %v4530_v30 = vmul.f32 %v6150_v20, %v8255_v39  ;;  %v9571_v63 = vld [vmem:[#allocation29_spill] sm:$0xff] }
 0x2e3   : > { %v8642_v15 = vpop.f32.mrf.mxu1  ;;  %v1989_v0 = vadd.f32 %v1930_v52, %v9553_v35  ;;  %v3855_v52 = vld [vmem:[#allocation2 + $0x88] sm:$0xff] }
 0x2e5   : > { %4504 = vperm.xlu2 %6137, %v5910_v55   ;;  %v2448_v22 = vadd.f32 %v8274_v29, %v1989_v0  ;;  %v3175_v29 = vmul.f32 %v8047_v1, %v2950_v16  ;;  %v3385_v55 = vld [vmem:[#allocation2 + $0x2f] sm:$0xff]  ;;  %v5831_v1 = vld [vmem:[%s9287_s1 + $0x7e0] sm:$0xff] }
 0x2e6   : > { %v3856_v0 = vld [vmem:[#allocation2 + $0x90] sm:$0xff]  ;;  %v3610_v23 = vmul.f32 %v8318_v44, %v3385_v55  ;;  %v5751_v44 = vld [vmem:[%s9287_s1 + $0x6e0] sm:$0xff] }
 0x2e7   : > { %4499 = vperm.xlu1 %6136, %v5909_v27   ;;  %4045 = vperm.xlu0 %6135, %v5830_v38   ;;  %v8654_v42 = vadd.f32 %v8552_v54, %v2448_v22  ;;  %v8663_v54 = vpop.permute.xlu1 %4409  ;;  %v3609_v38 = vmul.f32 %v8263_v33, %v3384_v62  ;;  %v4080_v22 = vmul.f32 %v8533_v34, %v3855_v52  ;;  %v8674_v28 = vpop.permute.xlu2 %3990  ;;  %v5752_v33 = vld [vmem:[%s9287_s1 + $0x6e8] sm:$0xff]  ;;  %v6096_v34 = vld [vmem:[%s9292_s6 + $0x18] sm:$0xff] }
 0x2e8   : > { %v3289_v58 = vpop.f32.mrf.mxu2  ;;  %v3194_v16 = vpack.c.bf16 %v3175_v29, %v3174_v12  ;;  %4917 = vmatpush.bf16.msra.mxu2 %v6096_v34  ;;  %v9558_v34 = vld [vmem:[#allocation5_spill] sm:$0xff] }
 0x2e9   : > { %v3976_v35 = vpop.permute.xlu0 %3975  ;;  %v8666_v27 = vadd.f32 %v3289_v58, %v8444_v6  ;;  %v4560_v6 = vpack.c.bf16 %v4530_v30, %v4529_v24  ;;  %v3641_v62 = vpack.c.bf16 %v3610_v23, %v3609_v38  ;;  %v8696_v30 = vpop.f32.mrf.mxu0  ;;  %v5911_v23 = vld [vmem:[%s9287_s1 + $0x8e0] sm:$0xff] }
 0x2ea   : > { %v4081_v18 = vmul.f32 %v3976_v35, %v3856_v0  ;;  %v1932_v39 = vpop.f32.mrf.mxu3 }
 0x2eb   : > { %v8676_v41 = vpop.f32.mrf.mxu1  ;;  %v1990_v2 = vadd.f32 %v1932_v39, %v1506_v45 }
 0x2ec   : > { %v4106_v58 = vpack.c.bf16 %v4081_v18, %v4080_v22  ;;  %v2952_v18 = vld [vmem:[#allocation2 + $0xf1] sm:$0xff] }
 0x2ed   : > { %3331 = vmatmul.bf16.gmra.mxu2 %v3194_v16  ;;  %4050 = vperm.xlu2 %6137, %v5831_v1   ;;  %v2449_v12 = vadd.f32 %v8313_v14, %v1990_v2  ;;  %v5912_v14 = vld [vmem:[%s9287_s1 + $0x8e8] sm:$0xff]  ;;  %v3177_v39 = vmul.f32 %v8192_v8, %v2952_v18  ;;  %v3387_v8 = vld [vmem:[#allocation2 + $0x3f] sm:$0xff] }
 0x2ee   : > { %4219 = vmatmul.bf16.gmra.mxu0 %v4106_v58  ;;  %4653 = vmatmul.bf16.gmra.mxu1 %v4560_v6  ;;  %v2951_v1 = vld [vmem:[#allocation2 + $0xe9] sm:$0xff]  ;;  %v3386_v6 = vld [vmem:[#allocation2 + $0x37] sm:$0xff] }
 0x2ef   : > { %3596 = vperm.xlu1 %6136, %v5752_v33   ;;  %3591 = vperm.xlu0 %6135, %v5751_v44   ;;  %v8689_v24 = vadd.f32 %v8581_v40, %v2449_v12  ;;  %v8701_v52 = vpop.permute.xlu1 %3506  ;;  %v9557_v40 = vld [vmem:[#allocation4_spill] sm:$0xff]  ;;  %v8712_v38 = vpop.permute.xlu2 %4454  ;;  %v3176_v16 = vmul.f32 %v8196_v32, %v2951_v1  ;;  %v6151_v58 = vld [vmem:[#allocation2 + $0x49] sm:$0xff] }
 0x2f0   : > { %v3292_v45 = vpop.f32.mrf.mxu2  ;;  %3730 = vmatmul.bf16.vlgmr.msra.gmra.mxu3 %v3641_v62  ;;  %v4531_v33 = vmul.f32 %v6151_v58, %v8511_v36  ;;  %v9559_v12 = vld [vmem:[#allocation59_spill] sm:$0xff] }
 0x2f1   : > { %9556 = vst [vmem:[#allocation36_spill] sm:$0xff] %v8689_v24  ;;  %v8691_v29 = vpop.permute.xlu0 %3521  ;;  %v8694_v20 = vadd.f32 %v3292_v45, %v8475_v21  ;;  %v5832_v21 = vld [vmem:[%s9287_s1 + $0x7e8] sm:$0xff]  ;;  %v6152_v62 = vld [vmem:[#allocation2 + $0x51] sm:$0xff]  ;;  %v8734_v58 = vpop.f32.mrf.mxu0 }
 0x2f2   : > { %v1935_v55 = vpop.f32.mrf.mxu3  ;;  %v4532_v45 = vmul.f32 %v6152_v62, %v8320_v50  ;;  %v5833_v36 = vld [vmem:[%s9287_s1 + $0x7f0] sm:$0xff] }
 0x2f3   : > { %v8703_v35 = vpop.f32.mrf.mxu1  ;;  %v1991_v0 = vadd.f32 %v1935_v55, %v9557_v40  ;;  %v3858_v55 = vld [vmem:[#allocation2 + $0xa0] sm:$0xff]  ;;  %v3612_v40 = vmul.f32 %v8392_v59, %v3387_v8  ;;  %v5753_v59 = vld [vmem:[%s9287_s1 + $0x6f0] sm:$0xff]  ;;  %v5914_v8 = vld [vmem:[%s9287_s1 + $0x8f8] sm:$0xff] }
 0x2f4   : > { %v4561_v1 = vpack.c.bf16 %v4532_v45, %v4531_v33 }
 0x2f5   : > { %4514 = vperm.xlu2 %6137, %v5912_v14   ;;  %v2450_v22 = vadd.f32 %v8353_v47, %v1991_v0  ;;  %v1511_v47 = vadd.f32 %v9559_v12, %v9558_v34  ;;  %v3857_v14 = vld [vmem:[#allocation2 + $0x98] sm:$0xff] }
 0x2f6   : > { %v4082_v0 = vmul.f32 %v8595_v53, %v3857_v14 }
 0x2f7   : > { %4509 = vperm.xlu1 %6136, %v5911_v23   ;;  %4055 = vperm.xlu0 %6135, %v5832_v21   ;;  %v8718_v2 = vadd.f32 %v8611_v43, %v2450_v22  ;;  %v3611_v43 = vmul.f32 %v8325_v48, %v3386_v6  ;;  %v3195_v22 = vpack.c.bf16 %v3177_v39, %v3176_v16  ;;  %v5754_v48 = vld [vmem:[%s9287_s1 + $0x6f8] sm:$0xff]  ;;  %v8742_v53 = vpop.permute.xlu1 %4419  ;;  %v9560_v39 = vld [vmem:[#allocation37_spill] sm:$0xff]  ;;  %v8745_v33 = vpop.permute.xlu2 %4000 }
 0x2f8   : > { %v8721_v44 = vpop.f32.mrf.mxu2 }
 0x2f9   : > { %v3986_v32 = vpop.permute.xlu0 %3985  ;;  %v3642_v6 = vpack.c.bf16 %v3612_v40, %v3611_v43  ;;  %v5834_v43 = vld [vmem:[%s9287_s1 + $0x7f8] sm:$0xff] }
 0x2fa   : > { %v4083_v23 = vmul.f32 %v3986_v32, %v3858_v55  ;;  %v1937_v21 = vpop.f32.mrf.mxu3  ;;  %v9563_v55 = vld [vmem:[#allocation10_spill] sm:$0xff] }
 0x2fb   : > { %v8732_v18 = vpop.f32.mrf.mxu1  ;;  %v1992_v50 = vadd.f32 %v1937_v21, %v1511_v47  ;;  %v3388_v21 = vld [vmem:[#allocation2 + $0x47] sm:$0xff] }
 0x2fc   : > { %v4107_v34 = vpack.c.bf16 %v4083_v23, %v4082_v0  ;;  %v8768_v0 = vpop.f32.mrf.mxu0 }
 0x2fd   : > { %3336 = vmatmul.bf16.gmra.mxu2 %v3195_v22  ;;  %4060 = vperm.xlu2 %6137, %v5833_v36   ;;  %v2451_v16 = vadd.f32 %v9560_v39, %v1992_v50  ;;  %v6153_v22 = vld [vmem:[#allocation2 + $0x59] sm:$0xff]  ;;  %v6154_v39 = vld [vmem:[#allocation2 + $0x61] sm:$0xff] }
 0x2fe   : > { %4224 = vmatmul.bf16.gmra.mxu0 %v4107_v34  ;;  %4658 = vmatmul.bf16.gmra.mxu1 %v4561_v1  ;;  %v4533_v50 = vmul.f32 %v6153_v22, %v8592_v9  ;;  %v9565_v34 = vld [vmem:[#allocation7_spill] sm:$0xff] }
 0x2ff   : > { %3606 = vperm.xlu1 %6136, %v5754_v48   ;;  %3601 = vperm.xlu0 %6135, %v5753_v59   ;;  %v8748_v12 = vadd.f32 %v8642_v15, %v2451_v16  ;;  %v5913_v15 = vld [vmem:[%s9287_s1 + $0x8f0] sm:$0xff]  ;;  %v8770_v23 = vpop.permute.xlu1 %3516  ;;  %v9566_v48 = vld [vmem:[#allocation12_spill] sm:$0xff] }
 0x300   : > { %v3297_v47 = vpop.f32.mrf.mxu2  ;;  %3735 = vmatmul.bf16.gmra.mxu3 %v3642_v6  ;;  %v1516_v59 = vadd.f32 %v9566_v48, %v9565_v34  ;;  %v3389_v6 = vld [vmem:[#allocation2 + $0x4f] sm:$0xff] }
 0x301   : > { %9561 = vst [vmem:[#allocation22_spill] sm:$0xff] %v8748_v12  ;;  %v8750_v62 = vpop.permute.xlu0 %3531  ;;  %v8753_v45 = vadd.f32 %v3297_v47, %v8536_v61  ;;  %v3859_v47 = vld [vmem:[#allocation2 + $0xa8] sm:$0xff] }
 0x302   : > { %v1940_v14 = vpop.f32.mrf.mxu3  ;;  %v4084_v9 = vmul.f32 %v8674_v28, %v3859_v47 }
 0x303   : > { %9562 = vst [vmem:[#allocation67_spill] sm:$0xff] %v8753_v45  ;;  %v8758_v32 = vpop.f32.mrf.mxu1  ;;  %v1993_v40 = vadd.f32 %v1940_v14, %v9563_v55  ;;  %v3860_v55 = vld [vmem:[#allocation2 + $0xb0] sm:$0xff] }
 0x305   : > { %4524 = vperm.xlu2 %6137, %v5914_v8   ;;  %v2452_v61 = vadd.f32 %v8421_v4, %v1993_v40  ;;  %v9567_v4 = vld [vmem:[#allocation20_spill] sm:$0xff]  ;;  %v8781_v8 = vpop.permute.xlu2 %4464 }
 0x306   : > { %v4534_v16 = vmul.f32 %v6154_v39, %v9567_v4  ;;  %v6095_v39 = vld [vmem:[%s9292_s6 + $0x10] sm:$0xff]  ;;  %v9570_v4 = vld [vmem:[#allocation18_spill] sm:$0xff] }
 0x307   : > { %4519 = vperm.xlu1 %6136, %v5913_v15   ;;  %4065 = vperm.xlu0 %6135, %v5834_v43   ;;  %v8773_v36 = vadd.f32 %v8676_v41, %v2452_v61  ;;  %v9568_v41 = vld [vmem:[#allocation61_spill] sm:$0xff] }
 0x308   : > { %v8776_v1 = vpop.f32.mrf.mxu2  ;;  %v3614_v40 = vmul.f32 %v9568_v41, %v3389_v6  ;;  %v9569_v15 = vld [vmem:[#allocation21_spill] sm:$0xff]  ;;  %v4562_v48 = vpack.c.bf16 %v4534_v16, %v4533_v50  ;;  %4918 = vmatpush.bf16.msra.mxu2 %v6095_v39  ;;  %v8800_v16 = vpop.permute.xlu1 %4429 }
 0x309   : > { %9564 = vst [vmem:[#allocation66_spill] sm:$0xff] %v8776_v1  ;;  %v3996_v14 = vpop.permute.xlu0 %3995  ;;  %v3613_v43 = vmul.f32 %v9569_v15, %v3388_v21  ;;  %v9572_v1 = vpack.c.bf16 %v9570_v4, %v9571_v63  ;;  %v9573_v6 = vld [vmem:[#allocation33_spill] sm:$0xff]  ;;  %v4310_v15 = vld [vmem:[#allocation2 + $0x69] sm:$0xff] }
 0x30a   : > { %v4085_v61 = vmul.f32 %v3996_v14, %v3860_v55  ;;  %v1942_v22 = vpop.f32.mrf.mxu3  ;;  %v9576_v55 = vld [vmem:[#allocation14_spill] sm:$0xff]  ;;  %v3391_v39 = vld [vmem:[#allocation2 + $0x5f] sm:$0xff] }
 0x30b   : > { %v8786_v12 = vpop.f32.mrf.mxu1  ;;  %v1994_v34 = vadd.f32 %v1942_v22, %v1516_v59  ;;  %v3643_v21 = vpack.c.bf16 %v3614_v40, %v3613_v43  ;;  %v8798_v59 = vpop.f32.mrf.mxu0  ;;  %v3390_v43 = vld [vmem:[#allocation2 + $0x57] sm:$0xff] }
 0x30c   : > { %v4108_v24 = vpack.c.bf16 %v4085_v61, %v4084_v9  ;;  %v4535_v9 = vmul.f32 %v8663_v54, %v4310_v15  ;;  %v6155_v22 = vld [vmem:[#allocation2 + $0x71] sm:$0xff] }
 0x30d   : > { %3341 = vmatmul.bf16.gmra.mxu2 %v9572_v1  ;;  %v2453_v41 = vadd.f32 %v9573_v6, %v1994_v34  ;;  %v4011_v1 = vpop.permute.xlu2 %4010  ;;  %v9578_v34 = vld [vmem:[#allocation40_spill] sm:$0xff]  ;;  %v3862_v6 = vld [vmem:[#allocation2 + $0xc0] sm:$0xff] }
 0x30e   : > { %4229 = vmatmul.bf16.gmra.mxu0 %v4108_v24  ;;  %4663 = vmatmul.bf16.gmra.mxu1 %v4562_v48  ;;  %v4536_v48 = vmul.f32 %v6155_v22, %v9578_v34  ;;  %v9581_v15 = vld [vmem:[#allocation16_spill] sm:$0xff] }
 0x30f   : > { %v8796_v28 = vadd.f32 %v8703_v35, %v2453_v41 }
 0x310   : > { %v3302_v50 = vpop.f32.mrf.mxu2  ;;  %3740 = vmatmul.bf16.gmra.mxu3 %v3643_v21  ;;  %v3616_v21 = vmul.f32 %v8550_v56, %v3391_v39  ;;  %v8825_v22 = vpop.permute.xlu1 %3526  ;;  %v9582_v56 = vld [vmem:[#allocation6_spill] sm:$0xff] }
 0x311   : > { %9574 = vst [vmem:[#allocation47_spill] sm:$0xff] %v8796_v28  ;;  %v8802_v47 = vpop.permute.xlu0 %3541  ;;  %v8805_v63 = vadd.f32 %v3302_v50, %v8598_v19  ;;  %v3861_v19 = vld [vmem:[#allocation2 + $0xb8] sm:$0xff]  ;;  %v9579_v50 = vld [vmem:[#allocation25_spill] sm:$0xff]  ;;  %v9583_v39 = vld [vmem:[#allocation58_spill] sm:$0xff] }
 0x312   : > { %v4086_v54 = vmul.f32 %v8745_v33, %v3861_v19 }
 0x313   : > { %9575 = vst [vmem:[#allocation48_spill] sm:$0xff] %v8805_v63  ;;  %v8807_v14 = vpop.f32.mrf.mxu1  ;;  %v1945_v24 = vpop.f32.mrf.mxu3 }
 0x314   : > { %v1995_v40 = vadd.f32 %v1945_v24, %v9576_v55  ;;  %v3615_v24 = vmul.f32 %v9579_v50, %v3390_v43  ;;  %v9584_v43 = vpack.c.bf16 %v9582_v56, %v9583_v39  ;;  %v3863_v56 = vld [vmem:[#allocation2 + $0xc8] sm:$0xff] }
 0x316   : > { %v2454_v35 = vadd.f32 %v8509_v7, %v1995_v40  ;;  %v8820_v7 = vpop.f32.mrf.mxu0  ;;  %v9580_v40 = vld [vmem:[#allocation17_spill] sm:$0xff]  ;;  %v3644_v45 = vpack.c.bf16 %v3616_v21, %v3615_v24  ;;  %v9587_v24 = vld [vmem:[#allocation60_spill] sm:$0xff] }
 0x317   : > { %v1521_v28 = vadd.f32 %v9581_v15, %v9580_v40  ;;  %v3392_v21 = vld [vmem:[#allocation2 + $0x67] sm:$0xff] }
 0x318   : > { %v8812_v61 = vpop.f32.mrf.mxu2  ;;  %v8816_v41 = vadd.f32 %v8732_v18, %v2454_v35  ;;  %v8829_v35 = vpop.permute.xlu2 %4474 }
 0x319   : > { %9577 = vst [vmem:[#allocation41_spill] sm:$0xff] %v8812_v61  ;;  %v4006_v4 = vpop.permute.xlu0 %4005  ;;  %v4563_v61 = vpack.c.bf16 %v4536_v48, %v4535_v9 }
 0x31a   : > { %v4087_v55 = vmul.f32 %v4006_v4, %v3862_v6 }
 0x31b   : > { %v8827_v34 = vpop.f32.mrf.mxu1  ;;  %v1947_v18 = vpop.f32.mrf.mxu3 }
 0x31c   : > { %v4109_v63 = vpack.c.bf16 %v4087_v55, %v4086_v54  ;;  %v1996_v50 = vadd.f32 %v1947_v18, %v1521_v28  ;;  %v8847_v28 = vpop.permute.xlu1 %4439  ;;  %v3393_v18 = vld [vmem:[#allocation2 + $0x6f] sm:$0xff] }
 0x31d   : > { %3346 = vmatmul.bf16.gmra.mxu2 %v9584_v43  ;;  %v3864_v43 = vld [vmem:[#allocation2 + $0xd0] sm:$0xff] }
 0x31e   : > { %4234 = vmatmul.bf16.gmra.mxu0 %v4109_v63  ;;  %4668 = vmatmul.bf16.gmra.mxu1 %v4563_v61  ;;  %v2455_v33 = vadd.f32 %v8545_v17, %v1996_v50  ;;  %v8845_v55 = vpop.f32.mrf.mxu0  ;;  %v9586_v63 = vld [vmem:[#allocation9_spill] sm:$0xff] }
 0x320   : > { %v3307_v19 = vpop.f32.mrf.mxu2  ;;  %3745 = vmatmul.bf16.gmra.mxu3 %v3644_v45  ;;  %v8841_v48 = vadd.f32 %v8758_v32, %v2455_v33  ;;  %v4021_v17 = vpop.permute.xlu2 %4020  ;;  %v9589_v32 = vld [vmem:[#allocation28_spill] sm:$0xff]  ;;  %v3618_v33 = vmul.f32 %v8627_v37, %v3393_v18 }
 0x321   : > { %v8835_v4 = vpop.permute.xlu0 %3551  ;;  %v8838_v9 = vadd.f32 %v3307_v19, %v8654_v42  ;;  %v4537_v42 = vmul.f32 %v8742_v53, %v9587_v24  ;;  %v4538_v15 = vmul.f32 %v8504_v49, %v9589_v32  ;;  %v4088_v19 = vmul.f32 %v4011_v1, %v3863_v56  ;;  %v9591_v53 = vld [vmem:[#allocation63_spill] sm:$0xff] }
 0x322   : > { %9585 = vst [vmem:[#allocation35_spill] sm:$0xff] %v8841_v48 }
 0x323   : > { %v8843_v6 = vpop.f32.mrf.mxu1  ;;  %v1950_v54 = vpop.f32.mrf.mxu3  ;;  %v4564_v48 = vpack.c.bf16 %v4538_v15, %v4537_v42 }
 0x324   : > { %v1997_v61 = vadd.f32 %v1950_v54, %v9586_v63  ;;  %v9590_v63 = vld [vmem:[#allocation15_spill] sm:$0xff] }
 0x326   : > { %v2456_v45 = vadd.f32 %v8584_v13, %v1997_v61  ;;  %v3617_v13 = vmul.f32 %v8513_v3, %v3392_v21  ;;  %v1526_v61 = vadd.f32 %v9591_v53, %v9590_v63  ;;  %v8869_v37 = vpop.f32.mrf.mxu0  ;;  %v8871_v3 = vpop.permute.xlu1 %3536 }
 0x328   : > { %v8853_v40 = vpop.f32.mrf.mxu2  ;;  %v8858_v50 = vadd.f32 %v8786_v12, %v2456_v45  ;;  %v3645_v45 = vpack.c.bf16 %v3618_v33, %v3617_v13  ;;  %v8874_v42 = vpop.permute.xlu2 %4484  ;;  %v4314_v13 = vld [vmem:[#allocation2 + $0x89] sm:$0xff] }
 0x329   : > { %9588 = vst [vmem:[#allocation24_spill] sm:$0xff] %v8853_v40  ;;  %v4016_v39 = vpop.permute.xlu0 %4015  ;;  %v6094_v40 = vld [vmem:[%s9292_s6 + $0x8] sm:$0xff] }
 0x32a   : > { %v4089_v54 = vmul.f32 %v4016_v39, %v3864_v43  ;;  %4919 = vmatpush.bf16.msra.mxu2 %v6094_v40  ;;  %v9593_v43 = vld [vmem:[#allocation70_spill] sm:$0xff] }
 0x32b   : > { %v8864_v24 = vpop.f32.mrf.mxu1  ;;  %v1952_v32 = vpop.f32.mrf.mxu3 }
 0x32c   : > { %v4110_v49 = vpack.c.bf16 %v4089_v54, %v4088_v19  ;;  %v1998_v12 = vadd.f32 %v1952_v32, %v1526_v61  ;;  %v3394_v19 = vld [vmem:[#allocation2 + $0x77] sm:$0xff]  ;;  %v4539_v54 = vmul.f32 %v8800_v16, %v4314_v13 }
 0x32e   : > { %4239 = vmatmul.bf16.gmra.mxu0 %v4110_v49  ;;  %4673 = vmatmul.bf16.gmra.mxu1 %v4564_v48  ;;  %v2457_v1 = vadd.f32 %v8625_v11, %v1998_v12  ;;  %v8887_v11 = vpop.f32.mrf.mxu0  ;;  %v8895_v61 = vpop.permute.xlu1 %4449  ;;  %v3865_v49 = vld [vmem:[#allocation2 + $0xd8] sm:$0xff]  ;;  %v3866_v12 = vld [vmem:[#allocation2 + $0xe0] sm:$0xff] }
 0x330   : > { %v3312_v21 = vpop.f32.mrf.mxu2  ;;  %3750 = vmatmul.bf16.gmra.mxu3 %v3645_v45  ;;  %v8882_v56 = vadd.f32 %v8807_v14, %v2457_v1  ;;  %v3395_v14 = vld [vmem:[#allocation2 + $0x7f] sm:$0xff] }
 0x331   : > { %v8876_v15 = vpop.permute.xlu0 %3561  ;;  %v8879_v18 = vadd.f32 %v3312_v21, %v8718_v2  ;;  %v9595_v2 = vld [vmem:[#allocation34_spill] sm:$0xff]  ;;  %v3620_v1 = vmul.f32 %v8701_v52, %v3395_v14  ;;  %v4090_v21 = vmul.f32 %v4021_v17, %v3865_v49 }
 0x332   : > { %9592 = vst [vmem:[#allocation64_spill] sm:$0xff] %v8882_v56  ;;  %v4540_v53 = vmul.f32 %v8568_v26, %v9595_v2  ;;  %v9596_v2 = vld [vmem:[#allocation13_spill] sm:$0xff] }
 0x333   : > { %v8884_v48 = vpop.f32.mrf.mxu1  ;;  %v1955_v39 = vpop.f32.mrf.mxu3 }
 0x334   : > { %v1999_v33 = vadd.f32 %v1955_v39, %v9593_v43  ;;  %v4031_v39 = vpop.permute.xlu2 %4030 }
 0x336   : > { %v2458_v40 = vadd.f32 %v8657_v51, %v1999_v33  ;;  %v3619_v51 = vmul.f32 %v8573_v57, %v3394_v19  ;;  %v4565_v33 = vpack.c.bf16 %v4540_v53, %v4539_v54  ;;  %v8906_v52 = vpop.f32.mrf.mxu0  ;;  %v8916_v54 = vpop.permute.xlu1 %3546 }
 0x338   : > { %v8891_v63 = vpop.f32.mrf.mxu2  ;;  %v8898_v45 = vadd.f32 %v8827_v34, %v2458_v40 }
 0x339   : > { %9594 = vst [vmem:[#allocation65_spill] sm:$0xff] %v8891_v63  ;;  %v4026_v32 = vpop.permute.xlu0 %4025  ;;  %v3646_v63 = vpack.c.bf16 %v3620_v1, %v3619_v51  ;;  %v6156_v51 = vld [vmem:[#allocation2 + $0xa1] sm:$0xff] }
 0x33a   : > { %v4091_v16 = vmul.f32 %v4026_v32, %v3866_v12  ;;  %v3396_v12 = vld [vmem:[#allocation2 + $0x87] sm:$0xff] }
 0x33b   : > { %v8902_v43 = vpop.f32.mrf.mxu1  ;;  %v1957_v13 = vpop.f32.mrf.mxu3 }
 0x33c   : > { %v4111_v26 = vpack.c.bf16 %v4091_v16, %v4090_v21  ;;  %v2000_v56 = vadd.f32 %v1957_v13, %v9596_v2  ;;  %v8920_v49 = vpop.permute.xlu2 %4494  ;;  %v3397_v21 = vld [vmem:[#allocation2 + $0x8f] sm:$0xff] }
 0x33d   : > { %v3867_v16 = vld [vmem:[#allocation2 + $0xe8] sm:$0xff]  ;;  %v3622_v2 = vmul.f32 %v8770_v23, %v3397_v21 }
 0x33e   : > { %4244 = vmatmul.bf16.gmra.mxu0 %v4111_v26  ;;  %4678 = vmatmul.bf16.gmra.mxu1 %v4565_v33  ;;  %v2459_v34 = vadd.f32 %v8696_v30, %v2000_v56  ;;  %v9598_v30 = vld [vmem:[#allocation71_spill] sm:$0xff] }
 0x33f   : > { %v3868_v26 = vld [vmem:[#allocation2 + $0xf0] sm:$0xff] }
 0x340   : > { %v3317_v40 = vpop.f32.mrf.mxu2  ;;  %3755 = vmatmul.bf16.gmra.mxu3 %v3646_v63  ;;  %v8914_v19 = vadd.f32 %v8843_v6, %v2459_v34  ;;  %v4316_v63 = vld [vmem:[#allocation2 + $0x99] sm:$0xff]  ;;  %v4542_v6 = vmul.f32 %v6156_v51, %v8632_v10  ;;  %v3621_v34 = vmul.f32 %v8634_v46, %v3396_v12  ;;  %v4460_v51 = vpop.permute.xlu1 %4459 }
 0x341   : > { %v8908_v57 = vpop.permute.xlu0 %3571  ;;  %v8911_v17 = vadd.f32 %v3317_v40, %v8773_v36  ;;  %v4541_v1 = vmul.f32 %v8847_v28, %v4316_v63  ;;  %v6093_v63 = vld [vmem:[%s9292_s6] sm:$0xff] }
 0x342   : > { %9597 = vst [vmem:[#allocation50_spill] sm:$0xff] %v8914_v19  ;;  %v3647_v19 = vpack.c.bf16 %v3622_v2, %v3621_v34  ;;  %4920 = vmatpush.bf16.msra.mxu2 %v6093_v63  ;;  %v4318_v34 = vld [vmem:[#allocation2 + $0xa9] sm:$0xff] }
 0x343   : > { %v8918_v53 = vpop.f32.mrf.mxu1  ;;  %v1960_v14 = vpop.f32.mrf.mxu3 }
 0x344   : > { %v2001_v56 = vadd.f32 %v1960_v14, %v9598_v30  ;;  %v8933_v14 = vpop.f32.mrf.mxu0  ;;  %v4566_v30 = vpack.c.bf16 %v4542_v6, %v4541_v1  ;;  %v4041_v46 = vpop.permute.xlu2 %4040 }
 0x346   : > { %v2460_v32 = vadd.f32 %v8734_v58, %v2001_v56  ;;  %v4092_v58 = vmul.f32 %v4031_v39, %v3867_v16 }
 0x348   : > { %v8925_v36 = vpop.f32.mrf.mxu2  ;;  %v8929_v13 = vadd.f32 %v8864_v24, %v2460_v32  ;;  %v9599_v24 = vld [vmem:[#allocation23_spill] sm:$0xff] }
 0x349   : > { %v4036_v33 = vpop.permute.xlu0 %4035 }
 0x34a   : > { %v4093_v40 = vmul.f32 %v4036_v33, %v3868_v26  ;;  %v9602_v26 = vld [vmem:[#allocation72_spill] sm:$0xff] }
 0x34b   : > { %v8935_v28 = vpop.f32.mrf.mxu1  ;;  %v1962_v10 = vpop.f32.mrf.mxu3 }
 0x34c   : > { %v4112_v56 = vpack.c.bf16 %v4093_v40, %v4092_v58  ;;  %v2002_v32 = vadd.f32 %v1962_v10, %v9599_v24  ;;  %v8952_v33 = vpop.f32.mrf.mxu0  ;;  %v4319_v58 = vld [vmem:[#allocation2 + $0xb1] sm:$0xff]  ;;  %v8962_v63 = vpop.permute.xlu2 %4504 }
 0x34d   : > { %v3398_v40 = vld [vmem:[#allocation2 + $0x97] sm:$0xff] }
 0x34e   : > { %4249 = vmatmul.bf16.gmra.mxu0 %v4112_v56  ;;  %4683 = vmatmul.bf16.gmra.mxu1 %v4566_v30  ;;  %v2461_v23 = vadd.f32 %v8768_v0, %v2002_v32  ;;  %v8955_v0 = vpop.permute.xlu1 %3556  ;;  %v3399_v56 = vld [vmem:[#allocation2 + $0x9f] sm:$0xff] }
 0x34f   : > { %v3869_v10 = vld [vmem:[#allocation2 + $0xf8] sm:$0xff]  ;;  %v3870_v32 = vld [vmem:[#allocation2 + $0x100] sm:$0xff] }
 0x350   : > { %v3322_v39 = vpop.f32.mrf.mxu2  ;;  %3760 = vmatmul.bf16.gmra.mxu3 %v3647_v19  ;;  %v8948_v6 = vadd.f32 %v8884_v48, %v2461_v23  ;;  %v4544_v48 = vmul.f32 %v8712_v38, %v4319_v58  ;;  %v9604_v58 = vld [vmem:[#allocation26_spill] sm:$0xff] }
 0x351   : > { %v8942_v12 = vpop.permute.xlu0 %3581  ;;  %v8945_v1 = vadd.f32 %v3322_v39, %v8816_v41  ;;  %v4543_v41 = vmul.f32 %v8895_v61, %v4318_v34  ;;  %v3624_v39 = vmul.f32 %v8825_v22, %v3399_v56 }
 0x352   : > { %9601 = vst [vmem:[#allocation46_spill] sm:$0xff] %v8948_v6 }
 0x353   : > { %9600 = vst [vmem:[#allocation51_spill] sm:$0xff] %v8945_v1  ;;  %v8950_v21 = vpop.f32.mrf.mxu1  ;;  %v1965_v16 = vpop.f32.mrf.mxu3 }
 0x354   : > { %v2003_v2 = vadd.f32 %v1965_v16, %v9602_v26  ;;  %v4094_v16 = vmul.f32 %v4041_v46, %v3869_v10  ;;  %v8972_v1 = vpop.f32.mrf.mxu0  ;;  %v9606_v10 = vld [vmem:[#allocation73_spill] sm:$0xff] }
 0x356   : > { %v2462_v19 = vadd.f32 %v8798_v59, %v2003_v2  ;;  %v3623_v59 = vmul.f32 %v8691_v29, %v3398_v40  ;;  %v4567_v2 = vpack.c.bf16 %v4544_v48, %v4543_v41  ;;  %v4470_v22 = vpop.permute.xlu1 %4469  ;;  %v4051_v41 = vpop.permute.xlu2 %4050 }
 0x358   : > { %v8959_v30 = vpop.f32.mrf.mxu2  ;;  %v8965_v23 = vadd.f32 %v8902_v43, %v2462_v19 }
 0x359   : > { %9603 = vst [vmem:[#allocation38_spill] sm:$0xff] %v8959_v30  ;;  %v4046_v24 = vpop.permute.xlu0 %4045  ;;  %v3648_v30 = vpack.c.bf16 %v3624_v39, %v3623_v59 }
 0x35a   : > { %v4095_v26 = vmul.f32 %v4046_v24, %v3870_v32  ;;  %v4320_v32 = vld [vmem:[#allocation2 + $0xb9] sm:$0xff] }
 0x35b   : > { %v8969_v61 = vpop.f32.mrf.mxu1  ;;  %v1967_v38 = vpop.f32.mrf.mxu3  ;;  %v4545_v39 = vmul.f32 %v4460_v51, %v4320_v32 }
 0x35c   : > { %v4113_v34 = vpack.c.bf16 %v4095_v26, %v4094_v16  ;;  %v2004_v6 = vadd.f32 %v1967_v38, %v9604_v58  ;;  %v3401_v16 = vld [vmem:[#allocation2 + $0xaf] sm:$0xff]  ;;  %v8990_v26 = vpop.f32.mrf.mxu0 }
 0x35d   : > { %v3626_v58 = vmul.f32 %v8871_v3, %v3401_v16 }
 0x35e   : > { %4254 = vmatmul.bf16.gmra.mxu0 %v4113_v34  ;;  %4688 = vmatmul.bf16.gmra.mxu1 %v4567_v2  ;;  %v2463_v43 = vadd.f32 %v8820_v7, %v2004_v6  ;;  %v4321_v6 = vld [vmem:[#allocation2 + $0xc1] sm:$0xff]  ;;  %v3872_v34 = vld [vmem:[#allocation2 + $0x110] sm:$0xff]  ;;  %v8997_v51 = vpop.permute.xlu1 %3566  ;;  %v9001_v32 = vpop.permute.xlu2 %4514 }
 0x360   : > { %v3327_v19 = vpop.f32.mrf.mxu2  ;;  %3765 = vmatmul.bf16.gmra.mxu3 %v3648_v30  ;;  %v8981_v40 = vadd.f32 %v8918_v53, %v2463_v43  ;;  %v3400_v30 = vld [vmem:[#allocation2 + $0xa7] sm:$0xff] }
 0x361   : > { %v8975_v29 = vpop.permute.xlu0 %3591  ;;  %v8978_v46 = vadd.f32 %v3327_v19, %v8858_v50  ;;  %v4546_v50 = vmul.f32 %v8781_v8, %v4321_v6  ;;  %v3871_v53 = vld [vmem:[#allocation2 + $0x108] sm:$0xff]  ;;  %v9608_v6 = vld [vmem:[#allocation19_spill] sm:$0xff] }
 0x362   : > { %9605 = vst [vmem:[#allocation39_spill] sm:$0xff] %v8981_v40  ;;  %v4096_v43 = vmul.f32 %v4051_v41, %v3871_v53  ;;  %v9609_v53 = vld [vmem:[#allocation32_spill] sm:$0xff] }
 0x363   : > { %v8983_v48 = vpop.f32.mrf.mxu1  ;;  %v1970_v56 = vpop.f32.mrf.mxu3  ;;  %v4568_v8 = vpack.c.bf16 %v4546_v50, %v4545_v39 }
 0x364   : > { %v2005_v24 = vadd.f32 %v1970_v56, %v9606_v10 }
 0x366   : > { %v2464_v7 = vadd.f32 %v8845_v55, %v2005_v24  ;;  %v3625_v55 = vmul.f32 %v8750_v62, %v3400_v30  ;;  %v9013_v30 = vpop.f32.mrf.mxu0  ;;  %v4480_v16 = vpop.permute.xlu1 %4479 }
 0x368   : > { %v8987_v59 = vpop.f32.mrf.mxu2  ;;  %v8993_v38 = vadd.f32 %v8935_v28, %v2464_v7 }
 0x369   : > { %9607 = vst [vmem:[#allocation11_spill] sm:$0xff] %v8987_v59  ;;  %v4056_v2 = vpop.permute.xlu0 %4055  ;;  %v3649_v59 = vpack.c.bf16 %v3626_v58, %v3625_v55  ;;  %v3403_v55 = vld [vmem:[#allocation2 + $0xbf] sm:$0xff] }
 0x36a   : > { %v4097_v19 = vmul.f32 %v4056_v2, %v3872_v34  ;;  %v4322_v34 = vld [vmem:[#allocation2 + $0xc9] sm:$0xff] }
 0x36b   : > { %v8999_v56 = vpop.f32.mrf.mxu1  ;;  %v1972_v24 = vpop.f32.mrf.mxu3 }
 0x36c   : > { %v4114_v10 = vpack.c.bf16 %v4097_v19, %v4096_v43  ;;  %v2006_v40 = vadd.f32 %v1972_v24, %v9608_v6  ;;  %v3402_v43 = vld [vmem:[#allocation2 + $0xb7] sm:$0xff]  ;;  %v6157_v24 = vld [vmem:[#allocation2] sm:$0xff] }
 0x36e   : > { %4259 = vmatmul.bf16.gmra.mxu0 %v4114_v10  ;;  %4693 = vmatmul.bf16.gmra.mxu1 %v4568_v8  ;;  %v2465_v3 = vadd.f32 %v8869_v37, %v2006_v40  ;;  %v4061_v37 = vpop.permute.xlu2 %4060  ;;  %v4323_v40 = vld [vmem:[#allocation2 + $0xd1] sm:$0xff]  ;;  %v3628_v8 = vmul.f32 %v8916_v54, %v3403_v55  ;;  %v3627_v10 = vmul.f32 %v8802_v47, %v3402_v43 }
 0x36f   : > { %v4098_v6 = vmul.f32 %v6157_v24, %v4061_v37 }
 0x370   : > { %v3332_v28 = vpop.f32.mrf.mxu2  ;;  %3770 = vmatmul.bf16.gmra.mxu3 %v3649_v59  ;;  %v9011_v7 = vadd.f32 %v8950_v21, %v2465_v3  ;;  %v4547_v59 = vmul.f32 %v4470_v22, %v4322_v34  ;;  %v9026_v34 = vpop.f32.mrf.mxu0  ;;  %v3650_v47 = vpack.c.bf16 %v3628_v8, %v3627_v10  ;;  %v4324_v10 = vld [vmem:[#allocation2 + $0xd9] sm:$0xff] }
 0x371   : > { %v9005_v62 = vpop.permute.xlu0 %3601  ;;  %v9008_v41 = vadd.f32 %v3332_v28, %v8898_v45  ;;  %v4548_v45 = vmul.f32 %v8829_v35, %v4323_v40 }
 0x373   : > { %v9015_v39 = vpop.f32.mrf.mxu1  ;;  %v3731_v50 = vpop.f32.mrf.mxu3 }
 0x374   : > { %v3811_v2 = vadd.f32 %v3731_v50, %v9609_v53  ;;  %v4569_v50 = vpack.c.bf16 %v4548_v45, %v4547_v59 }
 0x376   : > { %v4270_v21 = vadd.f32 %v8887_v11, %v3811_v2  ;;  %v9032_v11 = vld [vmem:[%s9291_s5] ss:$0 sm:$0xff]  ;;  %v9035_v2 = vpop.permute.xlu1 %3576 }
 0x378   : > { %v9018_v58 = vpop.f32.mrf.mxu2  ;;  %v4729_v35 = vadd.f32 %v8969_v61, %v4270_v21 }
 0x379   : > { %v4066_v19 = vpop.permute.xlu0 %4065 }
 0x37a   : > { %v4099_v3 = vmul.f32 %v6157_v24, %v4066_v19  ;;  %v4765_v59 = vadd.f32 %v9032_v11, %v4729_v35 }
 0x37b   : > { %v9024_v28 = vpop.f32.mrf.mxu1  ;;  %v3733_v53 = vpop.f32.mrf.mxu3 }
 0x37c   : > { %v4115_v22 = vpack.c.bf16 %v4099_v3, %v4098_v6  ;;  %v3812_v54 = vadd.f32 %v3733_v53, %v8481_v5  ;;  %v4797_v21 = vmax.f32 %v4765_v59, 0.0  ;;  %v4549_v6 = vmul.f32 %v4480_v16, %v4324_v10  ;;  %v9610_v59 = vld [vmem:[#allocation44_spill] sm:$0xff] }
 0x37e   : > { %4264 = vmatmul.bf16.gmra.mxu0 %v4115_v22  ;;  %4698 = vmatmul.bf16.gmra.mxu1 %v4569_v50  ;;  %v4271_v37 = vadd.f32 %v8906_v52, %v3812_v54  ;;  %v9047_v52 = vpop.f32.mrf.mxu0  ;;  %v3405_v50 = vld [vmem:[#allocation2 + $0xcf] sm:$0xff]  ;;  %v4490_v22 = vpop.permute.xlu1 %4489 }
 0x37f   : > { %v3630_v54 = vmul.f32 %v8955_v0, %v3405_v50  ;;  %v4326_v50 = vld [vmem:[#allocation2 + $0xe9] sm:$0xff] }
 0x380   : > { %v3337_v40 = vpop.f32.mrf.mxu2  ;;  %3775 = vmatmul.bf16.gmra.mxu3 %v3650_v47  ;;  %v4730_v61 = vadd.f32 %v8983_v48, %v4271_v37  ;;  %v4325_v48 = vld [vmem:[#allocation2 + $0xe1] sm:$0xff] }
 0x381   : > { %v9041_v45 = vadd.f32 %v3337_v40, %v8929_v13  ;;  %v3404_v13 = vld [vmem:[#allocation2 + $0xc7] sm:$0xff]  ;;  %v4550_v35 = vmul.f32 %v8874_v42, %v4325_v48 }
 0x382   : > { %v4766_v55 = vadd.f32 %v9032_v11, %v4730_v61 }
 0x383   : > { %v9044_v43 = vpop.f32.mrf.mxu1  ;;  %v3736_v5 = vpop.f32.mrf.mxu3  ;;  %v4570_v37 = vpack.c.bf16 %v4550_v35, %v4549_v6  ;;  %v3407_v35 = vld [vmem:[#allocation2 + $0xdf] sm:$0xff] }
 0x384   : > { %v4798_v19 = vmax.f32 %v4766_v55, 0.0  ;;  %v3813_v8 = vadd.f32 %v3736_v5, %v8516_v60  ;;  %v3629_v60 = vmul.f32 %v8835_v4, %v3404_v13 }
 0x386   : > { %v4829_v24 = vpack.c.bf16 %v4798_v19, %v4797_v21  ;;  %v4272_v53 = vadd.f32 %v8933_v14, %v3813_v8  ;;  %v3651_v55 = vpack.c.bf16 %v3630_v54, %v3629_v60  ;;  %v9060_v21 = vpop.f32.mrf.mxu0  ;;  %v9067_v19 = vpop.permute.xlu1 %3586  ;;  %v3406_v54 = vld [vmem:[#allocation2 + $0xd7] sm:$0xff] }
 0x388   : > { %v9049_v3 = vpop.f32.mrf.mxu2  ;;  %4921 = vmatmul.bf16.vlgmr.msra.gmra.mxu2 %v4829_v24  ;;  %v4731_v16 = vadd.f32 %v8999_v56, %v4272_v53  ;;  %v9611_v24 = vld [vmem:[#allocation45_spill] sm:$0xff]  ;;  %v4551_v53 = vmul.f32 %v4490_v22, %v4326_v50 }
 0x38a   : > { %v4767_v0 = vadd.f32 %v9032_v11, %v4731_v16  ;;  %v3631_v16 = vmul.f32 %v8876_v15, %v3406_v54 }
 0x38b   : > { %v9055_v47 = vpop.f32.mrf.mxu1  ;;  %v3738_v40 = vpop.f32.mrf.mxu3 }
 0x38c   : > { %v3814_v61 = vadd.f32 %v3738_v40, %v9610_v59  ;;  %v4799_v6 = vmax.f32 %v4767_v0, 0.0  ;;  %v3632_v40 = vmul.f32 %v8997_v51, %v3407_v35 }
 0x38e   : > { %4703 = vmatmul.bf16.gmra.mxu1 %v4570_v37  ;;  %v4273_v5 = vadd.f32 %v8952_v33, %v3814_v61  ;;  %v9079_v59 = vpop.f32.mrf.mxu0  ;;  %v3652_v0 = vpack.c.bf16 %v3632_v40, %v3631_v16 }
 0x390   : > { %v3342_v14 = vpop.f32.mrf.mxu2  ;;  %3780 = vmatmul.bf16.gmra.mxu3 %v3651_v55  ;;  %v4732_v42 = vadd.f32 %v9015_v39, %v4273_v5  ;;  %v4500_v5 = vpop.permute.xlu1 %4499 }
 0x391   : > { %v9064_v4 = vadd.f32 %v3342_v14, %v8965_v23  ;;  %v4327_v23 = vld [vmem:[#allocation2 + $0xf1] sm:$0xff] }
 0x392   : > { %v4768_v8 = vadd.f32 %v9032_v11, %v4732_v42  ;;  %v4552_v37 = vmul.f32 %v8920_v49, %v4327_v23  ;;  %v3408_v23 = vld [vmem:[#allocation2 + $0xe7] sm:$0xff] }
 0x393   : > { %v9069_v56 = vpop.f32.mrf.mxu1  ;;  %v3741_v10 = vpop.f32.mrf.mxu3 }
 0x394   : > { %v3815_v33 = vadd.f32 %v3741_v10, %v9611_v24  ;;  %v4800_v48 = vmax.f32 %v4768_v8, 0.0  ;;  %v4571_v55 = vpack.c.bf16 %v4552_v37, %v4551_v53  ;;  %v4329_v53 = vld [vmem:[#allocation2 + $0x101] sm:$0xff]  ;;  %v3633_v37 = vmul.f32 %v8908_v57, %v3408_v23 }
 0x395   : > { %v4554_v54 = vmul.f32 %v8962_v63, %v4329_v53 }
 0x396   : > { %v4830_v13 = vpack.c.bf16 %v4800_v48, %v4799_v6  ;;  %v4274_v60 = vadd.f32 %v8972_v1, %v3815_v33 }
 0x398   : > { %v9073_v39 = vpop.f32.mrf.mxu2  ;;  %4926 = vmatmul.bf16.gmra.mxu2 %v4830_v13  ;;  %v4733_v14 = vadd.f32 %v9024_v28, %v4274_v60  ;;  %v9092_v28 = vpop.f32.mrf.mxu0 }
 0x399   : > { %v9095_v50 = vpop.permute.xlu1 %3596 }
 0x39a   : > { %v4769_v8 = vadd.f32 %v9032_v11, %v4733_v14 }
 0x39b   : > { %v9081_v61 = vpop.f32.mrf.mxu1  ;;  %v3743_v22 = vpop.f32.mrf.mxu3 }
 0x39c   : > { %v3816_v42 = vadd.f32 %v3743_v22, %v8604_v25  ;;  %v4801_v6 = vmax.f32 %v4769_v8, 0.0 }
 0x39e   : > { %4708 = vmatmul.bf16.gmra.mxu1 %v4571_v55  ;;  %v4275_v1 = vadd.f32 %v8990_v26, %v3816_v42  ;;  %v4328_v26 = vld [vmem:[#allocation2 + $0xf9] sm:$0xff] }
 0x3a0   : > { %v3347_v49 = vpop.f32.mrf.mxu2  ;;  %3785 = vmatmul.bf16.gmra.mxu3 %v3652_v0  ;;  %v4734_v51 = vadd.f32 %v9044_v43, %v4275_v1  ;;  %v4553_v43 = vmul.f32 %v4500_v5, %v4328_v26  ;;  %v9105_v14 = vpop.f32.mrf.mxu0 }
 0x3a1   : > { %v9088_v15 = vadd.f32 %v3347_v49, %v8993_v38  ;;  %v3409_v38 = vld [vmem:[#allocation2 + $0xef] sm:$0xff]  ;;  %v4510_v63 = vpop.permute.xlu1 %4509 }
 0x3a2   : > { %v4770_v24 = vadd.f32 %v9032_v11, %v4734_v51  ;;  %v3634_v60 = vmul.f32 %v9035_v2, %v3409_v38  ;;  %v4572_v40 = vpack.c.bf16 %v4554_v54, %v4553_v43  ;;  %v4330_v51 = vld [vmem:[#allocation2 + $0x109] sm:$0xff] }
 0x3a3   : > { %v4671_v10 = vpop.f32.mrf.mxu1  ;;  %v3746_v33 = vpop.f32.mrf.mxu3 }
 0x3a4   : > { %v3817_v25 = vadd.f32 %v3746_v33, %v8637_v31  ;;  %v4802_v48 = vmax.f32 %v4770_v24, 0.0  ;;  %v3653_v5 = vpack.c.bf16 %v3634_v60, %v3633_v37  ;;  %v4555_v24 = vmul.f32 %v4510_v63, %v4330_v51  ;;  %v4331_v33 = vld [vmem:[#allocation2 + $0x111] sm:$0xff] }
 0x3a6   : > { %v4831_v13 = vpack.c.bf16 %v4802_v48, %v4801_v6  ;;  %v4276_v35 = vadd.f32 %v9013_v30, %v3817_v25  ;;  %v3411_v25 = vld [vmem:[#allocation2 + $0xff] sm:$0xff]  ;;  %v4556_v48 = vmul.f32 %v9001_v32, %v4331_v33 }
 0x3a7   : > { %v3636_v26 = vmul.f32 %v9067_v19, %v3411_v25 }
 0x3a8   : > { %4931 = vmatmul.bf16.gmra.mxu2 %v4831_v13  ;;  %v4735_v55 = vadd.f32 %v9055_v47, %v4276_v35  ;;  %v9112_v6 = vpop.f32.mrf.mxu0  ;;  %v4573_v23 = vpack.c.bf16 %v4556_v48, %v4555_v24  ;;  %v9615_v24 = vld [vmem:[#allocation66_spill] sm:$0xff] }
 0x3a9   : > { %v3607_v53 = vpop.permute.xlu1 %3606 }
 0x3aa   : > { %v4771_v57 = vadd.f32 %v9032_v11, %v4735_v55 }
 0x3ab   : > { %v9101_v31 = vpop.f32.mrf.mxu1  ;;  %v3748_v16 = vpop.f32.mrf.mxu3 }
 0x3ac   : > { %v3818_v22 = vadd.f32 %v3748_v16, %v8666_v27  ;;  %v4803_v49 = vmax.f32 %v4771_v57, 0.0  ;;  %v4333_v57 = vld [vmem:[#allocation2 + $0x121] sm:$0xff] }
 0x3ae   : > { %4713 = vmatmul.bf16.gmra.mxu1 %v4572_v40  ;;  %v4277_v30 = vadd.f32 %v9026_v34, %v3818_v22  ;;  %v3410_v34 = vld [vmem:[#allocation2 + $0xf7] sm:$0xff] }
 0x3af   : > { %v3635_v13 = vmul.f32 %v8942_v12, %v3410_v34  ;;  %v4332_v22 = vld [vmem:[#allocation2 + $0x119] sm:$0xff] }
 0x3b0   : > { %3790 = vmatmul.bf16.gmra.mxu3 %v3653_v5  ;;  %v4736_v2 = vadd.f32 %v9069_v56, %v4277_v30  ;;  %v9123_v40 = vpop.f32.mrf.mxu0  ;;  %v9613_v5 = vld [vmem:[#allocation67_spill] sm:$0xff] }
 0x3b1   : > { %v3654_v37 = vpack.c.bf16 %v3636_v26, %v3635_v13  ;;  %v4520_v55 = vpop.permute.xlu1 %4519 }
 0x3b2   : > { %v4772_v0 = vadd.f32 %v9032_v11, %v4736_v2  ;;  %v4525_v2 = vpop.permute.xlu2 %4524 }
 0x3b3   : > { %v4676_v42 = vpop.f32.mrf.mxu1  ;;  %v3751_v1 = vpop.f32.mrf.mxu3 }
 0x3b4   : > { %v3819_v47 = vadd.f32 %v3751_v1, %v8694_v20  ;;  %v4804_v27 = vmax.f32 %v4772_v0, 0.0  ;;  %v9612_v20 = vld [vmem:[#allocation62_spill] sm:$0xff] }
 0x3b5   : > { %v3361_v43 = vadd.f32 %v8721_v44, %v9612_v20  ;;  %v3413_v1 = vld [vmem:[#allocation2 + $0x10f] sm:$0xff] }
 0x3b6   : > { %v4832_v8 = vpack.c.bf16 %v4804_v27, %v4803_v49  ;;  %v4278_v56 = vadd.f32 %v9047_v52, %v3819_v47  ;;  %v4558_v49 = vmul.f32 %v4525_v2, %v4333_v57  ;;  %v3638_v27 = vmul.f32 %v9095_v50, %v3413_v1 }
 0x3b8   : > { %4936 = vmatmul.bf16.gmra.mxu2 %v4832_v8  ;;  %v4737_v54 = vadd.f32 %v9081_v61, %v4278_v56  ;;  %v9614_v8 = vld [vmem:[#allocation69_spill] sm:$0xff]  ;;  %v4227_v48 = vpop.f32.mrf.mxu0 }
 0x3b9   : > { %v3363_v33 = vadd.f32 %v9615_v24, %v9614_v8  ;;  %v9619_v8 = vld [vmem:[#allocation36_spill] sm:$0xff] }
 0x3ba   : > { %v4773_v19 = vadd.f32 %v9032_v11, %v4737_v54  ;;  %v9616_v54 = vld [vmem:[#allocation48_spill] sm:$0xff] }
 0x3bb   : > { %v4679_v38 = vpop.f32.mrf.mxu1  ;;  %v3753_v35 = vpop.f32.mrf.mxu3  ;;  %v9620_v24 = vld [vmem:[#allocation24_spill] sm:$0xff] }
 0x3bc   : > { %v3820_v60 = vadd.f32 %v3753_v35, %v3361_v43  ;;  %v4805_v61 = vmax.f32 %v4773_v19, 0.0 }
 0x3be   : > { %4718 = vmatmul.bf16.gmra.mxu1 %v4573_v23  ;;  %v4279_v52 = vadd.f32 %v9060_v21, %v3820_v60  ;;  %v4557_v21 = vmul.f32 %v4520_v55, %v4332_v22  ;;  %v9617_v55 = vld [vmem:[#allocation31_spill] sm:$0xff]  ;;  %v9618_v22 = vld [vmem:[#allocation41_spill] sm:$0xff] }
 0x3c0   : > { %3795 = vmatmul.bf16.gmra.mxu3 %v3654_v37  ;;  %v4738_v32 = vadd.f32 %v4671_v10, %v4279_v52  ;;  %v3412_v10 = vld [vmem:[#allocation2 + $0x107] sm:$0xff]  ;;  %v4574_v34 = vpack.c.bf16 %v4558_v49, %v4557_v21  ;;  %v4230_v19 = vpop.f32.mrf.mxu0 }
 0x3c1   : > { %v3637_v51 = vmul.f32 %v8975_v29, %v3412_v10 }
 0x3c2   : > { %v4774_v44 = vadd.f32 %v9032_v11, %v4738_v32  ;;  %v3415_v32 = vld [vmem:[#allocation2 + $0x11f] sm:$0xff] }
 0x3c3   : > { %v4681_v12 = vpop.f32.mrf.mxu1  ;;  %v3756_v16 = vpop.f32.mrf.mxu3  ;;  %v3655_v20 = vpack.c.bf16 %v3638_v27, %v3637_v51 }
 0x3c4   : > { %v3821_v30 = vadd.f32 %v3756_v16, %v9613_v5  ;;  %v4806_v63 = vmax.f32 %v4774_v44, 0.0  ;;  %v3414_v44 = vld [vmem:[#allocation2 + $0x117] sm:$0xff]  ;;  %v3365_v5 = vadd.f32 %v9618_v22, %v9617_v55  ;;  %v9155_v22 = vpop.f32.mrf.mxu2 }
 0x3c6   : > { %v4833_v0 = vpack.c.bf16 %v4806_v63, %v4805_v61  ;;  %v4280_v47 = vadd.f32 %v9079_v59, %v3821_v30 }
 0x3c8   : > { %4941 = vmatmul.bf16.gmra.mxu2 %v4833_v0  ;;  %v4739_v26 = vadd.f32 %v9101_v31, %v4280_v47  ;;  %v4232_v21 = vpop.f32.mrf.mxu0 }
 0x3ca   : > { %v4775_v50 = vadd.f32 %v9032_v11, %v4739_v26 }
 0x3cb   : > { %v4684_v25 = vpop.f32.mrf.mxu1  ;;  %v3758_v56 = vpop.f32.mrf.mxu3 }
 0x3cc   : > { %v3822_v13 = vadd.f32 %v3758_v56, %v3363_v33  ;;  %v4807_v37 = vmax.f32 %v4775_v50, 0.0 }
 0x3ce   : > { %4723 = vmatmul.bf16.gmra.mxu1 %v4574_v34  ;;  %v4281_v59 = vadd.f32 %v9092_v28, %v3822_v13  ;;  %v3640_v28 = vmul.f32 %v3607_v53, %v3415_v32 }
 0x3d0   : > { %3800 = vmatmul.bf16.gmra.mxu3 %v3655_v20  ;;  %v4740_v43 = vadd.f32 %v4676_v42, %v4281_v59  ;;  %v3639_v42 = vmul.f32 %v9005_v62, %v3414_v44  ;;  %v4235_v33 = vpop.f32.mrf.mxu0 }
 0x3d2   : > { %v4776_v29 = vadd.f32 %v9032_v11, %v4740_v43  ;;  %v3656_v57 = vpack.c.bf16 %v3640_v28, %v3639_v42 }
 0x3d3   : > { %v4686_v23 = vpop.f32.mrf.mxu1  ;;  %v3761_v35 = vpop.f32.mrf.mxu3 }
 0x3d4   : > { %v3823_v60 = vadd.f32 %v3761_v35, %v9616_v54  ;;  %v4808_v52 = vmax.f32 %v4776_v29, 0.0 }
 0x3d6   : > { %v4834_v31 = vpack.c.bf16 %v4808_v52, %v4807_v37  ;;  %v4282_v16 = vadd.f32 %v9105_v14, %v3823_v60  ;;  %v9621_v52 = vld [vmem:[#allocation22_spill] sm:$0xff] }
 0x3d8   : > { %4946 = vmatmul.bf16.gmra.mxu2 %v4834_v31  ;;  %v4741_v63 = vadd.f32 %v4679_v38, %v4282_v16  ;;  %v4237_v50 = vpop.f32.mrf.mxu0 }
 0x3da   : > { %v4777_v10 = vadd.f32 %v9032_v11, %v4741_v63 }
 0x3db   : > { %v4689_v30 = vpop.f32.mrf.mxu1  ;;  %v3763_v61 = vpop.f32.mrf.mxu3 }
 0x3dc   : > { %v3824_v2 = vadd.f32 %v3763_v61, %v3365_v5  ;;  %v4809_v49 = vmax.f32 %v4777_v10, 0.0 }
 0x3de   : > { %v4283_v0 = vadd.f32 %v9112_v6, %v3824_v2  ;;  %v3367_v6 = vadd.f32 %v9620_v24, %v9619_v8 }
 0x3e0   : > { %3805 = vmatmul.bf16.gmra.mxu3 %v3656_v57  ;;  %v4742_v1 = vadd.f32 %v4681_v12, %v4283_v0  ;;  %v4240_v44 = vpop.f32.mrf.mxu0  ;;  %v309_v57 = vld [vmem:[%s6289_s11] sm:$0xff]  }
 0x3e2   : > { %v4778_v53 = vadd.f32 %v9032_v11, %v4742_v1  ;;  %v9623_v1 = vld [vmem:[#allocation47_spill] sm:$0xff] }
 0x3e3   : > { %v4691_v14 = vpop.f32.mrf.mxu1  ;;  %v3766_v47 = vpop.f32.mrf.mxu3  ;;  %v3371_v10 = vadd.f32 %v8925_v36, %v9623_v1 }
 0x3e4   : > { %v3825_v62 = vadd.f32 %v3766_v47, %v8838_v9  ;;  %v4810_v27 = vmax.f32 %v4778_v53, 0.0  ;;  %v5002_v53 = vunpack.c.l.bf16 %v309_v57 }
 0x3e6   : > { %v4835_v51 = vpack.c.bf16 %v4810_v27, %v4809_v49  ;;  %v4284_v38 = vadd.f32 %v9123_v40, %v3825_v62 }
 0x3e8   : > { %4951 = vmatmul.bf16.gmra.mxu2 %v4835_v51  ;;  %v4743_v12 = vadd.f32 %v4684_v25, %v4284_v38  ;;  %v9622_v25 = vld [vmem:[#allocation65_spill] sm:$0xff] }
 0x3e9   : > { %v3369_v32 = vadd.f32 %v9622_v25, %v9621_v52 }
 0x3ea   : > { %v4779_v59 = vadd.f32 %v9032_v11, %v4743_v12 }
 0x3eb   : > { %v3768_v34 = vpop.f32.mrf.mxu3  ;;  %v4694_v56 = vpop.f32.mrf.mxu1 }
 0x3ec   : > { %v3826_v26 = vadd.f32 %v3768_v34, %v3367_v6  ;;  %v4811_v40 = vmax.f32 %v4779_v59, 0.0 }
 0x3ee   : > { %v4285_v13 = vadd.f32 %v4227_v48, %v3826_v26 }
 0x3f0   : > { %v4744_v20 = vadd.f32 %v4686_v23, %v4285_v13  ;;  %v9624_v13 = vld [vmem:[#allocation51_spill] sm:$0xff] }
 0x3f2   : > { %v4780_v9 = vadd.f32 %v9032_v11, %v4744_v20 }
 0x3f3   : > { %v3771_v43 = vpop.f32.mrf.mxu3  ;;  %v4696_v54 = vpop.f32.mrf.mxu1 }
 0x3f4   : > { %v3827_v29 = vadd.f32 %v3771_v43, %v8879_v18  ;;  %v4812_v35 = vmax.f32 %v4780_v9, 0.0 }
 0x3f6   : > { %v4836_v60 = vpack.c.bf16 %v4812_v35, %v4811_v40  ;;  %v4286_v37 = vadd.f32 %v4230_v19, %v3827_v29  ;;  %v311_v40 = vld [vmem:[%s6289_s11 + $0x8] sm:$0xff]  }
 0x3f7   : > { %v5004_v25 = vunpack.c.l.bf16 %v311_v40 }
 0x3f8   : > { %4956 = vmatmul.bf16.gmra.mxu2 %v4836_v60  ;;  %v4745_v23 = vadd.f32 %v4689_v30, %v4286_v37  ;;  %v4242_v30 = vpop.f32.mrf.mxu0  ;;  %v9625_v60 = vld [vmem:[#allocation35_spill] sm:$0xff]  ;;  %v9626_v37 = vld [vmem:[#allocation38_spill] sm:$0xff] }
 0x3f9   : > { %v3373_v52 = vadd.f32 %v9626_v37, %v9625_v60 }
 0x3fa   : > { %v4781_v55 = vadd.f32 %v9032_v11, %v4745_v23 }
 0x3fb   : > { %v3773_v48 = vpop.f32.mrf.mxu3  ;;  %v4699_v28 = vpop.f32.mrf.mxu1 }
 0x3fc   : > { %v3828_v31 = vadd.f32 %v3773_v48, %v3369_v32  ;;  %v4813_v61 = vmax.f32 %v4781_v55, 0.0 }
 0x3fe   : > { %v4287_v16 = vadd.f32 %v4232_v21, %v3828_v31  ;;  %v9162_v21 = vld [vmem:[%s9293_s7] ss:$0 sm:$0xff] }
 0x400   : > { %v4746_v42 = vadd.f32 %v4691_v14, %v4287_v16  ;;  %v4245_v6 = vpop.f32.mrf.mxu0 }
 0x402   : > { %v4782_v18 = vadd.f32 %v9032_v11, %v4746_v42 }
 0x403   : > { %v3776_v5 = vpop.f32.mrf.mxu3  ;;  %v4701_v14 = vpop.f32.mrf.mxu1 }
 0x404   : > { %v3829_v19 = vadd.f32 %v3776_v5, %v8911_v17  ;;  %v4814_v63 = vmax.f32 %v4782_v18, 0.0 }
 0x406   : > { %v4837_v2 = vpack.c.bf16 %v4814_v63, %v4813_v61  ;;  %v4288_v0 = vadd.f32 %v4235_v33, %v3829_v19  ;;  %v5003_v33 = vunpack.c.h.bf16 %v309_v57  ;;  %v5005_v63 = vunpack.c.h.bf16 %v311_v40 }
 0x408   : > { %4961 = vmatmul.bf16.gmra.mxu2 %v4837_v2  ;;  %v4747_v62 = vadd.f32 %v4694_v56, %v4288_v0  ;;  %v4247_v23 = vpop.f32.mrf.mxu0 }
 0x40a   : > { %v4783_v24 = vadd.f32 %v9032_v11, %v4747_v62 }
 0x40b   : > { %v3778_v47 = vpop.f32.mrf.mxu3  ;;  %v4922_v17 = vpop.f32.mrf.mxu2 }
 0x40c   : > { %v3830_v49 = vadd.f32 %v3778_v47, %v3371_v10  ;;  %v4923_v27 = vadd.f32 %v9162_v21, %v4922_v17  ;;  %v4704_v26 = vpop.f32.mrf.mxu1  ;;  %v4815_v9 = vmax.f32 %v4783_v24, 0.0 }
 0x40e   : > { %v4289_v51 = vadd.f32 %v4237_v50, %v3830_v49  ;;  %v5034_v38 = vadd.f32 %v5002_v53, %v4923_v27 }
 0x410   : > { %v4748_v8 = vadd.f32 %v4696_v54, %v4289_v51  ;;  %v5066_v36 = vmax.f32 %v5034_v38, 0.0  ;;  %v9627_v51 = vld [vmem:[#allocation64_spill] sm:$0xff]  ;;  %v9628_v38 = vld [vmem:[#allocation11_spill] sm:$0xff] }
 0x412   : > { %5098 = vst [vmem:[%s9171_s13] sm:$0xff] %v5066_v36  ;;  %v4784_v34 = vadd.f32 %v9032_v11, %v4748_v8  ;;  %v3375_v8 = vadd.f32 %v9628_v38, %v9627_v51  ;;  %v317_v38 = vld [vmem:[%s6289_s11 + $0x20] sm:$0xff]  }
 0x413   : > { %v3781_v12 = vpop.f32.mrf.mxu3  ;;  %v4924_v56 = vpop.f32.mrf.mxu2 }
 0x414   : > { %v3831_v20 = vadd.f32 %v3781_v12, %v9624_v13  ;;  %v4925_v59 = vadd.f32 %v9162_v21, %v4924_v56  ;;  %v4816_v43 = vmax.f32 %v4784_v34, 0.0  ;;  %v4706_v55 = vpop.f32.mrf.mxu1 }
 0x416   : > { %v5035_v50 = vadd.f32 %v5003_v33, %v4925_v59  ;;  %v4838_v29 = vpack.c.bf16 %v4816_v43, %v4815_v9  ;;  %v4290_v35 = vadd.f32 %v4240_v44, %v3831_v20 }
 0x418   : > { %v5067_v54 = vmax.f32 %v5035_v50, 0.0  ;;  %4966 = vmatmul.bf16.gmra.mxu2 %v4838_v29  ;;  %v4749_v31 = vadd.f32 %v4699_v28, %v4290_v35 }
 0x41a   : > { %5099 = vst [vmem:[%s9171_s13 + $0x8] sm:$0xff] %v5067_v54  ;;  %v4785_v61 = vadd.f32 %v9032_v11, %v4749_v31  ;;  %v9629_v31 = vld [vmem:[#allocation50_spill] sm:$0xff] }
 0x41b   : > { %v3783_v32 = vpop.f32.mrf.mxu3  ;;  %v4927_v48 = vpop.f32.mrf.mxu2 }
 0x41c   : > { %v3832_v16 = vadd.f32 %v3783_v32, %v3373_v52  ;;  %v4928_v42 = vadd.f32 %v9162_v21, %v4927_v48  ;;  %v4817_v10 = vmax.f32 %v4785_v61, 0.0  ;;  %v4709_v62 = vpop.f32.mrf.mxu1  ;;  %v315_v32 = vld [vmem:[%s6289_s11 + $0x18] sm:$0xff]  }
 0x41e   : > { %v4291_v18 = vadd.f32 %v4242_v30, %v3832_v16  ;;  %v5036_v5 = vadd.f32 %v5004_v25, %v4928_v42  ;;  %v4250_v30 = vpop.f32.mrf.mxu0  ;;  %v3377_v16 = vadd.f32 %v9018_v58, %v9629_v31 }
 0x420   : > { %v4750_v44 = vadd.f32 %v4701_v14, %v4291_v18  ;;  %v5068_v19 = vmax.f32 %v5036_v5, 0.0  ;;  %v313_v14 = vld [vmem:[%s6289_s11 + $0x10] sm:$0xff]  }
 0x421   : > { %v5006_v36 = vunpack.c.l.bf16 %v313_v14  ;;  %v5007_v50 = vunpack.c.h.bf16 %v313_v14 }
 0x422   : > { %5100 = vst [vmem:[%s9171_s13 + $0x10] sm:$0xff] %v5068_v19  ;;  %v4786_v2 = vadd.f32 %v9032_v11, %v4750_v44 }
 0x423   : > { %v3786_v57 = vpop.f32.mrf.mxu3  ;;  %v4929_v0 = vpop.f32.mrf.mxu2 }
 0x424   : > { %v3833_v28 = vadd.f32 %v3786_v57, %v8978_v46  ;;  %v4930_v1 = vadd.f32 %v9162_v21, %v4929_v0  ;;  %v4818_v53 = vmax.f32 %v4786_v2, 0.0  ;;  %v4711_v43 = vpop.f32.mrf.mxu1 }
 0x426   : > { %v5037_v47 = vadd.f32 %v5005_v63, %v4930_v1  ;;  %v4839_v17 = vpack.c.bf16 %v4818_v53, %v4817_v10  ;;  %v4292_v49 = vadd.f32 %v4245_v6, %v3833_v28  ;;  %v4252_v20 = vpop.f32.mrf.mxu0  ;;  %v5009_v1 = vunpack.c.h.bf16 %v315_v32 }
 0x428   : > { %v5069_v27 = vmax.f32 %v5037_v47, 0.0  ;;  %4971 = vmatmul.bf16.gmra.mxu2 %v4839_v17  ;;  %v4751_v33 = vadd.f32 %v4704_v26, %v4292_v49 }
 0x42a   : > { %5101 = vst [vmem:[%s9171_s13 + $0x18] sm:$0xff] %v5069_v27  ;;  %v4787_v9 = vadd.f32 %v9032_v11, %v4751_v33  ;;  %v5010_v33 = vunpack.c.l.bf16 %v317_v38 }
 0x42b   : > { %v3788_v24 = vpop.f32.mrf.mxu3  ;;  %v4932_v46 = vpop.f32.mrf.mxu2 }
 0x42c   : > { %v3834_v34 = vadd.f32 %v3788_v24, %v3375_v8  ;;  %v4933_v12 = vadd.f32 %v9162_v21, %v4932_v46  ;;  %v4819_v60 = vmax.f32 %v4787_v9, 0.0  ;;  %v9630_v24 = vld [vmem:[#allocation46_spill] sm:$0xff] }
 0x42d   : > { %v3379_v46 = vadd.f32 %v9049_v3, %v9630_v24 }
 0x42e   : > { %v4293_v56 = vadd.f32 %v4247_v23, %v3834_v34  ;;  %v5038_v13 = vadd.f32 %v5006_v36, %v4933_v12  ;;  %v4255_v42 = vpop.f32.mrf.mxu0 }
 0x430   : > { %v4752_v59 = vadd.f32 %v4706_v55, %v4293_v56  ;;  %v5070_v6 = vmax.f32 %v5038_v13, 0.0  ;;  %v5008_v55 = vunpack.c.l.bf16 %v315_v32 }
 0x432   : > { %5102 = vst [vmem:[%s9171_s13 + $0x20] sm:$0xff] %v5070_v6  ;;  %v4788_v29 = vadd.f32 %v9032_v11, %v4752_v59 }
 0x433   : > { %v3791_v40 = vpop.f32.mrf.mxu3  ;;  %v4934_v35 = vpop.f32.mrf.mxu2 }
 0x434   : > { %v3835_v26 = vadd.f32 %v3791_v40, %v9008_v41  ;;  %v4935_v54 = vadd.f32 %v9162_v21, %v4934_v35  ;;  %v4820_v37 = vmax.f32 %v4788_v29, 0.0  ;;  %v4714_v41 = vpop.f32.mrf.mxu1  ;;  %v5011_v40 = vunpack.c.h.bf16 %v317_v38 }
 0x436   : > { %v5039_v52 = vadd.f32 %v5007_v50, %v4935_v54  ;;  %v4840_v25 = vpack.c.bf16 %v4820_v37, %v4819_v60  ;;  %v4294_v48 = vadd.f32 %v4250_v30, %v3835_v26  ;;  %v4257_v30 = vpop.f32.mrf.mxu0 }
 0x438   : > { %v5071_v23 = vmax.f32 %v5039_v52, 0.0  ;;  %4976 = vmatmul.bf16.gmra.mxu2 %v4840_v25  ;;  %v4753_v44 = vadd.f32 %v4709_v62, %v4294_v48  ;;  %v319_v48 = vld [vmem:[%s6289_s11 + $0x28] sm:$0xff]  }
 0x43a   : > { %5103 = vst [vmem:[%s9171_s13 + $0x28] sm:$0xff] %v5071_v23  ;;  %v4789_v28 = vadd.f32 %v9032_v11, %v4753_v44 }
 0x43b   : > { %v3793_v18 = vpop.f32.mrf.mxu3  ;;  %v4937_v5 = vpop.f32.mrf.mxu2 }
 0x43c   : > { %v3836_v19 = vadd.f32 %v3793_v18, %v3377_v16  ;;  %v4938_v61 = vadd.f32 %v9162_v21, %v4937_v5  ;;  %v4821_v14 = vmax.f32 %v4789_v28, 0.0  ;;  %v4716_v49 = vpop.f32.mrf.mxu1  ;;  %v5012_v5 = vunpack.c.l.bf16 %v319_v48 }
 0x43e   : > { %v4295_v63 = vadd.f32 %v4252_v20, %v3836_v19  ;;  %v5040_v2 = vadd.f32 %v5008_v55, %v4938_v61  ;;  %v4260_v20 = vpop.f32.mrf.mxu0 }
 0x440   : > { %v4754_v57 = vadd.f32 %v4711_v43, %v4295_v63  ;;  %v5072_v0 = vmax.f32 %v5040_v2, 0.0 }
 0x442   : > { %5104 = vst [vmem:[%s9171_s13 + $0x30] sm:$0xff] %v5072_v0  ;;  %v4790_v58 = vadd.f32 %v9032_v11, %v4754_v57 }
 0x443   : > { %v3796_v10 = vpop.f32.mrf.mxu3  ;;  %v4939_v53 = vpop.f32.mrf.mxu2 }
 0x444   : > { %v3837_v47 = vadd.f32 %v3796_v10, %v9041_v45  ;;  %v4940_v17 = vadd.f32 %v9162_v21, %v4939_v53  ;;  %v4822_v62 = vmax.f32 %v4790_v58, 0.0  ;;  %v4719_v9 = vpop.f32.mrf.mxu1  ;;  %v5013_v58 = vunpack.c.h.bf16 %v319_v48 }
 0x446   : > { %v5041_v27 = vadd.f32 %v5009_v1, %v4940_v17  ;;  %v4841_v51 = vpack.c.bf16 %v4822_v62, %v4821_v14  ;;  %v4296_v8 = vadd.f32 %v4255_v42, %v3837_v47  ;;  %v4262_v23 = vpop.f32.mrf.mxu0  ;;  %v9631_v42 = vld [vmem:[#allocation39_spill] sm:$0xff] }
 0x447   : > { %v3381_v55 = vadd.f32 %v9073_v39, %v9631_v42 }
 0x448   : > { %v5073_v36 = vmax.f32 %v5041_v27, 0.0  ;;  %4981 = vmatmul.bf16.gmra.mxu2 %v4841_v51  ;;  %v4755_v45 = vadd.f32 %v4714_v41, %v4296_v8  ;;  %v321_v51 = vld [vmem:[%s6289_s11 + $0x30] sm:$0xff]  }
 0x449   : > { %v5014_v24 = vunpack.c.l.bf16 %v321_v51 }
 0x44a   : > { %5105 = vst [vmem:[%s9171_s13 + $0x38] sm:$0xff] %v5073_v36  ;;  %v4791_v29 = vadd.f32 %v9032_v11, %v4755_v45  ;;  %v3383_v36 = vadd.f32 %v9155_v22, %v9011_v7  ;;  %v5015_v7 = vunpack.c.h.bf16 %v321_v51 }
 0x44b   : > { %v3798_v34 = vpop.f32.mrf.mxu3  ;;  %v4942_v12 = vpop.f32.mrf.mxu2 }
 0x44c   : > { %v3838_v56 = vadd.f32 %v3798_v34, %v3379_v46  ;;  %v4943_v13 = vadd.f32 %v9162_v21, %v4942_v12  ;;  %v4823_v37 = vmax.f32 %v4791_v29, 0.0  ;;  %v4721_v18 = vpop.f32.mrf.mxu1 }
 0x44e   : > { %v4297_v59 = vadd.f32 %v4257_v30, %v3838_v56  ;;  %v5042_v6 = vadd.f32 %v5010_v33, %v4943_v13  ;;  %v4265_v1 = vpop.f32.mrf.mxu0 }
 0x450   : > { %v4756_v43 = vadd.f32 %v4716_v49, %v4297_v59  ;;  %v5074_v50 = vmax.f32 %v5042_v6, 0.0 }
 0x452   : > { %5106 = vst [vmem:[%s9171_s13 + $0x40] sm:$0xff] %v5074_v50  ;;  %v4792_v3 = vadd.f32 %v9032_v11, %v4756_v43 }
 0x453   : > { %v3801_v35 = vpop.f32.mrf.mxu3  ;;  %v4944_v26 = vpop.f32.mrf.mxu2 }
 0x454   : > { %v3839_v54 = vadd.f32 %v3801_v35, %v9064_v4  ;;  %v4945_v60 = vadd.f32 %v9162_v21, %v4944_v26  ;;  %v4824_v52 = vmax.f32 %v4792_v3, 0.0  ;;  %v4724_v62 = vpop.f32.mrf.mxu1  ;;  %v323_v26 = vld [vmem:[%s6289_s11 + $0x38] sm:$0xff]  }
 0x456   : > { %v5043_v25 = vadd.f32 %v5011_v40, %v4945_v60  ;;  %v4842_v32 = vpack.c.bf16 %v4824_v52, %v4823_v37  ;;  %v4298_v31 = vadd.f32 %v4260_v20, %v3839_v54  ;;  %v4267_v45 = vpop.f32.mrf.mxu0  ;;  %v5016_v60 = vunpack.c.l.bf16 %v323_v26 }
 0x458   : > { %v5075_v16 = vmax.f32 %v5043_v25, 0.0  ;;  %4986 = vmatmul.bf16.gmra.mxu2 %v4842_v32  ;;  %v4757_v44 = vadd.f32 %v4719_v9, %v4298_v31  ;;  %v5017_v32 = vunpack.c.h.bf16 %v323_v26 }
 0x45a   : > { %5107 = vst [vmem:[%s9171_s13 + $0x48] sm:$0xff] %v5075_v16  ;;  %v4793_v28 = vadd.f32 %v9032_v11, %v4757_v44  ;;  %v325_v16 = vld [vmem:[%s6289_s11 + $0x40] sm:$0xff]  }
 0x45b   : > { %v3803_v41 = vpop.f32.mrf.mxu3  ;;  %v4947_v4 = vpop.f32.mrf.mxu2  ;;  %v5019_v44 = vunpack.c.h.bf16 %v325_v16 }
 0x45c   : > { %v3840_v19 = vadd.f32 %v3803_v41, %v3381_v55  ;;  %v4948_v61 = vadd.f32 %v9162_v21, %v4947_v4  ;;  %v4825_v17 = vmax.f32 %v4793_v28, 0.0  ;;  %v4726_v20 = vpop.f32.mrf.mxu1  ;;  %v5018_v55 = vunpack.c.l.bf16 %v325_v16 }
 0x45e   : > { %v4299_v63 = vadd.f32 %v4262_v23, %v3840_v19  ;;  %v5044_v2 = vadd.f32 %v5012_v5, %v4948_v61 }
 0x460   : > { %v4758_v57 = vadd.f32 %v4721_v18, %v4299_v63  ;;  %v5076_v0 = vmax.f32 %v5044_v2, 0.0  ;;  %v327_v2 = vld [vmem:[%s6289_s11 + $0x48] sm:$0xff]  }
 0x462   : > { %5108 = vst [vmem:[%s9171_s13 + $0x50] sm:$0xff] %v5076_v0  ;;  %v4794_v39 = vadd.f32 %v9032_v11, %v4758_v57  ;;  %v5020_v0 = vunpack.c.l.bf16 %v327_v2 }
 0x463   : > { %v3806_v10 = vpop.f32.mrf.mxu3  ;;  %v4949_v53 = vpop.f32.mrf.mxu2 }
 0x464   : > { %v3841_v30 = vadd.f32 %v3806_v10, %v9088_v15  ;;  %v4950_v47 = vadd.f32 %v9162_v21, %v4949_v53  ;;  %v4826_v14 = vmax.f32 %v4794_v39, 0.0  ;;  %v5021_v10 = vunpack.c.h.bf16 %v327_v2 }
 0x466   : > { %v5045_v49 = vadd.f32 %v5013_v58, %v4950_v47  ;;  %v4843_v27 = vpack.c.bf16 %v4826_v14, %v4825_v17  ;;  %v4300_v38 = vadd.f32 %v4265_v1, %v3841_v30  ;;  %v329_v17 = vld [vmem:[%s6289_s11 + $0x50] sm:$0xff]  }
 0x468   : > { %v5077_v8 = vmax.f32 %v5045_v49, 0.0  ;;  %4991 = vmatmul.bf16.gmra.mxu2 %v4843_v27  ;;  %v4759_v15 = vadd.f32 %v4724_v62, %v4300_v38  ;;  %v5022_v62 = vunpack.c.l.bf16 %v329_v17 }
 0x46a   : > { %5109 = vst [vmem:[%s9171_s13 + $0x58] sm:$0xff] %v5077_v8  ;;  %v4795_v9 = vadd.f32 %v9032_v11, %v4759_v15  ;;  %v5023_v8 = vunpack.c.h.bf16 %v329_v17 }
 0x46b   : > { %v3808_v46 = vpop.f32.mrf.mxu3  ;;  %v4952_v33 = vpop.f32.mrf.mxu2 }
 0x46c   : > { %v3842_v34 = vadd.f32 %v3808_v46, %v3383_v36  ;;  %v4953_v12 = vadd.f32 %v9162_v21, %v4952_v33  ;;  %v4827_v29 = vmax.f32 %v4795_v9, 0.0  ;;  %v331_v33 = vld [vmem:[%s6289_s11 + $0x58] sm:$0xff]  }
 0x46e   : > { %v4301_v56 = vadd.f32 %v4267_v45, %v3842_v34  ;;  %v5046_v13 = vadd.f32 %v5014_v24, %v4953_v12  ;;  %v5024_v34 = vunpack.c.l.bf16 %v331_v33 }
 0x470   : > { %v4760_v59 = vadd.f32 %v4726_v20, %v4301_v56  ;;  %v5078_v6 = vmax.f32 %v5046_v13, 0.0  ;;  %v5025_v20 = vunpack.c.h.bf16 %v331_v33 }
 0x472   : > { %5110 = vst [vmem:[%s9171_s13 + $0x60] sm:$0xff] %v5078_v6  ;;  %v4796_v22 = vadd.f32 %v9032_v11, %v4760_v59 }
 0x473   : > { %v4954_v43 = vpop.f32.mrf.mxu2 }
 0x474   : > { %v4955_v50 = vadd.f32 %v9162_v21, %v4954_v43  ;;  %v4828_v40 = vmax.f32 %v4796_v22, 0.0 }
 0x476   : > { %v5047_v3 = vadd.f32 %v5015_v7, %v4955_v50  ;;  %v4844_v35 = vpack.c.bf16 %v4828_v40, %v4827_v29  ;;  %v333_v7 = vld [vmem:[%s6289_s11 + $0x60] sm:$0xff]  }
 0x477   : > { %v5026_v43 = vunpack.c.l.bf16 %v333_v7 }
 0x478   : > { %v5079_v54 = vmax.f32 %v5047_v3, 0.0  ;;  %4996 = vmatmul.bf16.gmra.mxu2 %v4844_v35  ;;  %v5027_v35 = vunpack.c.h.bf16 %v333_v7 }
 0x47a   : > { %5111 = vst [vmem:[%s9171_s13 + $0x68] sm:$0xff] %v5079_v54 }
 0x47b   : > { %v4957_v37 = vpop.f32.mrf.mxu2 }
 0x47c   : > { %v4958_v52 = vadd.f32 %v9162_v21, %v4957_v37  ;;  %v335_v37 = vld [vmem:[%s6289_s11 + $0x68] sm:$0xff]  }
 0x47e   : > { %v5048_v11 = vadd.f32 %v5016_v60, %v4958_v52 }
 0x480   : > { %v5080_v25 = vmax.f32 %v5048_v11, 0.0  ;;  %v5028_v11 = vunpack.c.l.bf16 %v335_v37 }
 0x482   : > { %5112 = vst [vmem:[%s9171_s13 + $0x70] sm:$0xff] %v5080_v25 }
 0x483   : > { %v4959_v48 = vpop.f32.mrf.mxu2 }
 0x484   : > { %v4960_v23 = vadd.f32 %v9162_v21, %v4959_v48 }
 0x486   : > { %v5049_v31 = vadd.f32 %v5017_v32, %v4960_v23 }
 0x488   : > { %v5081_v42 = vmax.f32 %v5049_v31, 0.0  ;;  %v5029_v31 = vunpack.c.h.bf16 %v335_v37 }
 0x48a   : > { %5113 = vst [vmem:[%s9171_s13 + $0x78] sm:$0xff] %v5081_v42 }
 0x48b   : > { %v4962_v18 = vpop.f32.mrf.mxu2 }
 0x48c   : > { %v4963_v5 = vadd.f32 %v9162_v21, %v4962_v18  ;;  %v337_v18 = vld [vmem:[%s6289_s11 + $0x70] sm:$0xff]  }
 0x48e   : > { %v5050_v41 = vadd.f32 %v5018_v55, %v4963_v5 }
 0x490   : > { %v5082_v4 = vmax.f32 %v5050_v41, 0.0  ;;  %v5030_v41 = vunpack.c.l.bf16 %v337_v18 }
 0x492   : > { %5114 = vst [vmem:[%s9171_s13 + $0x80] sm:$0xff] %v5082_v4 }
 0x493   : > { %v4964_v19 = vpop.f32.mrf.mxu2 }
 0x494   : > { %v4965_v61 = vadd.f32 %v9162_v21, %v4964_v19 }
 0x496   : > { %v5051_v63 = vadd.f32 %v5019_v44, %v4965_v61 }
 0x498   : > { %v5083_v57 = vmax.f32 %v5051_v63, 0.0  ;;  %v5031_v63 = vunpack.c.h.bf16 %v337_v18 }
 0x49a   : > { %5115 = vst [vmem:[%s9171_s13 + $0x88] sm:$0xff] %v5083_v57 }
 0x49b   : > { %v4967_v28 = vpop.f32.mrf.mxu2 }
 0x49c   : > { %v4968_v1 = vadd.f32 %v9162_v21, %v4967_v28  ;;  %v339_v28 = vld [vmem:[%s6289_s11 + $0x78] sm:$0xff]  }
 0x49e   : > { %v5052_v58 = vadd.f32 %v5020_v0, %v4968_v1 }
 0x4a0   : > { %v5084_v39 = vmax.f32 %v5052_v58, 0.0  ;;  %v5032_v58 = vunpack.c.l.bf16 %v339_v28 }
 0x4a2   : > { %5116 = vst [vmem:[%s9171_s13 + $0x90] sm:$0xff] %v5084_v39 }
 0x4a3   : > { %v4969_v53 = vpop.f32.mrf.mxu2 }
 0x4a4   : > { %v4970_v30 = vadd.f32 %v9162_v21, %v4969_v53 }
 0x4a6   : > { %v5053_v47 = vadd.f32 %v5021_v10, %v4970_v30 }
 0x4a8   : > { %v5085_v14 = vmax.f32 %v5053_v47, 0.0  ;;  %v5033_v47 = vunpack.c.h.bf16 %v339_v28 }
 0x4aa   : > { %5117 = vst [vmem:[%s9171_s13 + $0x98] sm:$0xff] %v5085_v14 }
 0x4ab   : > { %v4972_v49 = vpop.f32.mrf.mxu2 }
 0x4ac   : > { %v4973_v27 = vadd.f32 %v9162_v21, %v4972_v49 }
 0x4ae   : > { %v5054_v51 = vadd.f32 %v5022_v62, %v4973_v27 }
 0x4b0   : > { %v5086_v38 = vmax.f32 %v5054_v51, 0.0 }
 0x4b2   : > { %5118 = vst [vmem:[%s9171_s13 + $0xa0] sm:$0xff] %v5086_v38 }
 0x4b3   : > { %v4974_v36 = vpop.f32.mrf.mxu2 }
 0x4b4   : > { %v4975_v24 = vadd.f32 %v9162_v21, %v4974_v36 }
 0x4b6   : > { %v5055_v46 = vadd.f32 %v5023_v8, %v4975_v24 }
 0x4b8   : > { %v5087_v15 = vmax.f32 %v5055_v46, 0.0 }
 0x4ba   : > { %5119 = vst [vmem:[%s9171_s13 + $0xa8] sm:$0xff] %v5087_v15 }
 0x4bb   : > { %v4977_v12 = vpop.f32.mrf.mxu2 }
 0x4bc   : > { %v4978_v45 = vadd.f32 %v9162_v21, %v4977_v12 }
 0x4be   : > { %v5056_v56 = vadd.f32 %v5024_v34, %v4978_v45 }
 0x4c0   : > { %v5088_v13 = vmax.f32 %v5056_v56, 0.0 }
 0x4c2   : > { %5120 = vst [vmem:[%s9171_s13 + $0xb0] sm:$0xff] %v5088_v13 }
 0x4c3   : > { %v4979_v59 = vpop.f32.mrf.mxu2 }
 0x4c4   : > { %v4980_v6 = vadd.f32 %v9162_v21, %v4979_v59 }
 0x4c6   : > { %v5057_v9 = vadd.f32 %v5025_v20, %v4980_v6 }
 0x4c8   : > { %v5089_v22 = vmax.f32 %v5057_v9, 0.0 }
 0x4ca   : > { %5121 = vst [vmem:[%s9171_s13 + $0xb8] sm:$0xff] %v5089_v22 }
 0x4cb   : > { %v4982_v50 = vpop.f32.mrf.mxu2 }
 0x4cc   : > { %v4983_v29 = vadd.f32 %v9162_v21, %v4982_v50 }
 0x4ce   : > { %v5058_v40 = vadd.f32 %v5026_v43, %v4983_v29 }
 0x4d0   : > { %v5090_v3 = vmax.f32 %v5058_v40, 0.0 }
 0x4d2   : > { %5122 = vst [vmem:[%s9171_s13 + $0xc0] sm:$0xff] %v5090_v3 }
 0x4d3   : > { %v4984_v26 = vpop.f32.mrf.mxu2 }
 0x4d4   : > { %v4985_v54 = vadd.f32 %v9162_v21, %v4984_v26 }
 0x4d6   : > { %v5059_v60 = vadd.f32 %v5027_v35, %v4985_v54 }
 0x4d8   : > { %v5091_v52 = vmax.f32 %v5059_v60, 0.0 }
 0x4da   : > { %5123 = vst [vmem:[%s9171_s13 + $0xc8] sm:$0xff] %v5091_v52 }
 0x4db   : > { %v4987_v25 = vpop.f32.mrf.mxu2 }
 0x4dc   : > { %v4988_v32 = vadd.f32 %v9162_v21, %v4987_v25 }
 0x4de   : > { %v5060_v48 = vadd.f32 %v5028_v11, %v4988_v32 }
 0x4e0   : > { %v5092_v23 = vmax.f32 %v5060_v48, 0.0 }
 0x4e2   : > { %5124 = vst [vmem:[%s9171_s13 + $0xd0] sm:$0xff] %v5092_v23 }
 0x4e3   : > { %v4989_v16 = vpop.f32.mrf.mxu2 }
 0x4e4   : > { %v4990_v42 = vadd.f32 %v9162_v21, %v4989_v16 }
 0x4e6   : > { %v5061_v55 = vadd.f32 %v5029_v31, %v4990_v42 }
 0x4e8   : > { %v5093_v5 = vmax.f32 %v5061_v55, 0.0 }
 0x4ea   : > { %5125 = vst [vmem:[%s9171_s13 + $0xd8] sm:$0xff] %v5093_v5 }
 0x4eb   : > { %v4992_v4 = vpop.f32.mrf.mxu2 }
 0x4ec   : > { %v4993_v44 = vadd.f32 %v9162_v21, %v4992_v4 }
 0x4ee   : > { %v5062_v19 = vadd.f32 %v5030_v41, %v4993_v44 }
 0x4f0   : > { %v5094_v61 = vmax.f32 %v5062_v19, 0.0 }
 0x4f2   : > { %5126 = vst [vmem:[%s9171_s13 + $0xe0] sm:$0xff] %v5094_v61 }
 0x4f3   : > { %v4994_v2 = vpop.f32.mrf.mxu2 }
 0x4f4   : > { %v4995_v57 = vadd.f32 %v9162_v21, %v4994_v2 }
 0x4f6   : > { %v5063_v0 = vadd.f32 %v5031_v63, %v4995_v57 }
 0x4f8   : > { %v5095_v1 = vmax.f32 %v5063_v0, 0.0 }
 0x4fa   : > { %5127 = vst [vmem:[%s9171_s13 + $0xe8] sm:$0xff] %v5095_v1 }
 0x4fb   : > { %v4997_v39 = vpop.f32.mrf.mxu2 }
 0x4fc   : > { %v4998_v10 = vadd.f32 %v9162_v21, %v4997_v39 }
 0x4fe   : > { %v5064_v53 = vadd.f32 %v5032_v58, %v4998_v10 }
 0x500   : > { %v5096_v30 = vmax.f32 %v5064_v53, 0.0 }
 0x502   : > { %5128 = vst [vmem:[%s9171_s13 + $0xf0] sm:$0xff] %v5096_v30 }
 0x503   : > { %v4999_v17 = vpop.f32.mrf.mxu2 }
 0x504   : > { %v5000_v14 = vadd.f32 %v9162_v21, %v4999_v17 }
 0x506   : > { %v5065_v62 = vadd.f32 %v5033_v47, %v5000_v14 }
 0x508   : > { %v5097_v49 = vmax.f32 %v5065_v62, 0.0 }
 0x50a   : > { %5129 = vst [vmem:[%s9171_s13 + $0xf8] sm:$0xff] %v5097_v49 }
 0x50b PF: > { %s18_s27 = sadd.s32 1, %s6164_s27  }
 0x50c   : > { %p15_p4 = scmp.ge.s32.totalorder %s18_s27, 4  }
 0x50e   :  { %17 = sbr.rel (!%p15_p4) target bundleno = 1 (0x1), region = 98 }

</bundles_post_ra>
